<compile_context>
chip_gen: v5e
topology: v5e:2x2
jax: 0.10.0
libtpu: 0.0.40
codegen_flags: <defaults>
</compile_context>

<pallas_src>
import functools

import jax
import jax.numpy as jnp
from jax.experimental import pallas as pl
from jax.experimental.pallas import tpu as pltpu

HP = 128   # per-gate COLUMN block = one full vreg lane width (gate slices stay 128-aligned)
BP = 8     # batch rows padded to a full sublane group (unmasked 8-row stores, matmul M=8)


# ----------------------------------------------------------------------------
# Fused Pallas kernel: L LSTM layers + Linear + sigmoid
# ----------------------------------------------------------------------------
def _bench_rnn_kernel(x_ref, wih_ref, whh_ref, b_ref, h0_ref, c0_ref,
                      wout_ref, bout_ref,
                      out_ref, hT_ref, cT_ref,
                      y_scr, gx_scr):
    """Shapes (all whole-array VMEM resident):

    x_ref   : (T*BP, KI)     time-major input, batch padded to BP, features padded to KI, f32
    wih_ref : (L, KI, 4*HP)  W_ih^T, gate-block columns (i,f,o,g), K-trimmed rows, bf16
    whh_ref : (L, H,  4*HP)  W_hh^T, gate-block columns (i,f,o,g), bf16
    b_ref   : (L, 1,  4*HP)  b_ih + b_hh, gate-block layout, f32
    h0_ref  : (L, BP, H)     initial hidden state (rows >= B are don't-care), f32
    c0_ref  : (L, BP, H)     initial cell state, f32
    wout_ref: (T*H, T*O)     Linear weight^T (row = t*H + h), bf16
    bout_ref: (1, T*O)       Linear bias, f32
    out_ref : (B, T*O)       sigmoid(Linear(flattened last-layer hidden states))
    hT_ref  : (L, B, H)      final hidden state
    cT_ref  : (L, B, H)      final cell state
    y_scr   : (T*BP, KI)     bf16 scratch: a layer's hidden outputs (next layer's input /
                             W_out operand for the last layer)
    gx_scr  : (T*BP, 4*HP)   f32 scratch: hoisted input projection for the current layer
    """
    L, Bp, H = h0_ref.shape
    B, TO = out_ref.shape
    TB, KI = x_ref.shape
    T = TB // Bp

    if KI > H:
        # Columns H:KI of y_scr feed zero weight rows but must not be NaN/Inf garbage.
        y_scr[...] = jnp.zeros(y_scr.shape, y_scr.dtype)

    layer_in = x_ref[...].astype(jnp.bfloat16)            # (T*Bp, KI) bf16

    for l in range(L):                                    # static layer loop
        # Loop-invariant recurrent weights, hoisted out of the time loop.
        whh_l = whh_ref[l]                                # (H, 4*HP) bf16

        # Hoisted input projection for the whole sequence (off the serial path),
        # staged through VMEM so the unrolled recurrence doesn't hold 32 vregs live.
        gx_scr[...] = (jnp.dot(layer_in, wih_ref[l],
                               preferred_element_type=jnp.float32)
                       + b_ref[l])                        # (T*Bp, 4*HP) f32

        h = h0_ref[l]                                     # (Bp, H) f32
        c = c0_ref[l]                                     # (Bp, H) f32

        for t in range(T):                                # fully unrolled recurrence
            gates = gx_scr[t * Bp:(t + 1) * Bp, :] + jnp.dot(
                h.astype(jnp.bfloat16), whh_l,
                preferred_element_type=jnp.float32)       # (Bp, 4*HP) f32

            # Gate blocks are (i, f, o, g): one sigmoid over 3 blocks, one tanh over the
            # last block.  All slices sit at 128-aligned lane offsets (no rotations).
            sg = jax.nn.sigmoid(gates[:, :3 * HP])        # (Bp, 3*HP)
            i_g = sg[:, 0 * HP:0 * HP + H]
            f_g = sg[:, 1 * HP:1 * HP + H]
            o_g = sg[:, 2 * HP:2 * HP + H]
            g_g = jnp.tanh(gates[:, 3 * HP:3 * HP + H])

            c = f_g * c + i_g * g_g                       # (Bp, H) f32
            h = o_g * jnp.tanh(c)                         # (Bp, H) f32

            # Full 8-sublane store; bf16 so the next layer reads it without a slab cast.
            y_scr[t * Bp:(t + 1) * Bp, :H] = h.astype(jnp.bfloat16)

        hT_ref[l] = h[:B, :]
        cT_ref[l] = c[:B, :]

        if l + 1 < L:
            layer_in = y_scr[...]                         # (T*Bp, KI) bf16

    # Output Linear, AFTER the recurrence (off the serial critical path): the flattened
    # per-sample vector is [h_0; ...; h_{T-1}], so accumulate one t-block of W_out^T at
    # a time against the stored last-layer hidden states.
    acc = jnp.zeros((Bp, TO), jnp.float32)
    for t in range(T):
        acc = acc + jnp.dot(y_scr[t * Bp:(t + 1) * Bp, :H],
                            wout_ref[t * H:(t + 1) * H, :],
                            preferred_element_type=jnp.float32)

    out_ref[...] = jax.nn.sigmoid(acc[:B, :] + bout_ref[...]).astype(out_ref.dtype)


# ----------------------------------------------------------------------------
# Wrapper
# ----------------------------------------------------------------------------
def bench_rnn_forward(params, x, h0, c0):
    """Mirrors BenchRNN.forward (bidirectional=False).

    x  : (B, T, I)  batch_first input
    h0 : (L, B, H), c0 : (L, B, H)
    returns y:(B, T, O), (hT, cT)
    """
    B, T, I = x.shape
    L, _, H = h0.shape
    TO = params["out_b"].shape[-1]
    O = TO // T
    KI = params["w_ih"].shape[1]
    assert B <= BP, "kernel pads batch to BP=8; larger batches need a batch grid axis"

    # time-major rows (row = t*BP + b), batch padded to BP, features padded to KI
    x_tm = jnp.transpose(x, (1, 0, 2))                       # (T, B, I)
    x_tm = jnp.pad(x_tm, ((0, 0), (0, BP - B), (0, KI - I)))
    x_pad = x_tm.reshape(T * BP, KI)

    h0_pad = jnp.pad(h0, ((0, 0), (0, BP - B), (0, 0)))      # (L, BP, H)
    c0_pad = jnp.pad(c0, ((0, 0), (0, BP - B), (0, 0)))

    vmem = pl.BlockSpec(memory_space=pltpu.MemorySpace.VMEM)
    out_flat, hT, cT = pl.pallas_call(
        _bench_rnn_kernel,
        out_shape=(jax.ShapeDtypeStruct((B, TO), jnp.float32),
                   jax.ShapeDtypeStruct((L, B, H), jnp.float32),
                   jax.ShapeDtypeStruct((L, B, H), jnp.float32)),
        in_specs=[vmem] * 8,
        out_specs=(vmem, vmem, vmem),
        scratch_shapes=[pltpu.VMEM((T * BP, KI), jnp.bfloat16),
                        pltpu.VMEM((T * BP, 4 * HP), jnp.float32)],
    )(x_pad, params["w_ih"], params["w_hh"], params["b"],
      h0_pad, c0_pad, params["w_out"], params["out_b"])

    return out_flat.reshape(B, T, O), (hT, cT)


# ----------------------------------------------------------------------------
# Deterministic parameter init (shapes follow nn.LSTM / nn.Linear), pre-packed into the
# kernel layout: gate columns reordered (i,f,g,o) -> (i,f,o,g), each gate padded to a
# 128-lane column block, contraction (K) rows kept UNpadded (K-trim).
# ----------------------------------------------------------------------------
def init_params(key, num_inputs, num_hidden, num_layers, seq_len, num_outputs):
    H = num_hidden
    KI = max(H, ((num_inputs + 15) // 16) * 16)   # layer-0 input width, 16-row aligned
    gate_order = jnp.array([0, 1, 3, 2])          # PyTorch (i,f,g,o) -> kernel (i,f,o,g)

    def reorder_pad_gates(w_t):   # (in, 4H) -> (in, 4*HP); gate k valid in cols [k*HP, k*HP+H)
        inp = w_t.shape[0]
        w4 = w_t.reshape(inp, 4, H)
        w4 = jnp.take(w4, gate_order, axis=1)
        w4 = jnp.pad(w4, ((0, 0), (0, 0), (0, HP - H)))
        return w4.reshape(inp, 4 * HP)

    k_lstm = 1.0 / (H ** 0.5)
    wih_list, whh_list, b_list = [], [], []
    for l in range(num_layers):
        in_sz = num_inputs if l == 0 else H
        key, k1, k2, k3, k4 = jax.random.split(key, 5)
        w_ih = jax.random.uniform(k1, (4 * H, in_sz), minval=-k_lstm, maxval=k_lstm)
        w_hh = jax.random.uniform(k2, (4 * H, H), minval=-k_lstm, maxval=k_lstm)
        b_ih = jax.random.uniform(k3, (4 * H,), minval=-k_lstm, maxval=k_lstm)
        b_hh = jax.random.uniform(k4, (4 * H,), minval=-k_lstm, maxval=k_lstm)

        wih_p = reorder_pad_gates(w_ih.T)                    # (in_sz, 4*HP)
        wih_p = jnp.pad(wih_p, ((0, KI - in_sz), (0, 0)))    # (KI, 4*HP), zero rows
        whh_p = reorder_pad_gates(w_hh.T)                    # (H, 4*HP)
        b_p = reorder_pad_gates((b_ih + b_hh).reshape(1, 4 * H))  # (1, 4*HP)

        wih_list.append(wih_p.astype(jnp.bfloat16))
        whh_list.append(whh_p.astype(jnp.bfloat16))
        b_list.append(b_p.astype(jnp.float32))

    params = {
        "w_ih": jnp.stack(wih_list),      # (L, KI, 4*HP) bf16
        "w_hh": jnp.stack(whh_list),      # (L, H,  4*HP) bf16
        "b":    jnp.stack(b_list),        # (L, 1,  4*HP) f32
    }

    in_feat, out_feat = seq_len * H, seq_len * num_outputs
    k_lin = 1.0 / (in_feat ** 0.5)
    key, k1, k2 = jax.random.split(key, 3)
    out_w = jax.random.uniform(k1, (out_feat, in_feat), minval=-k_lin, maxval=k_lin)
    out_b = jax.random.uniform(k2, (out_feat,), minval=-k_lin, maxval=k_lin)
    params["w_out"] = out_w.T.astype(jnp.bfloat16)           # (T*H, T*O), row = t*H + h
    params["out_b"] = out_b.reshape(1, -1).astype(jnp.float32)
    return params, key


# ----------------------------------------------------------------------------
if __name__ == "__main__":
    batch_size, seq_len = 2, 8
    num_inputs, num_hidden, num_layers, num_outputs = 16, 32, 2, 8

    key = jax.random.PRNGKey(0)
    params, key = init_params(key, num_inputs, num_hidden, num_layers,
                              seq_len, num_outputs)

    key, kx, kh, kc = jax.random.split(key, 4)
    x = jax.random.normal(kx, (batch_size, seq_len, num_inputs), jnp.float32)
    # torch.rand -> uniform [0, 1)
    h0 = jax.random.uniform(kh, (num_layers, batch_size, num_hidden), jnp.float32)
    c0 = jax.random.uniform(kc, (num_layers, batch_size, num_hidden), jnp.float32)

    fwd = jax.jit(functools.partial(bench_rnn_forward, params))
    y, (hT, cT) = fwd(x, h0, c0)
    jax.block_until_ready((y, hT, cT))

    assert y.shape == (batch_size, seq_len, num_outputs)
    assert hT.shape == (num_layers, batch_size, num_hidden)
    assert cT.shape == (num_layers, batch_size, num_hidden)
    print("KERNEL_OK")
</pallas_src>

<mosaic_0001>
module attributes {stable_mosaic.version = 11 : i64} {
  func.func @_bench_rnn_kernel(%arg0: memref<64x32xf32, #tpu.memory_space<vmem>>, %arg1: memref<2x32x512xbf16, #tpu.memory_space<vmem>>, %arg2: memref<2x32x512xbf16, #tpu.memory_space<vmem>>, %arg3: memref<2x1x512xf32, #tpu.memory_space<vmem>>, %arg4: memref<2x8x32xf32, #tpu.memory_space<vmem>>, %arg5: memref<2x8x32xf32, #tpu.memory_space<vmem>>, %arg6: memref<256x64xbf16, #tpu.memory_space<vmem>>, %arg7: memref<1x64xf32, #tpu.memory_space<vmem>>, %arg8: memref<2x64xf32, #tpu.memory_space<vmem>>, %arg9: memref<2x2x32xf32, #tpu.memory_space<vmem>>, %arg10: memref<2x2x32xf32, #tpu.memory_space<vmem>>, %arg11: memref<64x32xbf16, #tpu.memory_space<vmem>>, %arg12: memref<64x512xf32, #tpu.memory_space<vmem>>) attributes {dimension_semantics = [], scalar_prefetch = 0 : i64, scratch_operands = 2 : i64, tpu.core_type = #tpu.core_type<tc>} {
    %c0 = arith.constant 0 : index
    %c0_0 = arith.constant 0 : index
    %0 = vector.load %arg0[%c0, %c0_0] : memref<64x32xf32, #tpu.memory_space<vmem>>, vector<64x32xf32>
    %1 = arith.truncf %0 : vector<64x32xf32> to vector<64x32xbf16>
    %c0_1 = arith.constant 0 : index
    %c0_2 = arith.constant 0 : index
    %c0_3 = arith.constant 0 : index
    %2 = vector.load %arg2[%c0_1, %c0_2, %c0_3] : memref<2x32x512xbf16, #tpu.memory_space<vmem>>, vector<1x32x512xbf16>
    %3 = vector.shape_cast %2 : vector<1x32x512xbf16> to vector<32x512xbf16>
    %c0_4 = arith.constant 0 : index
    %c0_5 = arith.constant 0 : index
    %c0_6 = arith.constant 0 : index
    %4 = vector.load %arg1[%c0_4, %c0_5, %c0_6] : memref<2x32x512xbf16, #tpu.memory_space<vmem>>, vector<1x32x512xbf16>
    %5 = vector.shape_cast %4 : vector<1x32x512xbf16> to vector<32x512xbf16>
    %cst = arith.constant dense<0.000000e+00> : vector<64x512xf32>
    %6 = tpu.matmul %1, %5, %cst {dimension_numbers = #tpu.dot_dimension_numbers<[1], [0], [0], [1], [0, 0, 1, 1], [], []>} : vector<64x32xbf16>, vector<32x512xbf16>, vector<64x512xf32> -> vector<64x512xf32>
    %c0_7 = arith.constant 0 : index
    %c0_8 = arith.constant 0 : index
    %c0_9 = arith.constant 0 : index
    %7 = vector.load %arg3[%c0_7, %c0_8, %c0_9] : memref<2x1x512xf32, #tpu.memory_space<vmem>>, vector<1x1x512xf32>
    %8 = vector.shape_cast %7 : vector<1x1x512xf32> to vector<1x512xf32>
    %9 = vector.broadcast %8 : vector<1x512xf32> to vector<64x512xf32>
    %10 = arith.addf %6, %9 : vector<64x512xf32>
    %c0_10 = arith.constant 0 : index
    %c0_11 = arith.constant 0 : index
    %11 = vector.load %arg12[%c0_10, %c0_11] : memref<64x512xf32, #tpu.memory_space<vmem>>, vector<64x512xf32>
    tpu.vector_store %arg12[%c0_10, %c0_11], %10 {strides = array<i32>} : memref<64x512xf32, #tpu.memory_space<vmem>>, vector<64x512xf32>,
    %c0_12 = arith.constant 0 : index
    %c0_13 = arith.constant 0 : index
    %c0_14 = arith.constant 0 : index
    %12 = vector.load %arg4[%c0_12, %c0_13, %c0_14] : memref<2x8x32xf32, #tpu.memory_space<vmem>>, vector<1x8x32xf32>
    %13 = vector.shape_cast %12 : vector<1x8x32xf32> to vector<8x32xf32>
    %c0_15 = arith.constant 0 : index
    %c0_16 = arith.constant 0 : index
    %c0_17 = arith.constant 0 : index
    %14 = vector.load %arg5[%c0_15, %c0_16, %c0_17] : memref<2x8x32xf32, #tpu.memory_space<vmem>>, vector<1x8x32xf32>
    %15 = vector.shape_cast %14 : vector<1x8x32xf32> to vector<8x32xf32>
    %c0_18 = arith.constant 0 : index
    %c0_19 = arith.constant 0 : index
    %16 = vector.load %arg12[%c0_18, %c0_19] : memref<64x512xf32, #tpu.memory_space<vmem>>, vector<8x512xf32>
    %17 = arith.truncf %13 : vector<8x32xf32> to vector<8x32xbf16>
    %cst_20 = arith.constant dense<0.000000e+00> : vector<8x512xf32>
    %18 = tpu.matmul %17, %3, %cst_20 {dimension_numbers = #tpu.dot_dimension_numbers<[1], [0], [0], [1], [0, 0, 1, 1], [], []>} : vector<8x32xbf16>, vector<32x512xbf16>, vector<8x512xf32> -> vector<8x512xf32>
    %19 = arith.addf %16, %18 : vector<8x512xf32>
    %20 = vector.extract_strided_slice %19 {offsets = [0, 0], sizes = [8, 384], strides = [1, 1]} : vector<8x512xf32> to vector<8x384xf32>
    %21 = arith.negf %20 : vector<8x384xf32>
    %22 = math.exp %21 : vector<8x384xf32>
    %cst_21 = arith.constant 1.000000e+00 : f32
    %23 = vector.broadcast %cst_21 : f32 to vector<8x384xf32>
    %24 = arith.addf %23, %22 : vector<8x384xf32>
    %25 = arith.divf %23, %24 : vector<8x384xf32>
    %26 = vector.extract_strided_slice %25 {offsets = [0, 0], sizes = [8, 32], strides = [1, 1]} : vector<8x384xf32> to vector<8x32xf32>
    %27 = vector.extract_strided_slice %25 {offsets = [0, 128], sizes = [8, 32], strides = [1, 1]} : vector<8x384xf32> to vector<8x32xf32>
    %28 = vector.extract_strided_slice %25 {offsets = [0, 256], sizes = [8, 32], strides = [1, 1]} : vector<8x384xf32> to vector<8x32xf32>
    %29 = vector.extract_strided_slice %19 {offsets = [0, 384], sizes = [8, 32], strides = [1, 1]} : vector<8x512xf32> to vector<8x32xf32>
    %30 = math.tanh %29 : vector<8x32xf32>
    %31 = arith.mulf %27, %15 : vector<8x32xf32>
    %32 = arith.mulf %26, %30 : vector<8x32xf32>
    %33 = arith.addf %31, %32 : vector<8x32xf32>
    %34 = math.tanh %33 : vector<8x32xf32>
    %35 = arith.mulf %28, %34 : vector<8x32xf32>
    %36 = arith.truncf %35 : vector<8x32xf32> to vector<8x32xbf16>
    %c0_22 = arith.constant 0 : index
    %c0_23 = arith.constant 0 : index
    %37 = vector.load %arg11[%c0_22, %c0_23] : memref<64x32xbf16, #tpu.memory_space<vmem>>, vector<8x32xbf16>
    tpu.vector_store %arg11[%c0_22, %c0_23], %36 {strides = array<i32>} : memref<64x32xbf16, #tpu.memory_space<vmem>>, vector<8x32xbf16>,
    %c8 = arith.constant 8 : index
    %c0_24 = arith.constant 0 : index
    %38 = vector.load %arg12[%c8, %c0_24] : memref<64x512xf32, #tpu.memory_space<vmem>>, vector<8x512xf32>
    %39 = arith.truncf %35 : vector<8x32xf32> to vector<8x32xbf16>
    %cst_25 = arith.constant dense<0.000000e+00> : vector<8x512xf32>
    %40 = tpu.matmul %39, %3, %cst_25 {dimension_numbers = #tpu.dot_dimension_numbers<[1], [0], [0], [1], [0, 0, 1, 1], [], []>} : vector<8x32xbf16>, vector<32x512xbf16>, vector<8x512xf32> -> vector<8x512xf32>
    %41 = arith.addf %38, %40 : vector<8x512xf32>
    %42 = vector.extract_strided_slice %41 {offsets = [0, 0], sizes = [8, 384], strides = [1, 1]} : vector<8x512xf32> to vector<8x384xf32>
    %43 = arith.negf %42 : vector<8x384xf32>
    %44 = math.exp %43 : vector<8x384xf32>
    %cst_26 = arith.constant 1.000000e+00 : f32
    %45 = vector.broadcast %cst_26 : f32 to vector<8x384xf32>
    %46 = arith.addf %45, %44 : vector<8x384xf32>
    %47 = arith.divf %45, %46 : vector<8x384xf32>
    %48 = vector.extract_strided_slice %47 {offsets = [0, 0], sizes = [8, 32], strides = [1, 1]} : vector<8x384xf32> to vector<8x32xf32>
    %49 = vector.extract_strided_slice %47 {offsets = [0, 128], sizes = [8, 32], strides = [1, 1]} : vector<8x384xf32> to vector<8x32xf32>
    %50 = vector.extract_strided_slice %47 {offsets = [0, 256], sizes = [8, 32], strides = [1, 1]} : vector<8x384xf32> to vector<8x32xf32>
    %51 = vector.extract_strided_slice %41 {offsets = [0, 384], sizes = [8, 32], strides = [1, 1]} : vector<8x512xf32> to vector<8x32xf32>
    %52 = math.tanh %51 : vector<8x32xf32>
    %53 = arith.mulf %49, %33 : vector<8x32xf32>
    %54 = arith.mulf %48, %52 : vector<8x32xf32>
    %55 = arith.addf %53, %54 : vector<8x32xf32>
    %56 = math.tanh %55 : vector<8x32xf32>
    %57 = arith.mulf %50, %56 : vector<8x32xf32>
    %58 = arith.truncf %57 : vector<8x32xf32> to vector<8x32xbf16>
    %c8_27 = arith.constant 8 : index
    %c0_28 = arith.constant 0 : index
    %59 = vector.load %arg11[%c8_27, %c0_28] : memref<64x32xbf16, #tpu.memory_space<vmem>>, vector<8x32xbf16>
    tpu.vector_store %arg11[%c8_27, %c0_28], %58 {strides = array<i32>} : memref<64x32xbf16, #tpu.memory_space<vmem>>, vector<8x32xbf16>,
    %c16 = arith.constant 16 : index
    %c0_29 = arith.constant 0 : index
    %60 = vector.load %arg12[%c16, %c0_29] : memref<64x512xf32, #tpu.memory_space<vmem>>, vector<8x512xf32>
    %61 = arith.truncf %57 : vector<8x32xf32> to vector<8x32xbf16>
    %cst_30 = arith.constant dense<0.000000e+00> : vector<8x512xf32>
    %62 = tpu.matmul %61, %3, %cst_30 {dimension_numbers = #tpu.dot_dimension_numbers<[1], [0], [0], [1], [0, 0, 1, 1], [], []>} : vector<8x32xbf16>, vector<32x512xbf16>, vector<8x512xf32> -> vector<8x512xf32>
    %63 = arith.addf %60, %62 : vector<8x512xf32>
    %64 = vector.extract_strided_slice %63 {offsets = [0, 0], sizes = [8, 384], strides = [1, 1]} : vector<8x512xf32> to vector<8x384xf32>
    %65 = arith.negf %64 : vector<8x384xf32>
    %66 = math.exp %65 : vector<8x384xf32>
    %cst_31 = arith.constant 1.000000e+00 : f32
    %67 = vector.broadcast %cst_31 : f32 to vector<8x384xf32>
    %68 = arith.addf %67, %66 : vector<8x384xf32>
    %69 = arith.divf %67, %68 : vector<8x384xf32>
    %70 = vector.extract_strided_slice %69 {offsets = [0, 0], sizes = [8, 32], strides = [1, 1]} : vector<8x384xf32> to vector<8x32xf32>
    %71 = vector.extract_strided_slice %69 {offsets = [0, 128], sizes = [8, 32], strides = [1, 1]} : vector<8x384xf32> to vector<8x32xf32>
    %72 = vector.extract_strided_slice %69 {offsets = [0, 256], sizes = [8, 32], strides = [1, 1]} : vector<8x384xf32> to vector<8x32xf32>
    %73 = vector.extract_strided_slice %63 {offsets = [0, 384], sizes = [8, 32], strides = [1, 1]} : vector<8x512xf32> to vector<8x32xf32>
    %74 = math.tanh %73 : vector<8x32xf32>
    %75 = arith.mulf %71, %55 : vector<8x32xf32>
    %76 = arith.mulf %70, %74 : vector<8x32xf32>
    %77 = arith.addf %75, %76 : vector<8x32xf32>
    %78 = math.tanh %77 : vector<8x32xf32>
    %79 = arith.mulf %72, %78 : vector<8x32xf32>
    %80 = arith.truncf %79 : vector<8x32xf32> to vector<8x32xbf16>
    %c16_32 = arith.constant 16 : index
    %c0_33 = arith.constant 0 : index
    %81 = vector.load %arg11[%c16_32, %c0_33] : memref<64x32xbf16, #tpu.memory_space<vmem>>, vector<8x32xbf16>
    tpu.vector_store %arg11[%c16_32, %c0_33], %80 {strides = array<i32>} : memref<64x32xbf16, #tpu.memory_space<vmem>>, vector<8x32xbf16>,
    %c24 = arith.constant 24 : index
    %c0_34 = arith.constant 0 : index
    %82 = vector.load %arg12[%c24, %c0_34] : memref<64x512xf32, #tpu.memory_space<vmem>>, vector<8x512xf32>
    %83 = arith.truncf %79 : vector<8x32xf32> to vector<8x32xbf16>
    %cst_35 = arith.constant dense<0.000000e+00> : vector<8x512xf32>
    %84 = tpu.matmul %83, %3, %cst_35 {dimension_numbers = #tpu.dot_dimension_numbers<[1], [0], [0], [1], [0, 0, 1, 1], [], []>} : vector<8x32xbf16>, vector<32x512xbf16>, vector<8x512xf32> -> vector<8x512xf32>
    %85 = arith.addf %82, %84 : vector<8x512xf32>
    %86 = vector.extract_strided_slice %85 {offsets = [0, 0], sizes = [8, 384], strides = [1, 1]} : vector<8x512xf32> to vector<8x384xf32>
    %87 = arith.negf %86 : vector<8x384xf32>
    %88 = math.exp %87 : vector<8x384xf32>
    %cst_36 = arith.constant 1.000000e+00 : f32
    %89 = vector.broadcast %cst_36 : f32 to vector<8x384xf32>
    %90 = arith.addf %89, %88 : vector<8x384xf32>
    %91 = arith.divf %89, %90 : vector<8x384xf32>
    %92 = vector.extract_strided_slice %91 {offsets = [0, 0], sizes = [8, 32], strides = [1, 1]} : vector<8x384xf32> to vector<8x32xf32>
    %93 = vector.extract_strided_slice %91 {offsets = [0, 128], sizes = [8, 32], strides = [1, 1]} : vector<8x384xf32> to vector<8x32xf32>
    %94 = vector.extract_strided_slice %91 {offsets = [0, 256], sizes = [8, 32], strides = [1, 1]} : vector<8x384xf32> to vector<8x32xf32>
    %95 = vector.extract_strided_slice %85 {offsets = [0, 384], sizes = [8, 32], strides = [1, 1]} : vector<8x512xf32> to vector<8x32xf32>
    %96 = math.tanh %95 : vector<8x32xf32>
    %97 = arith.mulf %93, %77 : vector<8x32xf32>
    %98 = arith.mulf %92, %96 : vector<8x32xf32>
    %99 = arith.addf %97, %98 : vector<8x32xf32>
    %100 = math.tanh %99 : vector<8x32xf32>
    %101 = arith.mulf %94, %100 : vector<8x32xf32>
    %102 = arith.truncf %101 : vector<8x32xf32> to vector<8x32xbf16>
    %c24_37 = arith.constant 24 : index
    %c0_38 = arith.constant 0 : index
    %103 = vector.load %arg11[%c24_37, %c0_38] : memref<64x32xbf16, #tpu.memory_space<vmem>>, vector<8x32xbf16>
    tpu.vector_store %arg11[%c24_37, %c0_38], %102 {strides = array<i32>} : memref<64x32xbf16, #tpu.memory_space<vmem>>, vector<8x32xbf16>,
    %c32 = arith.constant 32 : index
    %c0_39 = arith.constant 0 : index
    %104 = vector.load %arg12[%c32, %c0_39] : memref<64x512xf32, #tpu.memory_space<vmem>>, vector<8x512xf32>
    %105 = arith.truncf %101 : vector<8x32xf32> to vector<8x32xbf16>
    %cst_40 = arith.constant dense<0.000000e+00> : vector<8x512xf32>
    %106 = tpu.matmul %105, %3, %cst_40 {dimension_numbers = #tpu.dot_dimension_numbers<[1], [0], [0], [1], [0, 0, 1, 1], [], []>} : vector<8x32xbf16>, vector<32x512xbf16>, vector<8x512xf32> -> vector<8x512xf32>
    %107 = arith.addf %104, %106 : vector<8x512xf32>
    %108 = vector.extract_strided_slice %107 {offsets = [0, 0], sizes = [8, 384], strides = [1, 1]} : vector<8x512xf32> to vector<8x384xf32>
    %109 = arith.negf %108 : vector<8x384xf32>
    %110 = math.exp %109 : vector<8x384xf32>
    %cst_41 = arith.constant 1.000000e+00 : f32
    %111 = vector.broadcast %cst_41 : f32 to vector<8x384xf32>
    %112 = arith.addf %111, %110 : vector<8x384xf32>
    %113 = arith.divf %111, %112 : vector<8x384xf32>
    %114 = vector.extract_strided_slice %113 {offsets = [0, 0], sizes = [8, 32], strides = [1, 1]} : vector<8x384xf32> to vector<8x32xf32>
    %115 = vector.extract_strided_slice %113 {offsets = [0, 128], sizes = [8, 32], strides = [1, 1]} : vector<8x384xf32> to vector<8x32xf32>
    %116 = vector.extract_strided_slice %113 {offsets = [0, 256], sizes = [8, 32], strides = [1, 1]} : vector<8x384xf32> to vector<8x32xf32>
    %117 = vector.extract_strided_slice %107 {offsets = [0, 384], sizes = [8, 32], strides = [1, 1]} : vector<8x512xf32> to vector<8x32xf32>
    %118 = math.tanh %117 : vector<8x32xf32>
    %119 = arith.mulf %115, %99 : vector<8x32xf32>
    %120 = arith.mulf %114, %118 : vector<8x32xf32>
    %121 = arith.addf %119, %120 : vector<8x32xf32>
    %122 = math.tanh %121 : vector<8x32xf32>
    %123 = arith.mulf %116, %122 : vector<8x32xf32>
    %124 = arith.truncf %123 : vector<8x32xf32> to vector<8x32xbf16>
    %c32_42 = arith.constant 32 : index
    %c0_43 = arith.constant 0 : index
    %125 = vector.load %arg11[%c32_42, %c0_43] : memref<64x32xbf16, #tpu.memory_space<vmem>>, vector<8x32xbf16>
    tpu.vector_store %arg11[%c32_42, %c0_43], %124 {strides = array<i32>} : memref<64x32xbf16, #tpu.memory_space<vmem>>, vector<8x32xbf16>,
    %c40 = arith.constant 40 : index
    %c0_44 = arith.constant 0 : index
    %126 = vector.load %arg12[%c40, %c0_44] : memref<64x512xf32, #tpu.memory_space<vmem>>, vector<8x512xf32>
    %127 = arith.truncf %123 : vector<8x32xf32> to vector<8x32xbf16>
    %cst_45 = arith.constant dense<0.000000e+00> : vector<8x512xf32>
    %128 = tpu.matmul %127, %3, %cst_45 {dimension_numbers = #tpu.dot_dimension_numbers<[1], [0], [0], [1], [0, 0, 1, 1], [], []>} : vector<8x32xbf16>, vector<32x512xbf16>, vector<8x512xf32> -> vector<8x512xf32>
    %129 = arith.addf %126, %128 : vector<8x512xf32>
    %130 = vector.extract_strided_slice %129 {offsets = [0, 0], sizes = [8, 384], strides = [1, 1]} : vector<8x512xf32> to vector<8x384xf32>
    %131 = arith.negf %130 : vector<8x384xf32>
    %132 = math.exp %131 : vector<8x384xf32>
    %cst_46 = arith.constant 1.000000e+00 : f32
    %133 = vector.broadcast %cst_46 : f32 to vector<8x384xf32>
    %134 = arith.addf %133, %132 : vector<8x384xf32>
    %135 = arith.divf %133, %134 : vector<8x384xf32>
    %136 = vector.extract_strided_slice %135 {offsets = [0, 0], sizes = [8, 32], strides = [1, 1]} : vector<8x384xf32> to vector<8x32xf32>
    %137 = vector.extract_strided_slice %135 {offsets = [0, 128], sizes = [8, 32], strides = [1, 1]} : vector<8x384xf32> to vector<8x32xf32>
    %138 = vector.extract_strided_slice %135 {offsets = [0, 256], sizes = [8, 32], strides = [1, 1]} : vector<8x384xf32> to vector<8x32xf32>
    %139 = vector.extract_strided_slice %129 {offsets = [0, 384], sizes = [8, 32], strides = [1, 1]} : vector<8x512xf32> to vector<8x32xf32>
    %140 = math.tanh %139 : vector<8x32xf32>
    %141 = arith.mulf %137, %121 : vector<8x32xf32>
    %142 = arith.mulf %136, %140 : vector<8x32xf32>
    %143 = arith.addf %141, %142 : vector<8x32xf32>
    %144 = math.tanh %143 : vector<8x32xf32>
    %145 = arith.mulf %138, %144 : vector<8x32xf32>
    %146 = arith.truncf %145 : vector<8x32xf32> to vector<8x32xbf16>
    %c40_47 = arith.constant 40 : index
    %c0_48 = arith.constant 0 : index
    %147 = vector.load %arg11[%c40_47, %c0_48] : memref<64x32xbf16, #tpu.memory_space<vmem>>, vector<8x32xbf16>
    tpu.vector_store %arg11[%c40_47, %c0_48], %146 {strides = array<i32>} : memref<64x32xbf16, #tpu.memory_space<vmem>>, vector<8x32xbf16>,
    %c48 = arith.constant 48 : index
    %c0_49 = arith.constant 0 : index
    %148 = vector.load %arg12[%c48, %c0_49] : memref<64x512xf32, #tpu.memory_space<vmem>>, vector<8x512xf32>
    %149 = arith.truncf %145 : vector<8x32xf32> to vector<8x32xbf16>
    %cst_50 = arith.constant dense<0.000000e+00> : vector<8x512xf32>
    %150 = tpu.matmul %149, %3, %cst_50 {dimension_numbers = #tpu.dot_dimension_numbers<[1], [0], [0], [1], [0, 0, 1, 1], [], []>} : vector<8x32xbf16>, vector<32x512xbf16>, vector<8x512xf32> -> vector<8x512xf32>
    %151 = arith.addf %148, %150 : vector<8x512xf32>
    %152 = vector.extract_strided_slice %151 {offsets = [0, 0], sizes = [8, 384], strides = [1, 1]} : vector<8x512xf32> to vector<8x384xf32>
    %153 = arith.negf %152 : vector<8x384xf32>
    %154 = math.exp %153 : vector<8x384xf32>
    %cst_51 = arith.constant 1.000000e+00 : f32
    %155 = vector.broadcast %cst_51 : f32 to vector<8x384xf32>
    %156 = arith.addf %155, %154 : vector<8x384xf32>
    %157 = arith.divf %155, %156 : vector<8x384xf32>
    %158 = vector.extract_strided_slice %157 {offsets = [0, 0], sizes = [8, 32], strides = [1, 1]} : vector<8x384xf32> to vector<8x32xf32>
    %159 = vector.extract_strided_slice %157 {offsets = [0, 128], sizes = [8, 32], strides = [1, 1]} : vector<8x384xf32> to vector<8x32xf32>
    %160 = vector.extract_strided_slice %157 {offsets = [0, 256], sizes = [8, 32], strides = [1, 1]} : vector<8x384xf32> to vector<8x32xf32>
    %161 = vector.extract_strided_slice %151 {offsets = [0, 384], sizes = [8, 32], strides = [1, 1]} : vector<8x512xf32> to vector<8x32xf32>
    %162 = math.tanh %161 : vector<8x32xf32>
    %163 = arith.mulf %159, %143 : vector<8x32xf32>
    %164 = arith.mulf %158, %162 : vector<8x32xf32>
    %165 = arith.addf %163, %164 : vector<8x32xf32>
    %166 = math.tanh %165 : vector<8x32xf32>
    %167 = arith.mulf %160, %166 : vector<8x32xf32>
    %168 = arith.truncf %167 : vector<8x32xf32> to vector<8x32xbf16>
    %c48_52 = arith.constant 48 : index
    %c0_53 = arith.constant 0 : index
    %169 = vector.load %arg11[%c48_52, %c0_53] : memref<64x32xbf16, #tpu.memory_space<vmem>>, vector<8x32xbf16>
    tpu.vector_store %arg11[%c48_52, %c0_53], %168 {strides = array<i32>} : memref<64x32xbf16, #tpu.memory_space<vmem>>, vector<8x32xbf16>,
    %c56 = arith.constant 56 : index
    %c0_54 = arith.constant 0 : index
    %170 = vector.load %arg12[%c56, %c0_54] : memref<64x512xf32, #tpu.memory_space<vmem>>, vector<8x512xf32>
    %171 = arith.truncf %167 : vector<8x32xf32> to vector<8x32xbf16>
    %cst_55 = arith.constant dense<0.000000e+00> : vector<8x512xf32>
    %172 = tpu.matmul %171, %3, %cst_55 {dimension_numbers = #tpu.dot_dimension_numbers<[1], [0], [0], [1], [0, 0, 1, 1], [], []>} : vector<8x32xbf16>, vector<32x512xbf16>, vector<8x512xf32> -> vector<8x512xf32>
    %173 = arith.addf %170, %172 : vector<8x512xf32>
    %174 = vector.extract_strided_slice %173 {offsets = [0, 0], sizes = [8, 384], strides = [1, 1]} : vector<8x512xf32> to vector<8x384xf32>
    %175 = arith.negf %174 : vector<8x384xf32>
    %176 = math.exp %175 : vector<8x384xf32>
    %cst_56 = arith.constant 1.000000e+00 : f32
    %177 = vector.broadcast %cst_56 : f32 to vector<8x384xf32>
    %178 = arith.addf %177, %176 : vector<8x384xf32>
    %179 = arith.divf %177, %178 : vector<8x384xf32>
    %180 = vector.extract_strided_slice %179 {offsets = [0, 0], sizes = [8, 32], strides = [1, 1]} : vector<8x384xf32> to vector<8x32xf32>
    %181 = vector.extract_strided_slice %179 {offsets = [0, 128], sizes = [8, 32], strides = [1, 1]} : vector<8x384xf32> to vector<8x32xf32>
    %182 = vector.extract_strided_slice %179 {offsets = [0, 256], sizes = [8, 32], strides = [1, 1]} : vector<8x384xf32> to vector<8x32xf32>
    %183 = vector.extract_strided_slice %173 {offsets = [0, 384], sizes = [8, 32], strides = [1, 1]} : vector<8x512xf32> to vector<8x32xf32>
    %184 = math.tanh %183 : vector<8x32xf32>
    %185 = arith.mulf %181, %165 : vector<8x32xf32>
    %186 = arith.mulf %180, %184 : vector<8x32xf32>
    %187 = arith.addf %185, %186 : vector<8x32xf32>
    %188 = math.tanh %187 : vector<8x32xf32>
    %189 = arith.mulf %182, %188 : vector<8x32xf32>
    %190 = arith.truncf %189 : vector<8x32xf32> to vector<8x32xbf16>
    %c56_57 = arith.constant 56 : index
    %c0_58 = arith.constant 0 : index
    %191 = vector.load %arg11[%c56_57, %c0_58] : memref<64x32xbf16, #tpu.memory_space<vmem>>, vector<8x32xbf16>
    tpu.vector_store %arg11[%c56_57, %c0_58], %190 {strides = array<i32>} : memref<64x32xbf16, #tpu.memory_space<vmem>>, vector<8x32xbf16>,
    %192 = vector.extract_strided_slice %189 {offsets = [0, 0], sizes = [2, 32], strides = [1, 1]} : vector<8x32xf32> to vector<2x32xf32>
    %c0_59 = arith.constant 0 : index
    %c0_60 = arith.constant 0 : index
    %c0_61 = arith.constant 0 : index
    %193 = vector.load %arg9[%c0_59, %c0_60, %c0_61] : memref<2x2x32xf32, #tpu.memory_space<vmem>>, vector<1x2x32xf32>
    %194 = vector.shape_cast %193 : vector<1x2x32xf32> to vector<2x32xf32>
    %195 = vector.shape_cast %192 : vector<2x32xf32> to vector<1x2x32xf32>
    tpu.vector_store %arg9[%c0_59, %c0_60, %c0_61], %195 {strides = array<i32>} : memref<2x2x32xf32, #tpu.memory_space<vmem>>, vector<1x2x32xf32>,
    %196 = vector.extract_strided_slice %187 {offsets = [0, 0], sizes = [2, 32], strides = [1, 1]} : vector<8x32xf32> to vector<2x32xf32>
    %c0_62 = arith.constant 0 : index
    %c0_63 = arith.constant 0 : index
    %c0_64 = arith.constant 0 : index
    %197 = vector.load %arg10[%c0_62, %c0_63, %c0_64] : memref<2x2x32xf32, #tpu.memory_space<vmem>>, vector<1x2x32xf32>
    %198 = vector.shape_cast %197 : vector<1x2x32xf32> to vector<2x32xf32>
    %199 = vector.shape_cast %196 : vector<2x32xf32> to vector<1x2x32xf32>
    tpu.vector_store %arg10[%c0_62, %c0_63, %c0_64], %199 {strides = array<i32>} : memref<2x2x32xf32, #tpu.memory_space<vmem>>, vector<1x2x32xf32>,
    %c0_65 = arith.constant 0 : index
    %c0_66 = arith.constant 0 : index
    %200 = vector.load %arg11[%c0_65, %c0_66] : memref<64x32xbf16, #tpu.memory_space<vmem>>, vector<64x32xbf16>
    %c1 = arith.constant 1 : index
    %c0_67 = arith.constant 0 : index
    %c0_68 = arith.constant 0 : index
    %201 = vector.load %arg2[%c1, %c0_67, %c0_68] : memref<2x32x512xbf16, #tpu.memory_space<vmem>>, vector<1x32x512xbf16>
    %202 = vector.shape_cast %201 : vector<1x32x512xbf16> to vector<32x512xbf16>
    %c1_69 = arith.constant 1 : index
    %c0_70 = arith.constant 0 : index
    %c0_71 = arith.constant 0 : index
    %203 = vector.load %arg1[%c1_69, %c0_70, %c0_71] : memref<2x32x512xbf16, #tpu.memory_space<vmem>>, vector<1x32x512xbf16>
    %204 = vector.shape_cast %203 : vector<1x32x512xbf16> to vector<32x512xbf16>
    %cst_72 = arith.constant dense<0.000000e+00> : vector<64x512xf32>
    %205 = tpu.matmul %200, %204, %cst_72 {dimension_numbers = #tpu.dot_dimension_numbers<[1], [0], [0], [1], [0, 0, 1, 1], [], []>} : vector<64x32xbf16>, vector<32x512xbf16>, vector<64x512xf32> -> vector<64x512xf32>
    %c1_73 = arith.constant 1 : index
    %c0_74 = arith.constant 0 : index
    %c0_75 = arith.constant 0 : index
    %206 = vector.load %arg3[%c1_73, %c0_74, %c0_75] : memref<2x1x512xf32, #tpu.memory_space<vmem>>, vector<1x1x512xf32>
    %207 = vector.shape_cast %206 : vector<1x1x512xf32> to vector<1x512xf32>
    %208 = vector.broadcast %207 : vector<1x512xf32> to vector<64x512xf32>
    %209 = arith.addf %205, %208 : vector<64x512xf32>
    %c0_76 = arith.constant 0 : index
    %c0_77 = arith.constant 0 : index
    %210 = vector.load %arg12[%c0_76, %c0_77] : memref<64x512xf32, #tpu.memory_space<vmem>>, vector<64x512xf32>
    tpu.vector_store %arg12[%c0_76, %c0_77], %209 {strides = array<i32>} : memref<64x512xf32, #tpu.memory_space<vmem>>, vector<64x512xf32>,
    %c1_78 = arith.constant 1 : index
    %c0_79 = arith.constant 0 : index
    %c0_80 = arith.constant 0 : index
    %211 = vector.load %arg4[%c1_78, %c0_79, %c0_80] : memref<2x8x32xf32, #tpu.memory_space<vmem>>, vector<1x8x32xf32>
    %212 = vector.shape_cast %211 : vector<1x8x32xf32> to vector<8x32xf32>
    %c1_81 = arith.constant 1 : index
    %c0_82 = arith.constant 0 : index
    %c0_83 = arith.constant 0 : index
    %213 = vector.load %arg5[%c1_81, %c0_82, %c0_83] : memref<2x8x32xf32, #tpu.memory_space<vmem>>, vector<1x8x32xf32>
    %214 = vector.shape_cast %213 : vector<1x8x32xf32> to vector<8x32xf32>
    %c0_84 = arith.constant 0 : index
    %c0_85 = arith.constant 0 : index
    %215 = vector.load %arg12[%c0_84, %c0_85] : memref<64x512xf32, #tpu.memory_space<vmem>>, vector<8x512xf32>
    %216 = arith.truncf %212 : vector<8x32xf32> to vector<8x32xbf16>
    %cst_86 = arith.constant dense<0.000000e+00> : vector<8x512xf32>
    %217 = tpu.matmul %216, %202, %cst_86 {dimension_numbers = #tpu.dot_dimension_numbers<[1], [0], [0], [1], [0, 0, 1, 1], [], []>} : vector<8x32xbf16>, vector<32x512xbf16>, vector<8x512xf32> -> vector<8x512xf32>
    %218 = arith.addf %215, %217 : vector<8x512xf32>
    %219 = vector.extract_strided_slice %218 {offsets = [0, 0], sizes = [8, 384], strides = [1, 1]} : vector<8x512xf32> to vector<8x384xf32>
    %220 = arith.negf %219 : vector<8x384xf32>
    %221 = math.exp %220 : vector<8x384xf32>
    %cst_87 = arith.constant 1.000000e+00 : f32
    %222 = vector.broadcast %cst_87 : f32 to vector<8x384xf32>
    %223 = arith.addf %222, %221 : vector<8x384xf32>
    %224 = arith.divf %222, %223 : vector<8x384xf32>
    %225 = vector.extract_strided_slice %224 {offsets = [0, 0], sizes = [8, 32], strides = [1, 1]} : vector<8x384xf32> to vector<8x32xf32>
    %226 = vector.extract_strided_slice %224 {offsets = [0, 128], sizes = [8, 32], strides = [1, 1]} : vector<8x384xf32> to vector<8x32xf32>
    %227 = vector.extract_strided_slice %224 {offsets = [0, 256], sizes = [8, 32], strides = [1, 1]} : vector<8x384xf32> to vector<8x32xf32>
    %228 = vector.extract_strided_slice %218 {offsets = [0, 384], sizes = [8, 32], strides = [1, 1]} : vector<8x512xf32> to vector<8x32xf32>
    %229 = math.tanh %228 : vector<8x32xf32>
    %230 = arith.mulf %226, %214 : vector<8x32xf32>
    %231 = arith.mulf %225, %229 : vector<8x32xf32>
    %232 = arith.addf %230, %231 : vector<8x32xf32>
    %233 = math.tanh %232 : vector<8x32xf32>
    %234 = arith.mulf %227, %233 : vector<8x32xf32>
    %235 = arith.truncf %234 : vector<8x32xf32> to vector<8x32xbf16>
    %c0_88 = arith.constant 0 : index
    %c0_89 = arith.constant 0 : index
    %236 = vector.load %arg11[%c0_88, %c0_89] : memref<64x32xbf16, #tpu.memory_space<vmem>>, vector<8x32xbf16>
    tpu.vector_store %arg11[%c0_88, %c0_89], %235 {strides = array<i32>} : memref<64x32xbf16, #tpu.memory_space<vmem>>, vector<8x32xbf16>,
    %c8_90 = arith.constant 8 : index
    %c0_91 = arith.constant 0 : index
    %237 = vector.load %arg12[%c8_90, %c0_91] : memref<64x512xf32, #tpu.memory_space<vmem>>, vector<8x512xf32>
    %238 = arith.truncf %234 : vector<8x32xf32> to vector<8x32xbf16>
    %cst_92 = arith.constant dense<0.000000e+00> : vector<8x512xf32>
    %239 = tpu.matmul %238, %202, %cst_92 {dimension_numbers = #tpu.dot_dimension_numbers<[1], [0], [0], [1], [0, 0, 1, 1], [], []>} : vector<8x32xbf16>, vector<32x512xbf16>, vector<8x512xf32> -> vector<8x512xf32>
    %240 = arith.addf %237, %239 : vector<8x512xf32>
    %241 = vector.extract_strided_slice %240 {offsets = [0, 0], sizes = [8, 384], strides = [1, 1]} : vector<8x512xf32> to vector<8x384xf32>
    %242 = arith.negf %241 : vector<8x384xf32>
    %243 = math.exp %242 : vector<8x384xf32>
    %cst_93 = arith.constant 1.000000e+00 : f32
    %244 = vector.broadcast %cst_93 : f32 to vector<8x384xf32>
    %245 = arith.addf %244, %243 : vector<8x384xf32>
    %246 = arith.divf %244, %245 : vector<8x384xf32>
    %247 = vector.extract_strided_slice %246 {offsets = [0, 0], sizes = [8, 32], strides = [1, 1]} : vector<8x384xf32> to vector<8x32xf32>
    %248 = vector.extract_strided_slice %246 {offsets = [0, 128], sizes = [8, 32], strides = [1, 1]} : vector<8x384xf32> to vector<8x32xf32>
    %249 = vector.extract_strided_slice %246 {offsets = [0, 256], sizes = [8, 32], strides = [1, 1]} : vector<8x384xf32> to vector<8x32xf32>
    %250 = vector.extract_strided_slice %240 {offsets = [0, 384], sizes = [8, 32], strides = [1, 1]} : vector<8x512xf32> to vector<8x32xf32>
    %251 = math.tanh %250 : vector<8x32xf32>
    %252 = arith.mulf %248, %232 : vector<8x32xf32>
    %253 = arith.mulf %247, %251 : vector<8x32xf32>
    %254 = arith.addf %252, %253 : vector<8x32xf32>
    %255 = math.tanh %254 : vector<8x32xf32>
    %256 = arith.mulf %249, %255 : vector<8x32xf32>
    %257 = arith.truncf %256 : vector<8x32xf32> to vector<8x32xbf16>
    %c8_94 = arith.constant 8 : index
    %c0_95 = arith.constant 0 : index
    %258 = vector.load %arg11[%c8_94, %c0_95] : memref<64x32xbf16, #tpu.memory_space<vmem>>, vector<8x32xbf16>
    tpu.vector_store %arg11[%c8_94, %c0_95], %257 {strides = array<i32>} : memref<64x32xbf16, #tpu.memory_space<vmem>>, vector<8x32xbf16>,
    %c16_96 = arith.constant 16 : index
    %c0_97 = arith.constant 0 : index
    %259 = vector.load %arg12[%c16_96, %c0_97] : memref<64x512xf32, #tpu.memory_space<vmem>>, vector<8x512xf32>
    %260 = arith.truncf %256 : vector<8x32xf32> to vector<8x32xbf16>
    %cst_98 = arith.constant dense<0.000000e+00> : vector<8x512xf32>
    %261 = tpu.matmul %260, %202, %cst_98 {dimension_numbers = #tpu.dot_dimension_numbers<[1], [0], [0], [1], [0, 0, 1, 1], [], []>} : vector<8x32xbf16>, vector<32x512xbf16>, vector<8x512xf32> -> vector<8x512xf32>
    %262 = arith.addf %259, %261 : vector<8x512xf32>
    %263 = vector.extract_strided_slice %262 {offsets = [0, 0], sizes = [8, 384], strides = [1, 1]} : vector<8x512xf32> to vector<8x384xf32>
    %264 = arith.negf %263 : vector<8x384xf32>
    %265 = math.exp %264 : vector<8x384xf32>
    %cst_99 = arith.constant 1.000000e+00 : f32
    %266 = vector.broadcast %cst_99 : f32 to vector<8x384xf32>
    %267 = arith.addf %266, %265 : vector<8x384xf32>
    %268 = arith.divf %266, %267 : vector<8x384xf32>
    %269 = vector.extract_strided_slice %268 {offsets = [0, 0], sizes = [8, 32], strides = [1, 1]} : vector<8x384xf32> to vector<8x32xf32>
    %270 = vector.extract_strided_slice %268 {offsets = [0, 128], sizes = [8, 32], strides = [1, 1]} : vector<8x384xf32> to vector<8x32xf32>
    %271 = vector.extract_strided_slice %268 {offsets = [0, 256], sizes = [8, 32], strides = [1, 1]} : vector<8x384xf32> to vector<8x32xf32>
    %272 = vector.extract_strided_slice %262 {offsets = [0, 384], sizes = [8, 32], strides = [1, 1]} : vector<8x512xf32> to vector<8x32xf32>
    %273 = math.tanh %272 : vector<8x32xf32>
    %274 = arith.mulf %270, %254 : vector<8x32xf32>
    %275 = arith.mulf %269, %273 : vector<8x32xf32>
    %276 = arith.addf %274, %275 : vector<8x32xf32>
    %277 = math.tanh %276 : vector<8x32xf32>
    %278 = arith.mulf %271, %277 : vector<8x32xf32>
    %279 = arith.truncf %278 : vector<8x32xf32> to vector<8x32xbf16>
    %c16_100 = arith.constant 16 : index
    %c0_101 = arith.constant 0 : index
    %280 = vector.load %arg11[%c16_100, %c0_101] : memref<64x32xbf16, #tpu.memory_space<vmem>>, vector<8x32xbf16>
    tpu.vector_store %arg11[%c16_100, %c0_101], %279 {strides = array<i32>} : memref<64x32xbf16, #tpu.memory_space<vmem>>, vector<8x32xbf16>,
    %c24_102 = arith.constant 24 : index
    %c0_103 = arith.constant 0 : index
    %281 = vector.load %arg12[%c24_102, %c0_103] : memref<64x512xf32, #tpu.memory_space<vmem>>, vector<8x512xf32>
    %282 = arith.truncf %278 : vector<8x32xf32> to vector<8x32xbf16>
    %cst_104 = arith.constant dense<0.000000e+00> : vector<8x512xf32>
    %283 = tpu.matmul %282, %202, %cst_104 {dimension_numbers = #tpu.dot_dimension_numbers<[1], [0], [0], [1], [0, 0, 1, 1], [], []>} : vector<8x32xbf16>, vector<32x512xbf16>, vector<8x512xf32> -> vector<8x512xf32>
    %284 = arith.addf %281, %283 : vector<8x512xf32>
    %285 = vector.extract_strided_slice %284 {offsets = [0, 0], sizes = [8, 384], strides = [1, 1]} : vector<8x512xf32> to vector<8x384xf32>
    %286 = arith.negf %285 : vector<8x384xf32>
    %287 = math.exp %286 : vector<8x384xf32>
    %cst_105 = arith.constant 1.000000e+00 : f32
    %288 = vector.broadcast %cst_105 : f32 to vector<8x384xf32>
    %289 = arith.addf %288, %287 : vector<8x384xf32>
    %290 = arith.divf %288, %289 : vector<8x384xf32>
    %291 = vector.extract_strided_slice %290 {offsets = [0, 0], sizes = [8, 32], strides = [1, 1]} : vector<8x384xf32> to vector<8x32xf32>
    %292 = vector.extract_strided_slice %290 {offsets = [0, 128], sizes = [8, 32], strides = [1, 1]} : vector<8x384xf32> to vector<8x32xf32>
    %293 = vector.extract_strided_slice %290 {offsets = [0, 256], sizes = [8, 32], strides = [1, 1]} : vector<8x384xf32> to vector<8x32xf32>
    %294 = vector.extract_strided_slice %284 {offsets = [0, 384], sizes = [8, 32], strides = [1, 1]} : vector<8x512xf32> to vector<8x32xf32>
    %295 = math.tanh %294 : vector<8x32xf32>
    %296 = arith.mulf %292, %276 : vector<8x32xf32>
    %297 = arith.mulf %291, %295 : vector<8x32xf32>
    %298 = arith.addf %296, %297 : vector<8x32xf32>
    %299 = math.tanh %298 : vector<8x32xf32>
    %300 = arith.mulf %293, %299 : vector<8x32xf32>
    %301 = arith.truncf %300 : vector<8x32xf32> to vector<8x32xbf16>
    %c24_106 = arith.constant 24 : index
    %c0_107 = arith.constant 0 : index
    %302 = vector.load %arg11[%c24_106, %c0_107] : memref<64x32xbf16, #tpu.memory_space<vmem>>, vector<8x32xbf16>
    tpu.vector_store %arg11[%c24_106, %c0_107], %301 {strides = array<i32>} : memref<64x32xbf16, #tpu.memory_space<vmem>>, vector<8x32xbf16>,
    %c32_108 = arith.constant 32 : index
    %c0_109 = arith.constant 0 : index
    %303 = vector.load %arg12[%c32_108, %c0_109] : memref<64x512xf32, #tpu.memory_space<vmem>>, vector<8x512xf32>
    %304 = arith.truncf %300 : vector<8x32xf32> to vector<8x32xbf16>
    %cst_110 = arith.constant dense<0.000000e+00> : vector<8x512xf32>
    %305 = tpu.matmul %304, %202, %cst_110 {dimension_numbers = #tpu.dot_dimension_numbers<[1], [0], [0], [1], [0, 0, 1, 1], [], []>} : vector<8x32xbf16>, vector<32x512xbf16>, vector<8x512xf32> -> vector<8x512xf32>
    %306 = arith.addf %303, %305 : vector<8x512xf32>
    %307 = vector.extract_strided_slice %306 {offsets = [0, 0], sizes = [8, 384], strides = [1, 1]} : vector<8x512xf32> to vector<8x384xf32>
    %308 = arith.negf %307 : vector<8x384xf32>
    %309 = math.exp %308 : vector<8x384xf32>
    %cst_111 = arith.constant 1.000000e+00 : f32
    %310 = vector.broadcast %cst_111 : f32 to vector<8x384xf32>
    %311 = arith.addf %310, %309 : vector<8x384xf32>
    %312 = arith.divf %310, %311 : vector<8x384xf32>
    %313 = vector.extract_strided_slice %312 {offsets = [0, 0], sizes = [8, 32], strides = [1, 1]} : vector<8x384xf32> to vector<8x32xf32>
    %314 = vector.extract_strided_slice %312 {offsets = [0, 128], sizes = [8, 32], strides = [1, 1]} : vector<8x384xf32> to vector<8x32xf32>
    %315 = vector.extract_strided_slice %312 {offsets = [0, 256], sizes = [8, 32], strides = [1, 1]} : vector<8x384xf32> to vector<8x32xf32>
    %316 = vector.extract_strided_slice %306 {offsets = [0, 384], sizes = [8, 32], strides = [1, 1]} : vector<8x512xf32> to vector<8x32xf32>
    %317 = math.tanh %316 : vector<8x32xf32>
    %318 = arith.mulf %314, %298 : vector<8x32xf32>
    %319 = arith.mulf %313, %317 : vector<8x32xf32>
    %320 = arith.addf %318, %319 : vector<8x32xf32>
    %321 = math.tanh %320 : vector<8x32xf32>
    %322 = arith.mulf %315, %321 : vector<8x32xf32>
    %323 = arith.truncf %322 : vector<8x32xf32> to vector<8x32xbf16>
    %c32_112 = arith.constant 32 : index
    %c0_113 = arith.constant 0 : index
    %324 = vector.load %arg11[%c32_112, %c0_113] : memref<64x32xbf16, #tpu.memory_space<vmem>>, vector<8x32xbf16>
    tpu.vector_store %arg11[%c32_112, %c0_113], %323 {strides = array<i32>} : memref<64x32xbf16, #tpu.memory_space<vmem>>, vector<8x32xbf16>,
    %c40_114 = arith.constant 40 : index
    %c0_115 = arith.constant 0 : index
    %325 = vector.load %arg12[%c40_114, %c0_115] : memref<64x512xf32, #tpu.memory_space<vmem>>, vector<8x512xf32>
    %326 = arith.truncf %322 : vector<8x32xf32> to vector<8x32xbf16>
    %cst_116 = arith.constant dense<0.000000e+00> : vector<8x512xf32>
    %327 = tpu.matmul %326, %202, %cst_116 {dimension_numbers = #tpu.dot_dimension_numbers<[1], [0], [0], [1], [0, 0, 1, 1], [], []>} : vector<8x32xbf16>, vector<32x512xbf16>, vector<8x512xf32> -> vector<8x512xf32>
    %328 = arith.addf %325, %327 : vector<8x512xf32>
    %329 = vector.extract_strided_slice %328 {offsets = [0, 0], sizes = [8, 384], strides = [1, 1]} : vector<8x512xf32> to vector<8x384xf32>
    %330 = arith.negf %329 : vector<8x384xf32>
    %331 = math.exp %330 : vector<8x384xf32>
    %cst_117 = arith.constant 1.000000e+00 : f32
    %332 = vector.broadcast %cst_117 : f32 to vector<8x384xf32>
    %333 = arith.addf %332, %331 : vector<8x384xf32>
    %334 = arith.divf %332, %333 : vector<8x384xf32>
    %335 = vector.extract_strided_slice %334 {offsets = [0, 0], sizes = [8, 32], strides = [1, 1]} : vector<8x384xf32> to vector<8x32xf32>
    %336 = vector.extract_strided_slice %334 {offsets = [0, 128], sizes = [8, 32], strides = [1, 1]} : vector<8x384xf32> to vector<8x32xf32>
    %337 = vector.extract_strided_slice %334 {offsets = [0, 256], sizes = [8, 32], strides = [1, 1]} : vector<8x384xf32> to vector<8x32xf32>
    %338 = vector.extract_strided_slice %328 {offsets = [0, 384], sizes = [8, 32], strides = [1, 1]} : vector<8x512xf32> to vector<8x32xf32>
    %339 = math.tanh %338 : vector<8x32xf32>
    %340 = arith.mulf %336, %320 : vector<8x32xf32>
    %341 = arith.mulf %335, %339 : vector<8x32xf32>
    %342 = arith.addf %340, %341 : vector<8x32xf32>
    %343 = math.tanh %342 : vector<8x32xf32>
    %344 = arith.mulf %337, %343 : vector<8x32xf32>
    %345 = arith.truncf %344 : vector<8x32xf32> to vector<8x32xbf16>
    %c40_118 = arith.constant 40 : index
    %c0_119 = arith.constant 0 : index
    %346 = vector.load %arg11[%c40_118, %c0_119] : memref<64x32xbf16, #tpu.memory_space<vmem>>, vector<8x32xbf16>
    tpu.vector_store %arg11[%c40_118, %c0_119], %345 {strides = array<i32>} : memref<64x32xbf16, #tpu.memory_space<vmem>>, vector<8x32xbf16>,
    %c48_120 = arith.constant 48 : index
    %c0_121 = arith.constant 0 : index
    %347 = vector.load %arg12[%c48_120, %c0_121] : memref<64x512xf32, #tpu.memory_space<vmem>>, vector<8x512xf32>
    %348 = arith.truncf %344 : vector<8x32xf32> to vector<8x32xbf16>
    %cst_122 = arith.constant dense<0.000000e+00> : vector<8x512xf32>
    %349 = tpu.matmul %348, %202, %cst_122 {dimension_numbers = #tpu.dot_dimension_numbers<[1], [0], [0], [1], [0, 0, 1, 1], [], []>} : vector<8x32xbf16>, vector<32x512xbf16>, vector<8x512xf32> -> vector<8x512xf32>
    %350 = arith.addf %347, %349 : vector<8x512xf32>
    %351 = vector.extract_strided_slice %350 {offsets = [0, 0], sizes = [8, 384], strides = [1, 1]} : vector<8x512xf32> to vector<8x384xf32>
    %352 = arith.negf %351 : vector<8x384xf32>
    %353 = math.exp %352 : vector<8x384xf32>
    %cst_123 = arith.constant 1.000000e+00 : f32
    %354 = vector.broadcast %cst_123 : f32 to vector<8x384xf32>
    %355 = arith.addf %354, %353 : vector<8x384xf32>
    %356 = arith.divf %354, %355 : vector<8x384xf32>
    %357 = vector.extract_strided_slice %356 {offsets = [0, 0], sizes = [8, 32], strides = [1, 1]} : vector<8x384xf32> to vector<8x32xf32>
    %358 = vector.extract_strided_slice %356 {offsets = [0, 128], sizes = [8, 32], strides = [1, 1]} : vector<8x384xf32> to vector<8x32xf32>
    %359 = vector.extract_strided_slice %356 {offsets = [0, 256], sizes = [8, 32], strides = [1, 1]} : vector<8x384xf32> to vector<8x32xf32>
    %360 = vector.extract_strided_slice %350 {offsets = [0, 384], sizes = [8, 32], strides = [1, 1]} : vector<8x512xf32> to vector<8x32xf32>
    %361 = math.tanh %360 : vector<8x32xf32>
    %362 = arith.mulf %358, %342 : vector<8x32xf32>
    %363 = arith.mulf %357, %361 : vector<8x32xf32>
    %364 = arith.addf %362, %363 : vector<8x32xf32>
    %365 = math.tanh %364 : vector<8x32xf32>
    %366 = arith.mulf %359, %365 : vector<8x32xf32>
    %367 = arith.truncf %366 : vector<8x32xf32> to vector<8x32xbf16>
    %c48_124 = arith.constant 48 : index
    %c0_125 = arith.constant 0 : index
    %368 = vector.load %arg11[%c48_124, %c0_125] : memref<64x32xbf16, #tpu.memory_space<vmem>>, vector<8x32xbf16>
    tpu.vector_store %arg11[%c48_124, %c0_125], %367 {strides = array<i32>} : memref<64x32xbf16, #tpu.memory_space<vmem>>, vector<8x32xbf16>,
    %c56_126 = arith.constant 56 : index
    %c0_127 = arith.constant 0 : index
    %369 = vector.load %arg12[%c56_126, %c0_127] : memref<64x512xf32, #tpu.memory_space<vmem>>, vector<8x512xf32>
    %370 = arith.truncf %366 : vector<8x32xf32> to vector<8x32xbf16>
    %cst_128 = arith.constant dense<0.000000e+00> : vector<8x512xf32>
    %371 = tpu.matmul %370, %202, %cst_128 {dimension_numbers = #tpu.dot_dimension_numbers<[1], [0], [0], [1], [0, 0, 1, 1], [], []>} : vector<8x32xbf16>, vector<32x512xbf16>, vector<8x512xf32> -> vector<8x512xf32>
    %372 = arith.addf %369, %371 : vector<8x512xf32>
    %373 = vector.extract_strided_slice %372 {offsets = [0, 0], sizes = [8, 384], strides = [1, 1]} : vector<8x512xf32> to vector<8x384xf32>
    %374 = arith.negf %373 : vector<8x384xf32>
    %375 = math.exp %374 : vector<8x384xf32>
    %cst_129 = arith.constant 1.000000e+00 : f32
    %376 = vector.broadcast %cst_129 : f32 to vector<8x384xf32>
    %377 = arith.addf %376, %375 : vector<8x384xf32>
    %378 = arith.divf %376, %377 : vector<8x384xf32>
    %379 = vector.extract_strided_slice %378 {offsets = [0, 0], sizes = [8, 32], strides = [1, 1]} : vector<8x384xf32> to vector<8x32xf32>
    %380 = vector.extract_strided_slice %378 {offsets = [0, 128], sizes = [8, 32], strides = [1, 1]} : vector<8x384xf32> to vector<8x32xf32>
    %381 = vector.extract_strided_slice %378 {offsets = [0, 256], sizes = [8, 32], strides = [1, 1]} : vector<8x384xf32> to vector<8x32xf32>
    %382 = vector.extract_strided_slice %372 {offsets = [0, 384], sizes = [8, 32], strides = [1, 1]} : vector<8x512xf32> to vector<8x32xf32>
    %383 = math.tanh %382 : vector<8x32xf32>
    %384 = arith.mulf %380, %364 : vector<8x32xf32>
    %385 = arith.mulf %379, %383 : vector<8x32xf32>
    %386 = arith.addf %384, %385 : vector<8x32xf32>
    %387 = math.tanh %386 : vector<8x32xf32>
    %388 = arith.mulf %381, %387 : vector<8x32xf32>
    %389 = arith.truncf %388 : vector<8x32xf32> to vector<8x32xbf16>
    %c56_130 = arith.constant 56 : index
    %c0_131 = arith.constant 0 : index
    %390 = vector.load %arg11[%c56_130, %c0_131] : memref<64x32xbf16, #tpu.memory_space<vmem>>, vector<8x32xbf16>
    tpu.vector_store %arg11[%c56_130, %c0_131], %389 {strides = array<i32>} : memref<64x32xbf16, #tpu.memory_space<vmem>>, vector<8x32xbf16>,
    %391 = vector.extract_strided_slice %388 {offsets = [0, 0], sizes = [2, 32], strides = [1, 1]} : vector<8x32xf32> to vector<2x32xf32>
    %c1_132 = arith.constant 1 : index
    %c0_133 = arith.constant 0 : index
    %c0_134 = arith.constant 0 : index
    %392 = vector.load %arg9[%c1_132, %c0_133, %c0_134] : memref<2x2x32xf32, #tpu.memory_space<vmem>>, vector<1x2x32xf32>
    %393 = vector.shape_cast %392 : vector<1x2x32xf32> to vector<2x32xf32>
    %394 = vector.shape_cast %391 : vector<2x32xf32> to vector<1x2x32xf32>
    tpu.vector_store %arg9[%c1_132, %c0_133, %c0_134], %394 {strides = array<i32>} : memref<2x2x32xf32, #tpu.memory_space<vmem>>, vector<1x2x32xf32>,
    %395 = vector.extract_strided_slice %386 {offsets = [0, 0], sizes = [2, 32], strides = [1, 1]} : vector<8x32xf32> to vector<2x32xf32>
    %c1_135 = arith.constant 1 : index
    %c0_136 = arith.constant 0 : index
    %c0_137 = arith.constant 0 : index
    %396 = vector.load %arg10[%c1_135, %c0_136, %c0_137] : memref<2x2x32xf32, #tpu.memory_space<vmem>>, vector<1x2x32xf32>
    %397 = vector.shape_cast %396 : vector<1x2x32xf32> to vector<2x32xf32>
    %398 = vector.shape_cast %395 : vector<2x32xf32> to vector<1x2x32xf32>
    tpu.vector_store %arg10[%c1_135, %c0_136, %c0_137], %398 {strides = array<i32>} : memref<2x2x32xf32, #tpu.memory_space<vmem>>, vector<1x2x32xf32>,
    %cst_138 = arith.constant 0.000000e+00 : f32
    %399 = vector.broadcast %cst_138 : f32 to vector<8x64xf32>
    %c0_139 = arith.constant 0 : index
    %c0_140 = arith.constant 0 : index
    %400 = vector.load %arg11[%c0_139, %c0_140] : memref<64x32xbf16, #tpu.memory_space<vmem>>, vector<8x32xbf16>
    %c0_141 = arith.constant 0 : index
    %c0_142 = arith.constant 0 : index
    %401 = vector.load %arg6[%c0_141, %c0_142] : memref<256x64xbf16, #tpu.memory_space<vmem>>, vector<32x64xbf16>
    %cst_143 = arith.constant dense<0.000000e+00> : vector<8x64xf32>
    %402 = tpu.matmul %400, %401, %cst_143 {dimension_numbers = #tpu.dot_dimension_numbers<[1], [0], [0], [1], [0, 0, 1, 1], [], []>} : vector<8x32xbf16>, vector<32x64xbf16>, vector<8x64xf32> -> vector<8x64xf32>
    %403 = arith.addf %399, %402 : vector<8x64xf32>
    %c8_144 = arith.constant 8 : index
    %c0_145 = arith.constant 0 : index
    %404 = vector.load %arg11[%c8_144, %c0_145] : memref<64x32xbf16, #tpu.memory_space<vmem>>, vector<8x32xbf16>
    %c32_146 = arith.constant 32 : index
    %c0_147 = arith.constant 0 : index
    %405 = vector.load %arg6[%c32_146, %c0_147] : memref<256x64xbf16, #tpu.memory_space<vmem>>, vector<32x64xbf16>
    %cst_148 = arith.constant dense<0.000000e+00> : vector<8x64xf32>
    %406 = tpu.matmul %404, %405, %cst_148 {dimension_numbers = #tpu.dot_dimension_numbers<[1], [0], [0], [1], [0, 0, 1, 1], [], []>} : vector<8x32xbf16>, vector<32x64xbf16>, vector<8x64xf32> -> vector<8x64xf32>
    %407 = arith.addf %403, %406 : vector<8x64xf32>
    %c16_149 = arith.constant 16 : index
    %c0_150 = arith.constant 0 : index
    %408 = vector.load %arg11[%c16_149, %c0_150] : memref<64x32xbf16, #tpu.memory_space<vmem>>, vector<8x32xbf16>
    %c64 = arith.constant 64 : index
    %c0_151 = arith.constant 0 : index
    %409 = vector.load %arg6[%c64, %c0_151] : memref<256x64xbf16, #tpu.memory_space<vmem>>, vector<32x64xbf16>
    %cst_152 = arith.constant dense<0.000000e+00> : vector<8x64xf32>
    %410 = tpu.matmul %408, %409, %cst_152 {dimension_numbers = #tpu.dot_dimension_numbers<[1], [0], [0], [1], [0, 0, 1, 1], [], []>} : vector<8x32xbf16>, vector<32x64xbf16>, vector<8x64xf32> -> vector<8x64xf32>
    %411 = arith.addf %407, %410 : vector<8x64xf32>
    %c24_153 = arith.constant 24 : index
    %c0_154 = arith.constant 0 : index
    %412 = vector.load %arg11[%c24_153, %c0_154] : memref<64x32xbf16, #tpu.memory_space<vmem>>, vector<8x32xbf16>
    %c96 = arith.constant 96 : index
    %c0_155 = arith.constant 0 : index
    %413 = vector.load %arg6[%c96, %c0_155] : memref<256x64xbf16, #tpu.memory_space<vmem>>, vector<32x64xbf16>
    %cst_156 = arith.constant dense<0.000000e+00> : vector<8x64xf32>
    %414 = tpu.matmul %412, %413, %cst_156 {dimension_numbers = #tpu.dot_dimension_numbers<[1], [0], [0], [1], [0, 0, 1, 1], [], []>} : vector<8x32xbf16>, vector<32x64xbf16>, vector<8x64xf32> -> vector<8x64xf32>
    %415 = arith.addf %411, %414 : vector<8x64xf32>
    %c32_157 = arith.constant 32 : index
    %c0_158 = arith.constant 0 : index
    %416 = vector.load %arg11[%c32_157, %c0_158] : memref<64x32xbf16, #tpu.memory_space<vmem>>, vector<8x32xbf16>
    %c128 = arith.constant 128 : index
    %c0_159 = arith.constant 0 : index
    %417 = vector.load %arg6[%c128, %c0_159] : memref<256x64xbf16, #tpu.memory_space<vmem>>, vector<32x64xbf16>
    %cst_160 = arith.constant dense<0.000000e+00> : vector<8x64xf32>
    %418 = tpu.matmul %416, %417, %cst_160 {dimension_numbers = #tpu.dot_dimension_numbers<[1], [0], [0], [1], [0, 0, 1, 1], [], []>} : vector<8x32xbf16>, vector<32x64xbf16>, vector<8x64xf32> -> vector<8x64xf32>
    %419 = arith.addf %415, %418 : vector<8x64xf32>
    %c40_161 = arith.constant 40 : index
    %c0_162 = arith.constant 0 : index
    %420 = vector.load %arg11[%c40_161, %c0_162] : memref<64x32xbf16, #tpu.memory_space<vmem>>, vector<8x32xbf16>
    %c160 = arith.constant 160 : index
    %c0_163 = arith.constant 0 : index
    %421 = vector.load %arg6[%c160, %c0_163] : memref<256x64xbf16, #tpu.memory_space<vmem>>, vector<32x64xbf16>
    %cst_164 = arith.constant dense<0.000000e+00> : vector<8x64xf32>
    %422 = tpu.matmul %420, %421, %cst_164 {dimension_numbers = #tpu.dot_dimension_numbers<[1], [0], [0], [1], [0, 0, 1, 1], [], []>} : vector<8x32xbf16>, vector<32x64xbf16>, vector<8x64xf32> -> vector<8x64xf32>
    %423 = arith.addf %419, %422 : vector<8x64xf32>
    %c48_165 = arith.constant 48 : index
    %c0_166 = arith.constant 0 : index
    %424 = vector.load %arg11[%c48_165, %c0_166] : memref<64x32xbf16, #tpu.memory_space<vmem>>, vector<8x32xbf16>
    %c192 = arith.constant 192 : index
    %c0_167 = arith.constant 0 : index
    %425 = vector.load %arg6[%c192, %c0_167] : memref<256x64xbf16, #tpu.memory_space<vmem>>, vector<32x64xbf16>
    %cst_168 = arith.constant dense<0.000000e+00> : vector<8x64xf32>
    %426 = tpu.matmul %424, %425, %cst_168 {dimension_numbers = #tpu.dot_dimension_numbers<[1], [0], [0], [1], [0, 0, 1, 1], [], []>} : vector<8x32xbf16>, vector<32x64xbf16>, vector<8x64xf32> -> vector<8x64xf32>
    %427 = arith.addf %423, %426 : vector<8x64xf32>
    %c56_169 = arith.constant 56 : index
    %c0_170 = arith.constant 0 : index
    %428 = vector.load %arg11[%c56_169, %c0_170] : memref<64x32xbf16, #tpu.memory_space<vmem>>, vector<8x32xbf16>
    %c224 = arith.constant 224 : index
    %c0_171 = arith.constant 0 : index
    %429 = vector.load %arg6[%c224, %c0_171] : memref<256x64xbf16, #tpu.memory_space<vmem>>, vector<32x64xbf16>
    %cst_172 = arith.constant dense<0.000000e+00> : vector<8x64xf32>
    %430 = tpu.matmul %428, %429, %cst_172 {dimension_numbers = #tpu.dot_dimension_numbers<[1], [0], [0], [1], [0, 0, 1, 1], [], []>} : vector<8x32xbf16>, vector<32x64xbf16>, vector<8x64xf32> -> vector<8x64xf32>
    %431 = arith.addf %427, %430 : vector<8x64xf32>
    %432 = vector.extract_strided_slice %431 {offsets = [0, 0], sizes = [2, 64], strides = [1, 1]} : vector<8x64xf32> to vector<2x64xf32>
    %c0_173 = arith.constant 0 : index
    %c0_174 = arith.constant 0 : index
    %433 = vector.load %arg7[%c0_173, %c0_174] : memref<1x64xf32, #tpu.memory_space<vmem>>, vector<1x64xf32>
    %434 = vector.broadcast %433 : vector<1x64xf32> to vector<2x64xf32>
    %435 = arith.addf %432, %434 : vector<2x64xf32>
    %436 = arith.negf %435 : vector<2x64xf32>
    %437 = math.exp %436 : vector<2x64xf32>
    %cst_175 = arith.constant 1.000000e+00 : f32
    %438 = vector.broadcast %cst_175 : f32 to vector<2x64xf32>
    %439 = arith.addf %438, %437 : vector<2x64xf32>
    %440 = arith.divf %438, %439 : vector<2x64xf32>
    %c0_176 = arith.constant 0 : index
    %c0_177 = arith.constant 0 : index
    %441 = vector.load %arg8[%c0_176, %c0_177] : memref<2x64xf32, #tpu.memory_space<vmem>>, vector<2x64xf32>
    tpu.vector_store %arg8[%c0_176, %c0_177], %440 {strides = array<i32>} : memref<2x64xf32, #tpu.memory_space<vmem>>, vector<2x64xf32>,
    return
  }
}

</mosaic_0001>

<bundles_post_ra>
// kernel: bench_rnn_forward.1
= control target key start
LH: loop header
LB: loop body
LE: loop exit
PB: predicated region body
PF: predicated region fallthrough
CT: control target
= control target key end

     0   :  { %16 = vsyncpa [#allocation5], 0  ;;  %s4647_s0 = inlined_call_operand.vmem [shape: f32[64,32], index: 0, kind: input, shape index: {}]   ;;  %s4648_s1 = inlined_call_operand.hbm [shape: bf16[2,32,512], index: 1, kind: input, shape index: {}]   ;;  %s4649_s2 = inlined_call_operand.hbm [shape: bf16[2,32,512], index: 2, kind: input, shape index: {}]   ;;  %s4650_s3 = inlined_call_operand.vmem [shape: f32[2,1,512], index: 3, kind: input, shape index: {}]   ;;  %s4651_s4 = inlined_call_operand.vmem [shape: f32[2,8,32], index: 4, kind: input, shape index: {}]   ;;  %s4652_s5 = inlined_call_operand.vmem [shape: f32[2,8,32], index: 5, kind: input, shape index: {}]   ;;  %s4653_s6 = inlined_call_operand.hbm [shape: bf16[256,64], index: 6, kind: input, shape index: {}]   ;;  %s4654_s7 = inlined_call_operand.vmem [shape: f32[1,64], index: 7, kind: input, shape index: {}]   ;;  %s4655_s8 = inlined_call_operand.vmem [shape: f32[2,64], index: 8, kind: output, shape index: {0}]   ;;  %s4656_s9 = inlined_call_operand.hbm [shape: f32[2,2,32], index: 9, kind: output, shape index: {1}]   ;;  %s4657_s10 = inlined_call_operand.hbm [shape: f32[2,2,32], index: 10, kind: output, shape index: {2}]  }
   0x1   :  { %17 = vsyncpa [#allocation8], 0 }
   0x2   :  { %18 = vsyncpa [#allocation6], 0 }
   0x3   :  { %19 = vsyncpa [#allocation12], 0  ;;  %s39_s15 = sshll.u32 %s4649_s2, 4  ;;  %s3876_s16 = smov [#allocation7]   ;;  %s40_s15 = int_to_ptr.hbm [resolvable:$true] %s39_s15 }
   0x4   :  { %s41_s17 = sshll.u32 %s3876_s16, 4  ;;  %s26_s20 = sshll.u32 %s4648_s1, 4  ;;  %s42_s17 = int_to_ptr.vmem [resolvable:$true] %s41_s17  ;;  %s27_s20 = int_to_ptr.hbm [resolvable:$true] %s26_s20 }
   0x5   :  { %s3877_s21 = smov 256   ;;  %s3878_s22 = smov 16  }
   0x6   :  { %47 = dma.hbm_to_vmem [thread:$0]  %s40_s15, 2048, %s42_s17, [#allocation8], %s3877_s21, %s3877_s21, %s3878_s22  }
   0x7   :  { %s3879_s23 = smov [#allocation4]   ;;  %s58_s27 = sshll.u32 %s4653_s6, 4  ;;  %s59_s27 = int_to_ptr.hbm [resolvable:$true] %s58_s27 }
   0x8   :  { %s28_s24 = sshll.u32 %s3879_s23, 4  ;;  %s3880_s2 = smov [#allocation9]   ;;  %s29_s24 = int_to_ptr.vmem [resolvable:$true] %s28_s24 }
   0x9   :  { %34 = dma.hbm_to_vmem [thread:$0]  %s27_s20, 2048, %s29_s24, [#allocation5], %s3877_s21, %s3877_s21, %s3878_s22  }
   0xa   :  { %s60_s28 = sshll.u32 %s3880_s2, 4  ;;  %s3881_s29 = smov 64   ;;  %s61_s28 = int_to_ptr.vmem [resolvable:$true] %s60_s28 }
   0xb   :  { %s3882_s30 = smov 4  }
   0xc   :  { %66 = dma.hbm_to_vmem [thread:$0]  %s59_s27, 2048, %s61_s28, [#allocation8], %s3881_s29, %s3881_s29, %s3882_s30  }
   0xd   :  { %3868 = dma.done.wait [#allocation5], 2048  }
   0xe   :  { %3869 = vsyncadd [#allocation5], 4294965248 }
   0xf   :  { %3870 = dma.done.wait [#allocation8], 4096  }
  0x10   :  { %3871 = vsyncadd [#allocation8], 4294963200  ;;  %v3078_v0 = vld [vmem:[#allocation4 + $0x20] sm:$0xf]  ;;  %v3438_v1 = vld [vmem:[#allocation4 + $0x2c] sm:$0xf0] }
  0x11   :  { %v3436_v2 = vld [vmem:[#allocation4 + $0x24] sm:$0xf]  ;;  %v3079_v3 = vor.u32 %v3438_v1, %v3078_v0  ;;  %v3080_v4 = vld [vmem:[#allocation4 + $0x30] sm:$0xf0]  ;;  %v3086_v5 = vld [vmem:[#allocation4 + $0x28] sm:$0xf] }
  0x12   :  { %v3439_v6 = vld [vmem:[#allocation4 + $0x34] sm:$0xf0]  ;;  %v3083_v7 = vor.u32 %v3436_v2, %v3080_v4  ;;  %v3437_v9 = vld [vmem:[#allocation4 + $0x2c] sm:$0xf]  ;;  %v3088_v10 = vld [vmem:[#allocation4 + $0x38] sm:$0xf0] }
  0x13   :  { %v3087_v8 = vor.u32 %v3439_v6, %v3086_v5  ;;  %v3062_v11 = vld [vmem:[#allocation4] sm:$0xf]  ;;  %179 = vmatpush.bf16.msra.mxu0 %v3079_v3  ;;  %v3091_v12 = vor.u32 %v3437_v9, %v3088_v10  ;;  %v3434_v13 = vld [vmem:[#allocation4 + $0xc] sm:$0xf0]  ;;  %v3432_v14 = vld [vmem:[#allocation4 + $0x4] sm:$0xf] }
  0x14   :  { %v3064_v15 = vld [vmem:[#allocation4 + $0x10] sm:$0xf0]  ;;  %208 = vmatpush.bf16.msra.mxu1 %v3083_v7  ;;  %v3063_v16 = vor.u32 %v3434_v13, %v3062_v11  ;;  %v3070_v18 = vld [vmem:[#allocation4 + $0x8] sm:$0xf]  ;;  %v3435_v19 = vld [vmem:[#allocation4 + $0x14] sm:$0xf0] }
  0x15   :  { %237 = vmatpush.bf16.msra.mxu2 %v3087_v8  ;;  %v3067_v17 = vor.u32 %v3432_v14, %v3064_v15  ;;  %v3433_v20 = vld [vmem:[#allocation4 + $0xc] sm:$0xf]  ;;  %266 = vmatpush.bf16.msra.mxu3 %v3091_v12  ;;  %v3071_v21 = vor.u32 %v3435_v19, %v3070_v18  ;;  %v3072_v22 = vld [vmem:[#allocation4 + $0x18] sm:$0xf0]  ;;  %v82_v23 = vld [vmem:[%s4647_s0] sm:$0xff]  ;;  %vm160_vm0 = vcmask 261120  }
  0x16   :  { %v83_v24 = vld [vmem:[%s4647_s0 + $0x8] sm:$0xff]  ;;  %v3075_v25 = vor.u32 %v3433_v20, %v3072_v22  ;;  %v3126_v27 = vld [vmem:[#allocation7 + $0x20] sm:$0xf]  ;;  %v3430_v28 = vld [vmem:[#allocation7 + $0x2c] sm:$0xf0]  ;;  %vm491_vm13 = vcmask 257024  }
  0x17   :  { %v90_v26 = vpack.c.bf16 %v83_v24, %v82_v23  ;;  %v3428_v29 = vld [vmem:[#allocation7 + $0x24] sm:$0xf]  ;;  %180 = vmatpush.bf16.msra.mxu0 %v3063_v16  ;;  %v3957_v30 = vor.u32 %v3430_v28, %v3126_v27  ;;  %v3128_v31 = vld [vmem:[#allocation7 + $0x30] sm:$0xf0]  ;;  %v3134_v32 = vld [vmem:[#allocation7 + $0x28] sm:$0xf] }
  0x18   :  { %v3431_v33 = vld [vmem:[#allocation7 + $0x34] sm:$0xf0]  ;;  %209 = vmatpush.bf16.msra.mxu1 %v3067_v17  ;;  %v3959_v34 = vor.u32 %v3428_v29, %v3128_v31  ;;  %v3429_v36 = vld [vmem:[#allocation7 + $0x2c] sm:$0xf]  ;;  %v3136_v37 = vld [vmem:[#allocation7 + $0x38] sm:$0xf0] }
  0x19   :  { %238 = vmatpush.bf16.msra.mxu2 %v3071_v21  ;;  %v3961_v35 = vor.u32 %v3431_v33, %v3134_v32  ;;  %267 = vmatpush.bf16.msra.mxu3 %v3075_v25  ;;  %v3964_v38 = vor.u32 %v3429_v36, %v3136_v37  ;;  %v3110_v39 = vld [vmem:[#allocation7] sm:$0xf]  ;;  %v3426_v40 = vld [vmem:[#allocation7 + $0xc] sm:$0xf0]  ;;  %v3424_v41 = vld [vmem:[#allocation7 + $0x4] sm:$0xf] }
  0x1a   :  { %3092 = vmatmul.msk.bf16.vlgmr.msra.gmra.mxu0 %vm160_vm0, %v90_v26  ;;  %v3973_v42 = vor.u32 %v3426_v40, %v3110_v39  ;;  %v3112_v43 = vld [vmem:[#allocation7 + $0x10] sm:$0xf0]  ;;  %v3118_v44 = vld [vmem:[#allocation7 + $0x8] sm:$0xf]  ;;  %v3427_v45 = vld [vmem:[#allocation7 + $0x14] sm:$0xf0] }
  0x1b   :  { %377 = vmatpush.bf16.msrb.mxu0 %v3957_v30  ;;  %3096 = vmatmul.msk.bf16.vlgmr.msra.gmra.mxu1 %vm160_vm0, %v90_v26  ;;  %v3975_v46 = vor.u32 %v3424_v41, %v3112_v43  ;;  %v3977_v47 = vor.u32 %v3427_v45, %v3118_v44  ;;  %v3425_v48 = vld [vmem:[#allocation7 + $0xc] sm:$0xf]  ;;  %v3120_v49 = vld [vmem:[#allocation7 + $0x18] sm:$0xf0]  ;;  %v84_v51 = vld [vmem:[%s4647_s0 + $0x10] sm:$0xff]  ;;  %s3026_s14 = sshll.u32 %s4656_s9, 4  ;;  %s3027_s14 = int_to_ptr.hbm [resolvable:$true] %s3026_s14 }
  0x1c   :  { %390 = vmatpush.bf16.msrb.mxu1 %v3959_v34  ;;  %3100 = vmatmul.msk.bf16.vlgmr.msra.gmra.mxu2 %vm160_vm0, %v90_v26  ;;  %v3980_v50 = vor.u32 %v3425_v48, %v3120_v49  ;;  %v85_v52 = vld [vmem:[%s4647_s0 + $0x18] sm:$0xff]  ;;  %v86_v54 = vld [vmem:[%s4647_s0 + $0x20] sm:$0xff]  ;;  %v87_v55 = vld [vmem:[%s4647_s0 + $0x28] sm:$0xff]  ;;  %s3884_s15 = smov 32   ;;  %s3885_s16 = smov 2  }
  0x1d   :  { %3104 = vmatmul.msk.bf16.vlgmr.msra.gmra.mxu3 %vm160_vm0, %v90_v26  ;;  %403 = vmatpush.bf16.msrb.mxu2 %v3961_v35  ;;  %v91_v53 = vpack.c.bf16 %v85_v52, %v84_v51  ;;  %v92_v56 = vpack.c.bf16 %v87_v55, %v86_v54  ;;  %v88_v57 = vld [vmem:[%s4647_s0 + $0x30] sm:$0xff]  ;;  %v89_v58 = vld [vmem:[%s4647_s0 + $0x38] sm:$0xff]  ;;  %v321_v60 = vld [vmem:[%s4651_s4] sm:$0xff]  ;;  %s3886_s17 = smov [#allocation11]   ;;  %s3039_s21 = sshll.u32 %s4657_s10, 4  ;;  %s3040_s21 = int_to_ptr.hbm [resolvable:$true] %s3039_s21 }
  0x1e   :  { %416 = vmatpush.bf16.msrb.mxu3 %v3964_v38  ;;  %v93_v59 = vpack.c.bf16 %v89_v58, %v88_v57  ;;  %v327_v61 = vpack.c.bf16 %v321_v60, %v321_v60  ;;  %v110_v4 = vld [vmem:[%s4650_s3] sm:$0xf]  ;;  %s3037_s18 = sshll.u32 %s3886_s17, 4  ;;  %s3038_s18 = int_to_ptr.vmem [resolvable:$true] %s3037_s18 }
  0x1f   :  { %378 = vmatpush.bf16.msrb.mxu0 %v3973_v42  ;;  %v4047_v5 = vperm.slane %v110_v4, 0  ;;  %v4051_v7 = vperm.slane %v110_v4, 1  ;;  %v4061_v13 = vperm.slane %v110_v4, 2  ;;  %v4063_v14 = vperm.slane %v110_v4, 3 }
  0x20   :  { %391 = vmatpush.bf16.msrb.mxu1 %v3975_v46 }
  0x21   :  { %404 = vmatpush.bf16.msrb.mxu2 %v3977_v47 }
  0x22   :  { %417 = vmatpush.bf16.msrb.mxu3 %v3980_v50 }
  0x23   :  { %506 = vmatpush.bf16.msra.mxu0 %v3957_v30 }
  0x24   :  { %519 = vmatpush.bf16.msra.mxu1 %v3959_v34 }
  0x25   :  { %532 = vmatpush.bf16.msra.mxu2 %v3961_v35 }
  0x26   :  { %545 = vmatpush.bf16.msra.mxu3 %v3964_v38 }
  0x27   :  { %507 = vmatpush.bf16.msra.mxu0 %v3973_v42 }
  0x28   :  { %520 = vmatpush.bf16.msra.mxu1 %v3975_v46 }
  0x29   :  { %533 = vmatpush.bf16.msra.mxu2 %v3977_v47 }
  0x2a   :  { %546 = vmatpush.bf16.msra.mxu3 %v3980_v50  ;;  %3093 = vmatmul.msk.bf16.gmra.mxu0 %vm160_vm0, %v91_v53 }
  0x2b   :  { %3097 = vmatmul.msk.bf16.gmra.mxu1 %vm160_vm0, %v91_v53 }
  0x2c   :  { %3101 = vmatmul.msk.bf16.gmra.mxu2 %vm160_vm0, %v91_v53 }
  0x2d   :  { %3105 = vmatmul.msk.bf16.gmra.mxu3 %vm160_vm0, %v91_v53 }
  0x3a   :  { %3094 = vmatmul.msk.bf16.gmra.mxu0 %vm160_vm0, %v92_v56 }
  0x3b   :  { %3098 = vmatmul.msk.bf16.gmra.mxu1 %vm160_vm0, %v92_v56 }
  0x3c   :  { %3102 = vmatmul.msk.bf16.gmra.mxu2 %vm160_vm0, %v92_v56 }
  0x3d   :  { %3106 = vmatmul.msk.bf16.gmra.mxu3 %vm160_vm0, %v92_v56 }
  0x4a   :  { %3095 = vmatmul.msk.bf16.gmra.mxu0 %vm160_vm0, %v93_v59 }
  0x4b   :  { %3099 = vmatmul.msk.bf16.gmra.mxu1 %vm160_vm0, %v93_v59 }
  0x4c   :  { %3103 = vmatmul.msk.bf16.gmra.mxu2 %vm160_vm0, %v93_v59 }
  0x4d   :  { %3107 = vmatmul.msk.bf16.gmra.mxu3 %vm160_vm0, %v93_v59 }
  0x5a   :  { %3140 = vmatmul.msk.bf16.vlgmr.msrb.gmra.mxu0 %vm160_vm0, %v327_v61 }
  0x5b   :  { %3141 = vmatmul.msk.bf16.vlgmr.msrb.gmra.mxu1 %vm160_vm0, %v327_v61  ;;  %634 = vmatpush.bf16.msrb.mxu0 %v3957_v30 }
  0x5c   :  { %3142 = vmatmul.msk.bf16.vlgmr.msrb.gmra.mxu2 %vm160_vm0, %v327_v61  ;;  %647 = vmatpush.bf16.msrb.mxu1 %v3959_v34 }
  0x5d   :  { %3143 = vmatmul.msk.bf16.vlgmr.msrb.gmra.mxu3 %vm160_vm0, %v327_v61  ;;  %660 = vmatpush.bf16.msrb.mxu2 %v3961_v35 }
  0x5e   :  { %673 = vmatpush.bf16.msrb.mxu3 %v3964_v38 }
  0x5f   :  { %635 = vmatpush.bf16.msrb.mxu0 %v3973_v42 }
  0x60   :  { %648 = vmatpush.bf16.msrb.mxu1 %v3975_v46 }
  0x61   :  { %661 = vmatpush.bf16.msrb.mxu2 %v3977_v47 }
  0x62   :  { %674 = vmatpush.bf16.msrb.mxu3 %v3980_v50 }
  0x97   :  { %v182_v62 = vpop.f32.mrf.mxu0 }
  0x98   :  { %v211_v63 = vpop.f32.mrf.mxu1  ;;  %v183_v53 = vadd.f32 %v182_v62, %v4047_v5 }
  0x99   :  { %v212_v55 = vadd.f32 %v211_v63, %v4051_v7 }
  0x9f   :  { %v240_v0 = vpop.f32.mrf.mxu2  ;;  %v4040_v2 = vpop.f32.mrf.mxu0 }
  0xa0   :  { %v4038_v1 = vpop.f32.mrf.mxu3  ;;  %v4042_v3 = vpop.f32.mrf.mxu1 }
  0xa7   :  { %v4049_v6 = vpop.f32.mrf.mxu2  ;;  %v187_v9 = vpop.f32.mrf.mxu0 }
  0xa8   :  { %v4053_v8 = vpop.f32.mrf.mxu3  ;;  %v4056_v10 = vadd.f32 %v187_v9, %v4047_v5  ;;  %v216_v11 = vpop.f32.mrf.mxu1  ;;  %v241_v9 = vadd.f32 %v240_v0, %v4061_v13  ;;  %v270_v0 = vadd.f32 %v4038_v1, %v4063_v14 }
  0xa9   :  { %v4059_v12 = vadd.f32 %v216_v11, %v4051_v7 }
  0xaf   :  { %v245_v15 = vpop.f32.mrf.mxu2  ;;  %v4068_v18 = vpop.f32.mrf.mxu0 }
  0xb0   :  { %v4066_v16 = vadd.f32 %v245_v15, %v4061_v13  ;;  %v274_v17 = vpop.f32.mrf.mxu3  ;;  %v4073_v20 = vpop.f32.mrf.mxu1 }
  0xb1   :  { %v4071_v19 = vadd.f32 %v274_v17, %v4063_v14 }
  0xb7   :  { %v4075_v21 = vpop.f32.mrf.mxu2  ;;  %v192_v23 = vpop.f32.mrf.mxu0 }
  0xb8   :  { %v4077_v22 = vpop.f32.mrf.mxu3  ;;  %v4080_v24 = vadd.f32 %v192_v23, %v4047_v5  ;;  %v221_v25 = vpop.f32.mrf.mxu1 }
  0xb9   :  { %v4083_v26 = vadd.f32 %v221_v25, %v4051_v7 }
  0xbf   :  { %v250_v27 = vpop.f32.mrf.mxu2  ;;  %v4088_v31 = vpop.f32.mrf.mxu0 }
  0xc0   :  { %v4086_v28 = vadd.f32 %v250_v27, %v4061_v13  ;;  %v279_v29 = vpop.f32.mrf.mxu3  ;;  %v4093_v33 = vpop.f32.mrf.mxu1 }
  0xc1   :  { %v4091_v32 = vadd.f32 %v279_v29, %v4063_v14 }
  0xc7   :  { %v4095_v36 = vpop.f32.mrf.mxu2  ;;  %v197_v39 = vpop.f32.mrf.mxu0 }
  0xc8   :  { %v4097_v37 = vpop.f32.mrf.mxu3  ;;  %v4100_v40 = vadd.f32 %v197_v39, %v4047_v5  ;;  %v226_v41 = vpop.f32.mrf.mxu1 }
  0xc9   :  { %v4103_v43 = vadd.f32 %v226_v41, %v4051_v7 }
  0xcf   :  { %v255_v44 = vpop.f32.mrf.mxu2  ;;  %v4108_v49 = vpop.f32.mrf.mxu0 }
  0xd0   :  { %v4106_v45 = vadd.f32 %v255_v44, %v4061_v13  ;;  %v284_v48 = vpop.f32.mrf.mxu3  ;;  %v4113_v52 = vpop.f32.mrf.mxu1 }
  0xd1   :  { %v4111_v51 = vadd.f32 %v284_v48, %v4063_v14 }
  0xd7   :  { %v4116_v54 = vpop.f32.mrf.mxu2  ;;  %v380_v57 = vpop.f32.mrf.mxu0 }
  0xd8   :  { %v4119_v56 = vpop.f32.mrf.mxu3  ;;  %v423_v58 = vadd.f32 %v380_v57, %v183_v53  ;;  %v393_v59 = vpop.f32.mrf.mxu1 }
  0xd9   :  { %4658 = vst [vmem:[#allocation17_spill] sm:$0xff] %v4119_v56  ;;  %v424_v60 = vadd.f32 %v393_v59, %v212_v55 }
  0xda   :  { %v3144_v61 = vmul.f32 -1.442695, %v423_v58 }
  0xdb   :  { %v3145_v4 = vmul.f32 -1.442695, %v424_v60 }
  0xdc   :  { %3488 = vpow2.f32 %v3144_v61 }
  0xdd   :  { %3490 = vpow2.f32 %v3145_v4 }
  0xdf   :  { %v406_v11 = vpop.f32.mrf.mxu2  ;;  %v382_v62 = vpop.f32.mrf.mxu0 }
  0xe0   :  { %v425_v15 = vadd.f32 %v406_v11, %v241_v9  ;;  %v419_v17 = vpop.f32.mrf.mxu3  ;;  %v395_v23 = vpop.f32.mrf.mxu1 }
  0xe1   :  { %v426_v57 = vadd.f32 %v419_v17, %v270_v0 }
  0xe2   :  { %v3146_v25 = vmul.f32 -1.442695, %v425_v15  ;;  %v3489_v27 = vpop.eup %3488 }
  0xe3   :  { %v3491_v63 = vpop.eup %3490  ;;  %v436_v29 = vadd.f32 1.0, %v3489_v27 }
  0xe4   :  { %3492 = vpow2.f32 %v3146_v25  ;;  %v437_v39 = vadd.f32 1.0, %v3491_v63 }
  0xe5   :  { %3494 = vrcp.f32 %v436_v29  ;;  %v450_v9 = vand.u32 2147483648, %v436_v29  ;;  %v448_v62 = vand.u32 2147483647, %v436_v29  ;;  %vm444_vm3 = vweird.f32 %v436_v29 }
  0xe6   :  { %3496 = vrcp.f32 %v437_v39  ;;  %v465_v11 = vand.u32 2147483648, %v437_v39  ;;  %v463_v25 = vand.u32 2147483647, %v437_v39  ;;  %vm459_vm4 = vweird.f32 %v437_v39 }
  0xe7   :  { %v408_v41 = vpop.f32.mrf.mxu2  ;;  %v451_v63 = vor.u32 1.1754944e-38, %v450_v9  ;;  %vm449_vm7 = vcmp.eq.f32.partialorder %v448_v62, 8.507059e+37 }
  0xe8   :  { %v421_v44 = vpop.f32.mrf.mxu3  ;;  %vm464_vm8 = vcmp.eq.f32.partialorder %v463_v25, 8.507059e+37 }
  0xe9   :  { %v466_v44 = vor.u32 1.1754944e-38, %v465_v11 }
  0xea   :  { %v3493_v48 = vpop.eup %3492 }
  0xeb   :  { %v438_v53 = vadd.f32 1.0, %v3493_v48  ;;  %v3495_v55 = vpop.eup %3494  ;;  %v322_v48 = vld [vmem:[%s4652_s5] sm:$0xff] }
  0xec   :  { %v3497_v58 = vpop.eup %3496  ;;  %v440_v59 = vmul.f32 %v3495_v55, %v436_v29  ;;  %vm445_vm1 = vweird.f32 %v3495_v55 }
  0xed   :  { %3498 = vrcp.f32 %v438_v53  ;;  %v455_v60 = vmul.f32 %v3497_v58, %v437_v39  ;;  %vm460_vm2 = vweird.f32 %v3497_v58  ;;  %vm446_vm5 = vmor %vm444_vm3, %vm445_vm1  ;;  %v480_v11 = vand.u32 2147483648, %v438_v53 }
  0xee   :  { %v441_v61 = vsub.f32 1.0, %v440_v59  ;;  %3500 = vtanh.f32 %v426_v57  ;;  %vm461_vm6 = vmor %vm459_vm4, %vm460_vm2  ;;  %vm474_vm10 = vweird.f32 %v438_v53 }
  0xef   :  { %v456_v4 = vsub.f32 1.0, %v455_v60  ;;  %v481_v62 = vor.u32 1.1754944e-38, %v480_v11 }
  0xf0   :  { %v442_v15 = vmul.f32 %v3495_v55, %v441_v61 }
  0xf1   :  { %v457_v23 = vmul.f32 %v3497_v58, %v456_v4 }
  0xf2   :  { %v443_v1 = vadd.f32 %v3495_v55, %v442_v15 }
  0xf3   :  { %v3499_v27 = vpop.eup %3498  ;;  %v458_v41 = vadd.f32 %v3497_v58, %v457_v23  ;;  %v478_v23 = vand.u32 2147483647, %v438_v53 }
  0xf4   :  { %v470_v17 = vmul.f32 %v3499_v27, %v438_v53  ;;  %v447_v0 = vsel %vm446_vm5, %v3495_v55, %v443_v1  ;;  %v3501_v57 = vpop.eup %3500  ;;  %vm475_vm9 = vweird.f32 %v3499_v27  ;;  %v185_v53 = vadd.f32 %v4040_v2, %v4047_v5 }
  0xf5   :  { %v452_v60 = vsel %vm449_vm7, %v451_v63, %v447_v0  ;;  %v462_v61 = vsel %vm461_vm6, %v3497_v58, %v458_v41  ;;  %vm476_vm11 = vmor %vm474_vm10, %vm475_vm9  ;;  %vm479_vm12 = vcmp.eq.f32.partialorder %v478_v23, 8.507059e+37 }
  0xf6   :  { %v471_v59 = vsub.f32 1.0, %v470_v17  ;;  %v467_v4 = vsel %vm464_vm8, %v466_v44, %v462_v61  ;;  %v486_v29 = vmul.f32 %v3501_v57, %v452_v60 }
  0xf7   :  { %v485_v15 = vmul.f32 %v467_v4, %v322_v48 }
  0xf8   :  { %v472_v39 = vmul.f32 %v3499_v27, %v471_v59  ;;  %v243_v59 = vadd.f32 %v4049_v6, %v4061_v13  ;;  %v272_v6 = vadd.f32 %v4053_v8, %v4063_v14 }
  0xf9   :  { %v4127_v56 = vadd.f32 %v486_v29, %v485_v15 }
  0xfa   :  { %v473_v9 = vadd.f32 %v3499_v27, %v472_v39 }
  0xfb   :  { %3502 = vtanh.f32 %v4127_v56 }
  0xfc   :  { %v477_v55 = vsel %vm476_vm11, %v3499_v27, %v473_v9  ;;  %v214_v27 = vadd.f32 %v4042_v3, %v4051_v7 }
  0xfd   :  { %v482_v58 = vsel %vm479_vm12, %v481_v62, %v477_v55 }
 0x101   :  { %v3503_v1 = vpop.eup %3502 }
 0x102   :  { %v489_v25 = vmul.f32 %v3503_v1, %v482_v58 }
 0x104   :  { %v490_v17 = vpack.c.bf16 %v489_v25, %v489_v25 }
 0x106   :  { %492 = vst.msk [vmem:[#allocation2] sm:$0xf] %vm491_vm13, %v490_v17  ;;  %3147 = vmatmul.msk.bf16.vlgmr.msra.gmra.mxu0 %vm160_vm0, %v490_v17  ;;  %3148 = vmatmul.msk.bf16.vlgmr.msra.gmra.mxu1 %vm160_vm0, %v490_v17 }
 0x107   :  { %3149 = vmatmul.msk.bf16.vlgmr.msra.gmra.mxu2 %vm160_vm0, %v490_v17  ;;  %3150 = vmatmul.msk.bf16.vlgmr.msra.gmra.mxu3 %vm160_vm0, %v490_v17 }
 0x108   :  { %762 = vmatpush.bf16.msra.mxu0 %v3957_v30  ;;  %775 = vmatpush.bf16.msra.mxu1 %v3959_v34 }
 0x109   :  { %788 = vmatpush.bf16.msra.mxu2 %v3961_v35  ;;  %801 = vmatpush.bf16.msra.mxu3 %v3964_v38 }
 0x10c   :  { %763 = vmatpush.bf16.msra.mxu0 %v3973_v42  ;;  %776 = vmatpush.bf16.msra.mxu1 %v3975_v46 }
 0x10d   :  { %789 = vmatpush.bf16.msra.mxu2 %v3977_v47  ;;  %802 = vmatpush.bf16.msra.mxu3 %v3980_v50 }
 0x183   :  { %v509_v63 = vpop.f32.mrf.mxu0  ;;  %v522_v41 = vpop.f32.mrf.mxu1 }
 0x184   :  { %v552_v44 = vadd.f32 %v509_v63, %v185_v53  ;;  %v553_v48 = vadd.f32 %v522_v41, %v214_v27 }
 0x186   :  { %v3151_v0 = vmul.f32 -1.442695, %v552_v44  ;;  %v3152_v57 = vmul.f32 -1.442695, %v553_v48 }
 0x188   :  { %3504 = vpow2.f32 %v3151_v0 }
 0x189   :  { %3506 = vpow2.f32 %v3152_v57 }
 0x18a   :  { %v535_v60 = vpop.f32.mrf.mxu2  ;;  %v548_v61 = vpop.f32.mrf.mxu3 }
 0x18b   :  { %v554_v4 = vadd.f32 %v535_v60, %v243_v59  ;;  %v511_v29 = vpop.f32.mrf.mxu0  ;;  %v524_v39 = vpop.f32.mrf.mxu1  ;;  %v555_v25 = vadd.f32 %v548_v61, %v272_v6 }
 0x18d   :  { %v3153_v2 = vmul.f32 -1.442695, %v554_v4 }
 0x18e   :  { %v3505_v15 = vpop.eup %3504 }
 0x18f   :  { %v3507_v9 = vpop.eup %3506  ;;  %v565_v3 = vadd.f32 1.0, %v3505_v15  ;;  %3508 = vpow2.f32 %v3153_v2 }
 0x190   :  { %v566_v11 = vadd.f32 1.0, %v3507_v9 }
 0x191   :  { %3510 = vrcp.f32 %v565_v3  ;;  %v579_v44 = vand.u32 2147483648, %v565_v3  ;;  %v577_v57 = vand.u32 2147483647, %v565_v3  ;;  %vm573_vm1 = vweird.f32 %v565_v3 }
 0x192   :  { %3512 = vrcp.f32 %v566_v11  ;;  %v537_v23 = vpop.f32.mrf.mxu2  ;;  %v550_v55 = vpop.f32.mrf.mxu3  ;;  %v594_v48 = vand.u32 2147483648, %v566_v11  ;;  %v592_v60 = vand.u32 2147483647, %v566_v11  ;;  %vm588_vm2 = vweird.f32 %v566_v11 }
 0x193   :  { %v580_v29 = vor.u32 1.1754944e-38, %v579_v44  ;;  %vm578_vm5 = vcmp.eq.f32.partialorder %v577_v57, 8.507059e+37 }
 0x194   :  { %v595_v2 = vor.u32 1.1754944e-38, %v594_v48  ;;  %vm593_vm6 = vcmp.eq.f32.partialorder %v592_v60, 8.507059e+37 }
 0x195   :  { %v3509_v62 = vpop.eup %3508 }
 0x196   :  { %v567_v1 = vadd.f32 1.0, %v3509_v62 }
 0x197   :  { %v3511_v58 = vpop.eup %3510 }
 0x198   :  { %v3513_v17 = vpop.eup %3512  ;;  %v569_v53 = vmul.f32 %v3511_v58, %v565_v3  ;;  %3514 = vrcp.f32 %v567_v1  ;;  %vm574_vm14 = vweird.f32 %v3511_v58  ;;  %vm603_vm8 = vweird.f32 %v567_v1 }
 0x199   :  { %v584_v27 = vmul.f32 %v3513_v17, %v566_v11  ;;  %3516 = vtanh.f32 %v555_v25  ;;  %vm589_vm15 = vweird.f32 %v3513_v17  ;;  %vm575_vm3 = vmor %vm573_vm1, %vm574_vm14 }
 0x19a   :  { %v570_v63 = vsub.f32 1.0, %v569_v53  ;;  %vm590_vm4 = vmor %vm588_vm2, %vm589_vm15 }
 0x19b   :  { %v585_v41 = vsub.f32 1.0, %v584_v27 }
 0x19c   :  { %v571_v0 = vmul.f32 %v3511_v58, %v570_v63  ;;  %v609_v63 = vand.u32 2147483648, %v567_v1 }
 0x19d   :  { %v586_v59 = vmul.f32 %v3513_v17, %v585_v41 }
 0x19e   :  { %v3515_v4 = vpop.eup %3514  ;;  %v572_v8 = vadd.f32 %v3511_v58, %v571_v0  ;;  %v610_v44 = vor.u32 1.1754944e-38, %v609_v63 }
 0x19f   :  { %v599_v61 = vmul.f32 %v3515_v4, %v567_v1  ;;  %v587_v39 = vadd.f32 %v3513_v17, %v586_v59  ;;  %v3517_v9 = vpop.eup %3516  ;;  %vm604_vm7 = vweird.f32 %v3515_v4 }
 0x1a0   :  { %v576_v15 = vsel %vm575_vm3, %v3511_v58, %v572_v8  ;;  %v607_v58 = vand.u32 2147483647, %v567_v1  ;;  %vm605_vm9 = vmor %vm603_vm8, %vm604_vm7 }
 0x1a1   :  { %v600_v23 = vsub.f32 1.0, %v599_v61  ;;  %v581_v55 = vsel %vm578_vm5, %v580_v29, %v576_v15  ;;  %v591_v62 = vsel %vm590_vm4, %v3513_v17, %v587_v39 }
 0x1a2   :  { %v596_v6 = vsel %vm593_vm6, %v595_v2, %v591_v62  ;;  %v615_v25 = vmul.f32 %v3517_v9, %v581_v55  ;;  %vm608_vm10 = vcmp.eq.f32.partialorder %v607_v58, 8.507059e+37 }
 0x1a3   :  { %v601_v53 = vmul.f32 %v3515_v4, %v600_v23  ;;  %v614_v27 = vmul.f32 %v596_v6, %v4127_v56 }
 0x1a5   :  { %v4152_v3 = vadd.f32 %v615_v25, %v614_v27  ;;  %v602_v11 = vadd.f32 %v3515_v4, %v601_v53 }
 0x1a7   :  { %3518 = vtanh.f32 %v4152_v3  ;;  %v606_v41 = vsel %vm605_vm9, %v3515_v4, %v602_v11 }
 0x1a8   :  { %v611_v48 = vsel %vm608_vm10, %v610_v44, %v606_v41 }
 0x1ad   :  { %v3519_v17 = vpop.eup %3518 }
 0x1ae   :  { %v618_v0 = vmul.f32 %v3519_v17, %v611_v48 }
 0x1b0   :  { %v619_v57 = vpack.c.bf16 %v618_v0, %v618_v0 }
 0x1b2   :  { %620 = vst.msk [vmem:[#allocation2 + $0x4] sm:$0xf] %vm491_vm13, %v619_v57  ;;  %3154 = vmatmul.msk.bf16.vlgmr.msrb.gmra.mxu0 %vm160_vm0, %v619_v57  ;;  %3155 = vmatmul.msk.bf16.vlgmr.msrb.gmra.mxu1 %vm160_vm0, %v619_v57 }
 0x1b3   :  { %3156 = vmatmul.msk.bf16.vlgmr.msrb.gmra.mxu2 %vm160_vm0, %v619_v57  ;;  %3157 = vmatmul.msk.bf16.vlgmr.msrb.gmra.mxu3 %vm160_vm0, %v619_v57 }
 0x1b4   :  { %890 = vmatpush.bf16.msrb.mxu0 %v3957_v30  ;;  %903 = vmatpush.bf16.msrb.mxu1 %v3959_v34 }
 0x1b5   :  { %916 = vmatpush.bf16.msrb.mxu2 %v3961_v35  ;;  %929 = vmatpush.bf16.msrb.mxu3 %v3964_v38 }
 0x1b8   :  { %891 = vmatpush.bf16.msrb.mxu0 %v3973_v42  ;;  %904 = vmatpush.bf16.msrb.mxu1 %v3975_v46 }
 0x1b9   :  { %917 = vmatpush.bf16.msrb.mxu2 %v3977_v47  ;;  %930 = vmatpush.bf16.msrb.mxu3 %v3980_v50 }
 0x22f   :  { %v637_v56 = vpop.f32.mrf.mxu0  ;;  %v650_v1 = vpop.f32.mrf.mxu1 }
 0x230   :  { %v680_v59 = vadd.f32 %v637_v56, %v4056_v10  ;;  %v681_v60 = vadd.f32 %v650_v1, %v4059_v12 }
 0x232   :  { %v3158_v4 = vmul.f32 -1.442695, %v680_v59  ;;  %v3159_v8 = vmul.f32 -1.442695, %v681_v60 }
 0x234   :  { %3520 = vpow2.f32 %v3158_v4 }
 0x235   :  { %3522 = vpow2.f32 %v3159_v8 }
 0x236   :  { %v663_v61 = vpop.f32.mrf.mxu2  ;;  %v676_v29 = vpop.f32.mrf.mxu3 }
 0x237   :  { %v682_v39 = vadd.f32 %v663_v61, %v4066_v16  ;;  %v639_v2 = vpop.f32.mrf.mxu0  ;;  %v652_v15 = vpop.f32.mrf.mxu1  ;;  %v683_v11 = vadd.f32 %v676_v29, %v4071_v19 }
 0x239   :  { %v3160_v9 = vmul.f32 -1.442695, %v682_v39 }
 0x23a   :  { %v3521_v23 = vpop.eup %3520 }
 0x23b   :  { %v3523_v55 = vpop.eup %3522  ;;  %v693_v62 = vadd.f32 1.0, %v3521_v23  ;;  %3524 = vpow2.f32 %v3160_v9 }
 0x23c   :  { %v694_v6 = vadd.f32 1.0, %v3523_v55 }
 0x23d   :  { %3526 = vrcp.f32 %v693_v62  ;;  %v707_v17 = vand.u32 2147483648, %v693_v62  ;;  %v705_v57 = vand.u32 2147483647, %v693_v62  ;;  %vm701_vm14 = vweird.f32 %v693_v62 }
 0x23e   :  { %3528 = vrcp.f32 %v694_v6  ;;  %v665_v10 = vpop.f32.mrf.mxu2  ;;  %v678_v12 = vpop.f32.mrf.mxu3  ;;  %v722_v48 = vand.u32 2147483648, %v694_v6  ;;  %v720_v1 = vand.u32 2147483647, %v694_v6  ;;  %vm716_vm15 = vweird.f32 %v694_v6 }
 0x23f   :  { %v708_v4 = vor.u32 1.1754944e-38, %v707_v17  ;;  %vm706_vm3 = vcmp.eq.f32.partialorder %v705_v57, 8.507059e+37 }
 0x240   :  { %v723_v61 = vor.u32 1.1754944e-38, %v722_v48  ;;  %vm721_vm4 = vcmp.eq.f32.partialorder %v720_v1, 8.507059e+37 }
 0x241   :  { %v3525_v25 = vpop.eup %3524 }
 0x242   :  { %v695_v53 = vadd.f32 1.0, %v3525_v25 }
 0x243   :  { %v3527_v27 = vpop.eup %3526 }
 0x244   :  { %v3529_v63 = vpop.eup %3528  ;;  %v697_v58 = vmul.f32 %v3527_v27, %v693_v62  ;;  %3530 = vrcp.f32 %v695_v53  ;;  %vm702_vm11 = vweird.f32 %v3527_v27  ;;  %v737_v25 = vand.u32 2147483648, %v695_v53 }
 0x245   :  { %v712_v16 = vmul.f32 %v3529_v63, %v694_v6  ;;  %3532 = vtanh.f32 %v683_v11  ;;  %vm717_vm12 = vweird.f32 %v3529_v63  ;;  %vm703_vm1 = vmor %vm701_vm14, %vm702_vm11  ;;  %vm731_vm6 = vweird.f32 %v695_v53 }
 0x246   :  { %v698_v41 = vsub.f32 1.0, %v697_v58  ;;  %vm718_vm2 = vmor %vm716_vm15, %vm717_vm12  ;;  %v738_v58 = vor.u32 1.1754944e-38, %v737_v25 }
 0x247   :  { %v713_v44 = vsub.f32 1.0, %v712_v16 }
 0x248   :  { %v699_v0 = vmul.f32 %v3527_v27, %v698_v41 }
 0x249   :  { %v714_v56 = vmul.f32 %v3529_v63, %v713_v44 }
 0x24a   :  { %v3531_v59 = vpop.eup %3530  ;;  %v700_v60 = vadd.f32 %v3527_v27, %v699_v0 }
 0x24b   :  { %v727_v19 = vmul.f32 %v3531_v59, %v695_v53  ;;  %v715_v8 = vadd.f32 %v3529_v63, %v714_v56  ;;  %v3533_v39 = vpop.eup %3532  ;;  %vm732_vm5 = vweird.f32 %v3531_v59 }
 0x24c   :  { %v704_v29 = vsel %vm703_vm1, %v3527_v27, %v700_v60  ;;  %v735_v27 = vand.u32 2147483647, %v695_v53  ;;  %vm733_vm7 = vmor %vm731_vm6, %vm732_vm5  ;;  %v219_v53 = vadd.f32 %v4073_v20, %v4051_v7 }
 0x24d   :  { %v728_v2 = vsub.f32 1.0, %v727_v19  ;;  %v709_v15 = vsel %vm706_vm3, %v708_v4, %v704_v29  ;;  %v719_v9 = vsel %vm718_vm2, %v3529_v63, %v715_v8 }
 0x24e   :  { %v724_v23 = vsel %vm721_vm4, %v723_v61, %v719_v9  ;;  %v743_v55 = vmul.f32 %v3533_v39, %v709_v15  ;;  %vm736_vm8 = vcmp.eq.f32.partialorder %v735_v27, 8.507059e+37 }
 0x24f   :  { %v729_v10 = vmul.f32 %v3531_v59, %v728_v2  ;;  %v742_v12 = vmul.f32 %v724_v23, %v4152_v3  ;;  %v190_v3 = vadd.f32 %v4068_v18, %v4047_v5 }
 0x251   :  { %v4173_v62 = vadd.f32 %v743_v55, %v742_v12  ;;  %v730_v6 = vadd.f32 %v3531_v59, %v729_v10 }
 0x253   :  { %3534 = vtanh.f32 %v4173_v62  ;;  %v734_v11 = vsel %vm733_vm7, %v3531_v59, %v730_v6  ;;  %v248_v59 = vadd.f32 %v4075_v21, %v4061_v13  ;;  %v277_v21 = vadd.f32 %v4077_v22, %v4063_v14 }
 0x254   :  { %v739_v16 = vsel %vm736_vm8, %v738_v58, %v734_v11 }
 0x259   :  { %v3535_v63 = vpop.eup %3534 }
 0x25a   :  { %v746_v41 = vmul.f32 %v3535_v63, %v739_v16 }
 0x25c   :  { %v747_v44 = vpack.c.bf16 %v746_v41, %v746_v41 }
 0x25e   :  { %748 = vst.msk [vmem:[#allocation2 + $0x8] sm:$0xf] %vm491_vm13, %v747_v44  ;;  %3161 = vmatmul.msk.bf16.vlgmr.msra.gmra.mxu0 %vm160_vm0, %v747_v44  ;;  %3162 = vmatmul.msk.bf16.vlgmr.msra.gmra.mxu1 %vm160_vm0, %v747_v44 }
 0x25f   :  { %3163 = vmatmul.msk.bf16.vlgmr.msra.gmra.mxu2 %vm160_vm0, %v747_v44  ;;  %3164 = vmatmul.msk.bf16.vlgmr.msra.gmra.mxu3 %vm160_vm0, %v747_v44 }
 0x260   :  { %1018 = vmatpush.bf16.msra.mxu0 %v3957_v30  ;;  %1031 = vmatpush.bf16.msra.mxu1 %v3959_v34 }
 0x261   :  { %1044 = vmatpush.bf16.msra.mxu2 %v3961_v35  ;;  %1057 = vmatpush.bf16.msra.mxu3 %v3964_v38 }
 0x264   :  { %1019 = vmatpush.bf16.msra.mxu0 %v3973_v42  ;;  %1032 = vmatpush.bf16.msra.mxu1 %v3975_v46 }
 0x265   :  { %1045 = vmatpush.bf16.msra.mxu2 %v3977_v47  ;;  %1058 = vmatpush.bf16.msra.mxu3 %v3980_v50 }
 0x2db   :  { %v765_v17 = vpop.f32.mrf.mxu0  ;;  %v778_v48 = vpop.f32.mrf.mxu1 }
 0x2dc   :  { %v808_v0 = vadd.f32 %v765_v17, %v190_v3  ;;  %v809_v57 = vadd.f32 %v778_v48, %v219_v53 }
 0x2de   :  { %v3165_v56 = vmul.f32 -1.442695, %v808_v0  ;;  %v3166_v1 = vmul.f32 -1.442695, %v809_v57 }
 0x2e0   :  { %3536 = vpow2.f32 %v3165_v56 }
 0x2e1   :  { %3538 = vpow2.f32 %v3166_v1 }
 0x2e2   :  { %v791_v60 = vpop.f32.mrf.mxu2  ;;  %v804_v19 = vpop.f32.mrf.mxu3 }
 0x2e3   :  { %v810_v4 = vadd.f32 %v791_v60, %v248_v59  ;;  %v767_v8 = vpop.f32.mrf.mxu0  ;;  %v780_v61 = vpop.f32.mrf.mxu1  ;;  %v811_v12 = vadd.f32 %v804_v19, %v277_v21 }
 0x2e5   :  { %v3167_v18 = vmul.f32 -1.442695, %v810_v4 }
 0x2e6   :  { %v3537_v29 = vpop.eup %3536 }
 0x2e7   :  { %v3539_v39 = vpop.eup %3538  ;;  %v821_v20 = vadd.f32 1.0, %v3537_v29  ;;  %3540 = vpow2.f32 %v3167_v18 }
 0x2e8   :  { %v822_v2 = vadd.f32 1.0, %v3539_v39 }
 0x2e9   :  { %3542 = vrcp.f32 %v821_v20  ;;  %v835_v63 = vand.u32 2147483648, %v821_v20  ;;  %v833_v44 = vand.u32 2147483647, %v821_v20  ;;  %vm829_vm11 = vweird.f32 %v821_v20 }
 0x2ea   :  { %3544 = vrcp.f32 %v822_v2  ;;  %v793_v15 = vpop.f32.mrf.mxu2  ;;  %v806_v9 = vpop.f32.mrf.mxu3  ;;  %v850_v16 = vand.u32 2147483648, %v822_v2  ;;  %v848_v53 = vand.u32 2147483647, %v822_v2  ;;  %vm844_vm12 = vweird.f32 %v822_v2 }
 0x2eb   :  { %v836_v0 = vor.u32 1.1754944e-38, %v835_v63  ;;  %vm834_vm1 = vcmp.eq.f32.partialorder %v833_v44, 8.507059e+37 }
 0x2ec   :  { %v851_v56 = vor.u32 1.1754944e-38, %v850_v16  ;;  %vm849_vm2 = vcmp.eq.f32.partialorder %v848_v53, 8.507059e+37 }
 0x2ed   :  { %v3541_v23 = vpop.eup %3540 }
 0x2ee   :  { %v823_v55 = vadd.f32 1.0, %v3541_v23 }
 0x2ef   :  { %v3543_v10 = vpop.eup %3542 }
 0x2f0   :  { %v3545_v6 = vpop.eup %3544  ;;  %v825_v25 = vmul.f32 %v3543_v10, %v821_v20  ;;  %3546 = vrcp.f32 %v823_v55  ;;  %vm830_vm9 = vweird.f32 %v3543_v10  ;;  %vm859_vm4 = vweird.f32 %v823_v55 }
 0x2f1   :  { %v840_v27 = vmul.f32 %v3545_v6, %v822_v2  ;;  %3548 = vtanh.f32 %v811_v12  ;;  %vm845_vm10 = vweird.f32 %v3545_v6  ;;  %vm831_vm14 = vmor %vm829_vm11, %vm830_vm9  ;;  %v865_v2 = vand.u32 2147483648, %v823_v55 }
 0x2f2   :  { %v826_v11 = vsub.f32 1.0, %v825_v25  ;;  %vm846_vm15 = vmor %vm844_vm12, %vm845_vm10  ;;  %v863_v15 = vand.u32 2147483647, %v823_v55 }
 0x2f3   :  { %v841_v58 = vsub.f32 1.0, %v840_v27  ;;  %v866_v23 = vor.u32 1.1754944e-38, %v865_v2 }
 0x2f4   :  { %v827_v41 = vmul.f32 %v3543_v10, %v826_v11  ;;  %vm864_vm6 = vcmp.eq.f32.partialorder %v863_v15, 8.507059e+37 }
 0x2f5   :  { %v842_v3 = vmul.f32 %v3545_v6, %v841_v58 }
 0x2f6   :  { %v3547_v17 = vpop.eup %3546  ;;  %v828_v22 = vadd.f32 %v3543_v10, %v827_v41 }
 0x2f7   :  { %v855_v48 = vmul.f32 %v3547_v17, %v823_v55  ;;  %v843_v57 = vadd.f32 %v3545_v6, %v842_v3  ;;  %v3549_v59 = vpop.eup %3548  ;;  %vm860_vm3 = vweird.f32 %v3547_v17 }
 0x2f8   :  { %v832_v1 = vsel %vm831_vm14, %v3543_v10, %v828_v22  ;;  %vm861_vm5 = vmor %vm859_vm4, %vm860_vm3 }
 0x2f9   :  { %v856_v60 = vsub.f32 1.0, %v855_v48  ;;  %v837_v19 = vsel %vm834_vm1, %v836_v0, %v832_v1  ;;  %v847_v4 = vsel %vm846_vm15, %v3545_v6, %v843_v57 }
 0x2fa   :  { %v852_v8 = vsel %vm849_vm2, %v851_v56, %v847_v4  ;;  %v871_v61 = vmul.f32 %v3549_v59, %v837_v19 }
 0x2fb   :  { %v857_v18 = vmul.f32 %v3547_v17, %v856_v60  ;;  %v870_v29 = vmul.f32 %v852_v8, %v4173_v62 }
 0x2fd   :  { %v4198_v39 = vadd.f32 %v871_v61, %v870_v29  ;;  %v858_v20 = vadd.f32 %v3547_v17, %v857_v18 }
 0x2ff   :  { %3550 = vtanh.f32 %v4198_v39  ;;  %v862_v9 = vsel %vm861_vm5, %v3547_v17, %v858_v20 }
 0x300   :  { %v867_v10 = vsel %vm864_vm6, %v866_v23, %v862_v9 }
 0x305   :  { %v3551_v21 = vpop.eup %3550 }
 0x306   :  { %v874_v12 = vmul.f32 %v3551_v21, %v867_v10 }
 0x308   :  { %v875_v6 = vpack.c.bf16 %v874_v12, %v874_v12 }
 0x30a   :  { %876 = vst.msk [vmem:[#allocation2 + $0xc] sm:$0xf] %vm491_vm13, %v875_v6  ;;  %3168 = vmatmul.msk.bf16.vlgmr.msrb.gmra.mxu0 %vm160_vm0, %v875_v6  ;;  %3169 = vmatmul.msk.bf16.vlgmr.msrb.gmra.mxu1 %vm160_vm0, %v875_v6 }
 0x30b   :  { %3170 = vmatmul.msk.bf16.vlgmr.msrb.gmra.mxu2 %vm160_vm0, %v875_v6  ;;  %3171 = vmatmul.msk.bf16.vlgmr.msrb.gmra.mxu3 %vm160_vm0, %v875_v6 }
 0x30c   :  { %1146 = vmatpush.bf16.msrb.mxu0 %v3957_v30  ;;  %1159 = vmatpush.bf16.msrb.mxu1 %v3959_v34 }
 0x30d   :  { %1172 = vmatpush.bf16.msrb.mxu2 %v3961_v35  ;;  %1185 = vmatpush.bf16.msrb.mxu3 %v3964_v38 }
 0x310   :  { %1147 = vmatpush.bf16.msrb.mxu0 %v3973_v42  ;;  %1160 = vmatpush.bf16.msrb.mxu1 %v3975_v46 }
 0x311   :  { %1173 = vmatpush.bf16.msrb.mxu2 %v3977_v47  ;;  %1186 = vmatpush.bf16.msrb.mxu3 %v3980_v50 }
 0x387   :  { %v893_v62 = vpop.f32.mrf.mxu0  ;;  %v906_v55 = vpop.f32.mrf.mxu1 }
 0x388   :  { %v936_v25 = vadd.f32 %v893_v62, %v4080_v24  ;;  %v937_v27 = vadd.f32 %v906_v55, %v4083_v26 }
 0x38a   :  { %v3172_v11 = vmul.f32 -1.442695, %v936_v25  ;;  %v3173_v58 = vmul.f32 -1.442695, %v937_v27 }
 0x38c   :  { %3552 = vpow2.f32 %v3172_v11 }
 0x38d   :  { %3554 = vpow2.f32 %v3173_v58 }
 0x38e   :  { %v919_v63 = vpop.f32.mrf.mxu2  ;;  %v932_v16 = vpop.f32.mrf.mxu3 }
 0x38f   :  { %v938_v41 = vadd.f32 %v919_v63, %v4086_v28  ;;  %v895_v44 = vpop.f32.mrf.mxu0  ;;  %v908_v3 = vpop.f32.mrf.mxu1  ;;  %v939_v59 = vadd.f32 %v932_v16, %v4091_v32 }
 0x391   :  { %v3174_v53 = vmul.f32 -1.442695, %v938_v41 }
 0x392   :  { %v3553_v17 = vpop.eup %3552 }
 0x393   :  { %v3555_v22 = vpop.eup %3554  ;;  %v949_v48 = vadd.f32 1.0, %v3553_v17  ;;  %3556 = vpow2.f32 %v3174_v53 }
 0x394   :  { %v950_v0 = vadd.f32 1.0, %v3555_v22 }
 0x395   :  { %3558 = vrcp.f32 %v949_v48  ;;  %v963_v61 = vand.u32 2147483648, %v949_v48  ;;  %v961_v20 = vand.u32 2147483647, %v949_v48  ;;  %vm957_vm9 = vweird.f32 %v949_v48 }
 0x396   :  { %3560 = vrcp.f32 %v950_v0  ;;  %v921_v24 = vpop.f32.mrf.mxu2  ;;  %v934_v26 = vpop.f32.mrf.mxu3  ;;  %v978_v18 = vand.u32 2147483648, %v950_v0  ;;  %v976_v15 = vand.u32 2147483647, %v950_v0  ;;  %vm972_vm10 = vweird.f32 %v950_v0 }
 0x397   :  { %v964_v21 = vor.u32 1.1754944e-38, %v963_v61  ;;  %vm962_vm14 = vcmp.eq.f32.partialorder %v961_v20, 8.507059e+37 }
 0x398   :  { %v979_v12 = vor.u32 1.1754944e-38, %v978_v18  ;;  %vm977_vm15 = vcmp.eq.f32.partialorder %v976_v15, 8.507059e+37 }
 0x399   :  { %v3557_v57 = vpop.eup %3556 }
 0x39a   :  { %v951_v56 = vadd.f32 1.0, %v3557_v57 }
 0x39b   :  { %v3559_v1 = vpop.eup %3558 }
 0x39c   :  { %v3561_v60 = vpop.eup %3560  ;;  %v953_v19 = vmul.f32 %v3559_v1, %v949_v48  ;;  %3562 = vrcp.f32 %v951_v56  ;;  %vm958_vm7 = vweird.f32 %v3559_v1  ;;  %v993_v3 = vand.u32 2147483648, %v951_v56 }
 0x39d   :  { %v968_v28 = vmul.f32 %v3561_v60, %v950_v0  ;;  %3564 = vtanh.f32 %v939_v59  ;;  %vm973_vm8 = vweird.f32 %v3561_v60  ;;  %vm959_vm11 = vmor %vm957_vm9, %vm958_vm7  ;;  %vm987_vm2 = vweird.f32 %v951_v56 }
 0x39e   :  { %v954_v4 = vsub.f32 1.0, %v953_v19  ;;  %vm974_vm12 = vmor %vm972_vm10, %vm973_vm8  ;;  %v991_v53 = vand.u32 2147483647, %v951_v56  ;;  %v994_v22 = vor.u32 1.1754944e-38, %v993_v3 }
 0x39f   :  { %v969_v8 = vsub.f32 1.0, %v968_v28 }
 0x3a0   :  { %v955_v29 = vmul.f32 %v3559_v1, %v954_v4  ;;  %vm992_vm4 = vcmp.eq.f32.partialorder %v991_v53, 8.507059e+37 }
 0x3a1   :  { %v970_v2 = vmul.f32 %v3561_v60, %v969_v8 }
 0x3a2   :  { %v3563_v9 = vpop.eup %3562  ;;  %v956_v23 = vadd.f32 %v3559_v1, %v955_v29 }
 0x3a3   :  { %v983_v32 = vmul.f32 %v3563_v9, %v951_v56  ;;  %v971_v10 = vadd.f32 %v3561_v60, %v970_v2  ;;  %v3565_v62 = vpop.eup %3564  ;;  %vm988_vm1 = vweird.f32 %v3563_v9 }
 0x3a4   :  { %v960_v6 = vsel %vm959_vm11, %v3559_v1, %v956_v23  ;;  %vm989_vm3 = vmor %vm987_vm2, %vm988_vm1 }
 0x3a5   :  { %v984_v55 = vsub.f32 1.0, %v983_v32  ;;  %v965_v25 = vsel %vm962_vm14, %v964_v21, %v960_v6  ;;  %v975_v27 = vsel %vm974_vm12, %v3561_v60, %v971_v10 }
 0x3a6   :  { %v980_v11 = vsel %vm977_vm15, %v979_v12, %v975_v27  ;;  %v999_v58 = vmul.f32 %v3565_v62, %v965_v25 }
 0x3a7   :  { %v985_v63 = vmul.f32 %v3563_v9, %v984_v55  ;;  %v998_v16 = vmul.f32 %v980_v11, %v4198_v39  ;;  %v195_v39 = vadd.f32 %v4088_v31, %v4047_v5 }
 0x3a9   :  { %v4219_v41 = vadd.f32 %v999_v58, %v998_v16  ;;  %v986_v44 = vadd.f32 %v3563_v9, %v985_v63 }
 0x3ab   :  { %3566 = vtanh.f32 %v4219_v41  ;;  %v990_v17 = vsel %vm989_vm3, %v3563_v9, %v986_v44 }
 0x3ac   :  { %v995_v0 = vsel %vm992_vm4, %v994_v22, %v990_v17 }
 0x3b1   :  { %v3567_v48 = vpop.eup %3566 }
 0x3b2   :  { %v1002_v24 = vmul.f32 %v3567_v48, %v995_v0 }
 0x3b4   :  { %v1003_v26 = vpack.c.bf16 %v1002_v24, %v1002_v24 }
 0x3b6   :  { %1004 = vst.msk [vmem:[#allocation2 + $0x10] sm:$0xf] %vm491_vm13, %v1003_v26  ;;  %3175 = vmatmul.msk.bf16.vlgmr.msra.gmra.mxu0 %vm160_vm0, %v1003_v26  ;;  %3176 = vmatmul.msk.bf16.vlgmr.msra.gmra.mxu1 %vm160_vm0, %v1003_v26 }
 0x3b7   :  { %3177 = vmatmul.msk.bf16.vlgmr.msra.gmra.mxu2 %vm160_vm0, %v1003_v26  ;;  %3178 = vmatmul.msk.bf16.vlgmr.msra.gmra.mxu3 %vm160_vm0, %v1003_v26 }
 0x3b8   :  { %1274 = vmatpush.bf16.msra.mxu0 %v3957_v30  ;;  %1287 = vmatpush.bf16.msra.mxu1 %v3959_v34  ;;  %v224_v30 = vadd.f32 %v4093_v33, %v4051_v7 }
 0x3b9   :  { %1300 = vmatpush.bf16.msra.mxu2 %v3961_v35  ;;  %1313 = vmatpush.bf16.msra.mxu3 %v3964_v38 }
 0x3bc   :  { %1275 = vmatpush.bf16.msra.mxu0 %v3973_v42  ;;  %1288 = vmatpush.bf16.msra.mxu1 %v3975_v46  ;;  %v253_v42 = vadd.f32 %v4095_v36, %v4061_v13  ;;  %v282_v36 = vadd.f32 %v4097_v37, %v4063_v14 }
 0x3bd   :  { %1301 = vmatpush.bf16.msra.mxu2 %v3977_v47  ;;  %1314 = vmatpush.bf16.msra.mxu3 %v3980_v50 }
 0x433   :  { %v1021_v57 = vpop.f32.mrf.mxu0  ;;  %v1034_v34 = vpop.f32.mrf.mxu1 }
 0x434   :  { %v1064_v56 = vadd.f32 %v1021_v57, %v195_v39  ;;  %v1065_v35 = vadd.f32 %v1034_v34, %v224_v30 }
 0x436   :  { %v3179_v1 = vmul.f32 -1.442695, %v1064_v56  ;;  %v3180_v38 = vmul.f32 -1.442695, %v1065_v35 }
 0x438   :  { %3568 = vpow2.f32 %v3179_v1 }
 0x439   :  { %3570 = vpow2.f32 %v3180_v38 }
 0x43a   :  { %v1047_v46 = vpop.f32.mrf.mxu2  ;;  %v1060_v47 = vpop.f32.mrf.mxu3 }
 0x43b   :  { %v1066_v50 = vadd.f32 %v1047_v46, %v253_v42  ;;  %v1023_v59 = vpop.f32.mrf.mxu0  ;;  %v1036_v60 = vpop.f32.mrf.mxu1  ;;  %v1067_v2 = vadd.f32 %v1060_v47, %v282_v36 }
 0x43d   :  { %v3181_v31 = vmul.f32 -1.442695, %v1066_v50 }
 0x43e   :  { %v3569_v19 = vpop.eup %3568 }
 0x43f   :  { %v3571_v28 = vpop.eup %3570  ;;  %v1077_v33 = vadd.f32 1.0, %v3569_v19  ;;  %3572 = vpow2.f32 %v3181_v31 }
 0x440   :  { %v1078_v4 = vadd.f32 1.0, %v3571_v28 }
 0x441   :  { %3574 = vrcp.f32 %v1077_v33  ;;  %v1091_v10 = vand.u32 2147483648, %v1077_v33  ;;  %v1089_v62 = vand.u32 2147483647, %v1077_v33  ;;  %vm1085_vm7 = vweird.f32 %v1077_v33 }
 0x442   :  { %3576 = vrcp.f32 %v1078_v4  ;;  %v1049_v8 = vpop.f32.mrf.mxu2  ;;  %v1062_v61 = vpop.f32.mrf.mxu3  ;;  %v1106_v12 = vand.u32 2147483648, %v1078_v4  ;;  %v1104_v25 = vand.u32 2147483647, %v1078_v4  ;;  %vm1100_vm8 = vweird.f32 %v1078_v4 }
 0x443   :  { %v1092_v58 = vor.u32 1.1754944e-38, %v1091_v10  ;;  %vm1090_vm11 = vcmp.eq.f32.partialorder %v1089_v62, 8.507059e+37  ;;  %v3239_v10 = vld [vmem:[#allocation4 + $0x68] sm:$0xf] }
 0x444   :  { %v1107_v16 = vor.u32 1.1754944e-38, %v1106_v12  ;;  %vm1105_vm12 = vcmp.eq.f32.partialorder %v1104_v25, 8.507059e+37  ;;  %v3459_v12 = vld [vmem:[#allocation4 + $0x74] sm:$0xf0] }
 0x445   :  { %v3573_v18 = vpop.eup %3572  ;;  %v3240_v25 = vor.u32 %v3459_v12, %v3239_v10  ;;  %v3440_v10 = vld [vmem:[#allocation2] sm:$0xff]  ;;  %v3441_v12 = vld [vmem:[#allocation2 + $0x8] sm:$0xff] }
 0x446   :  { %v1079_v29 = vadd.f32 1.0, %v3573_v18 }
 0x447   :  { %v3575_v20 = vpop.eup %3574 }
 0x448   :  { %v3577_v15 = vpop.eup %3576  ;;  %v1081_v9 = vmul.f32 %v3575_v20, %v1077_v33  ;;  %3578 = vrcp.f32 %v1079_v29  ;;  %vm1086_vm5 = vweird.f32 %v3575_v20  ;;  %v1121_v57 = vand.u32 2147483648, %v1079_v29 }
 0x449   :  { %v1096_v23 = vmul.f32 %v3577_v15, %v1078_v4  ;;  %3580 = vtanh.f32 %v1067_v2  ;;  %vm1101_vm6 = vweird.f32 %v3577_v15  ;;  %vm1087_vm9 = vmor %vm1085_vm7, %vm1086_vm5  ;;  %vm1115_vm15 = vweird.f32 %v1079_v29  ;;  %v3231_v2 = vld [vmem:[#allocation4 + $0x60] sm:$0xf] }
 0x44a   :  { %v1082_v32 = vsub.f32 1.0, %v1081_v9  ;;  %vm1102_vm10 = vmor %vm1100_vm8, %vm1101_vm6  ;;  %v1119_v34 = vand.u32 2147483647, %v1079_v29  ;;  %v1122_v35 = vor.u32 1.1754944e-38, %v1121_v57 }
 0x44b   :  { %v1097_v21 = vsub.f32 1.0, %v1096_v23  ;;  %v3233_v23 = vld [vmem:[#allocation4 + $0x70] sm:$0xf0] }
 0x44c   :  { %v1083_v6 = vmul.f32 %v3575_v20, %v1082_v32  ;;  %vm1120_vm2 = vcmp.eq.f32.partialorder %v1119_v34, 8.507059e+37 }
 0x44d   :  { %v1098_v55 = vmul.f32 %v3577_v15, %v1097_v21 }
 0x44e   :  { %v3579_v27 = vpop.eup %3578  ;;  %v1084_v37 = vadd.f32 %v3575_v20, %v1083_v6  ;;  %v3457_v6 = vld [vmem:[#allocation4 + $0x6c] sm:$0xf] }
 0x44f   :  { %v1111_v11 = vmul.f32 %v3579_v27, %v1079_v29  ;;  %v1099_v63 = vadd.f32 %v3577_v15, %v1098_v55  ;;  %v3581_v3 = vpop.eup %3580  ;;  %vm1116_vm14 = vweird.f32 %v3579_v27 }
 0x450   :  { %v1088_v44 = vsel %vm1087_vm9, %v3575_v20, %v1084_v37  ;;  %vm1117_vm1 = vmor %vm1115_vm15, %vm1116_vm14  ;;  %v3215_v37 = vld [vmem:[#allocation4 + $0x40] sm:$0xf] }
 0x451   :  { %v1112_v53 = vsub.f32 1.0, %v1111_v11  ;;  %v1093_v17 = vsel %vm1090_vm11, %v1092_v58, %v1088_v44  ;;  %v1103_v22 = vsel %vm1102_vm10, %v3577_v15, %v1099_v63  ;;  %v3458_v15 = vld [vmem:[#allocation4 + $0x6c] sm:$0xf0]  ;;  %v3217_v44 = vld [vmem:[#allocation4 + $0x50] sm:$0xf0] }
 0x452   :  { %v1108_v48 = vsel %vm1105_vm12, %v1107_v16, %v1103_v22  ;;  %v1127_v0 = vmul.f32 %v3581_v3, %v1093_v17  ;;  %v3232_v9 = vor.u32 %v3458_v15, %v3231_v2  ;;  %v3454_v63 = vld [vmem:[#allocation4 + $0x4c] sm:$0xf0]  ;;  %v3452_v16 = vld [vmem:[#allocation4 + $0x44] sm:$0xf]  ;;  %v3223_v17 = vld [vmem:[#allocation4 + $0x48] sm:$0xf] }
 0x453   :  { %v1113_v24 = vmul.f32 %v3579_v27, %v1112_v53  ;;  %v1126_v26 = vmul.f32 %v1108_v48, %v4219_v41  ;;  %v3455_v22 = vld [vmem:[#allocation4 + $0x54] sm:$0xf0]  ;;  %v3453_v48 = vld [vmem:[#allocation4 + $0x4c] sm:$0xf] }
 0x455   :  { %v4244_v39 = vadd.f32 %v1127_v0, %v1126_v26  ;;  %v1114_v30 = vadd.f32 %v3579_v27, %v1113_v24  ;;  %v3225_v0 = vld [vmem:[#allocation4 + $0x58] sm:$0xf0]  ;;  %v3216_v26 = vor.u32 %v3454_v63, %v3215_v37 }
 0x457   :  { %3582 = vtanh.f32 %v4244_v39  ;;  %v1118_v56 = vsel %vm1117_vm1, %v3579_v27, %v1114_v30  ;;  %v3241_v27 = vld [vmem:[#allocation4 + $0x78] sm:$0xf0]  ;;  %v3220_v30 = vor.u32 %v3452_v16, %v3217_v44  ;;  %v258_v16 = vadd.f32 %v4116_v54, %v4061_v13 }
 0x458   :  { %v1123_v38 = vsel %vm1120_vm2, %v1122_v35, %v1118_v56  ;;  %v3244_v58 = vor.u32 %v3457_v6, %v3241_v27  ;;  %v3224_v56 = vor.u32 %v3455_v22, %v3223_v17  ;;  %v3228_v35 = vor.u32 %v3453_v48, %v3225_v0  ;;  %v3281_v48 = vld [vmem:[#allocation7 + $0x60] sm:$0xf]  ;;  %v3450_v0 = vld [vmem:[#allocation7 + $0x6c] sm:$0xf0] }
 0x45d   :  { %v3583_v1 = vpop.eup %3582 }
 0x45e   :  { %v1130_v42 = vmul.f32 %v3583_v1, %v1123_v38 }
 0x460   :  { %v1131_v46 = vpack.c.bf16 %v1130_v42, %v1130_v42 }
 0x462   :  { %1132 = vst.msk [vmem:[#allocation2 + $0x14] sm:$0xf] %vm491_vm13, %v1131_v46  ;;  %3182 = vmatmul.msk.bf16.vlgmr.msrb.gmra.mxu0 %vm160_vm0, %v1131_v46  ;;  %3183 = vmatmul.msk.bf16.vlgmr.msrb.gmra.mxu1 %vm160_vm0, %v1131_v46 }
 0x463   :  { %3184 = vmatmul.msk.bf16.vlgmr.msrb.gmra.mxu2 %vm160_vm0, %v1131_v46  ;;  %3185 = vmatmul.msk.bf16.vlgmr.msrb.gmra.mxu3 %vm160_vm0, %v1131_v46 }
 0x464   :  { %1507 = vmatpush.bf16.msrb.mxu0 %v3232_v9  ;;  %1565 = vmatpush.bf16.msrb.mxu2 %v3240_v25 }
 0x465   :  { %1594 = vmatpush.bf16.msrb.mxu3 %v3244_v58 }
 0x468   :  { %1508 = vmatpush.bf16.msrb.mxu0 %v3216_v26  ;;  %1566 = vmatpush.bf16.msrb.mxu2 %v3224_v56  ;;  %v4310_v26 = vor.u32 %v3450_v0, %v3281_v48  ;;  %v4659_v56 = vld [vmem:[#allocation17_spill] sm:$0xff] }
 0x469   :  { %1595 = vmatpush.bf16.msrb.mxu3 %v3228_v35  ;;  %v3442_v6 = vld [vmem:[#allocation2 + $0x10] sm:$0xff]  ;;  %v287_v35 = vadd.f32 %v4659_v56, %v4063_v14 }
 0x4df   :  { %v1149_v41 = vpop.f32.mrf.mxu0  ;;  %v1162_v47 = vpop.f32.mrf.mxu1 }
 0x4e0   :  { %v1192_v50 = vadd.f32 %v1149_v41, %v4100_v40  ;;  %v1193_v59 = vadd.f32 %v1162_v47, %v4103_v43 }
 0x4e2   :  { %v3186_v60 = vmul.f32 -1.442695, %v1192_v50  ;;  %v3187_v31 = vmul.f32 -1.442695, %v1193_v59 }
 0x4e4   :  { %3584 = vpow2.f32 %v3186_v60 }
 0x4e5   :  { %3586 = vpow2.f32 %v3187_v31 }
 0x4e6   :  { %v1175_v19 = vpop.f32.mrf.mxu2  ;;  %v1188_v28 = vpop.f32.mrf.mxu3 }
 0x4e7   :  { %v1194_v33 = vadd.f32 %v1175_v19, %v4106_v45  ;;  %v1151_v4 = vpop.f32.mrf.mxu0  ;;  %v1164_v8 = vpop.f32.mrf.mxu1  ;;  %v3456_v45 = vld [vmem:[#allocation4 + $0x64] sm:$0xf]  ;;  %v1195_v55 = vadd.f32 %v1188_v28, %v4111_v51 }
 0x4e8   :  { %v3236_v21 = vor.u32 %v3456_v45, %v3233_v23 }
 0x4e9   :  { %v3188_v61 = vmul.f32 -1.442695, %v1194_v33 }
 0x4ea   :  { %v3585_v18 = vpop.eup %3584  ;;  %1536 = vmatpush.bf16.msrb.mxu1 %v3236_v21 }
 0x4eb   :  { %v3587_v36 = vpop.eup %3586  ;;  %v4255_v29 = vadd.f32 1.0, %v3585_v18  ;;  %3588 = vpow2.f32 %v3188_v61 }
 0x4ec   :  { %v4257_v20 = vadd.f32 1.0, %v3587_v36 }
 0x4ed   :  { %3590 = vrcp.f32 %v4255_v29  ;;  %v1219_v34 = vand.u32 2147483648, %v4255_v29  ;;  %v1217_v42 = vand.u32 2147483647, %v4255_v29  ;;  %vm1213_vm5 = vweird.f32 %v4255_v29 }
 0x4ee   :  { %3592 = vrcp.f32 %v4257_v20  ;;  %v1177_v40 = vpop.f32.mrf.mxu2  ;;  %v1190_v43 = vpop.f32.mrf.mxu3  ;;  %v1234_v1 = vand.u32 2147483648, %v4257_v20  ;;  %1537 = vmatpush.bf16.msrb.mxu1 %v3220_v30  ;;  %v1232_v41 = vand.u32 2147483647, %v4257_v20  ;;  %vm1228_vm6 = vweird.f32 %v4257_v20  ;;  %v3283_v30 = vld [vmem:[#allocation7 + $0x70] sm:$0xf0] }
 0x4ef   :  { %v1220_v60 = vor.u32 1.1754944e-38, %v1219_v34  ;;  %vm1218_vm9 = vcmp.eq.f32.partialorder %v1217_v42, 8.507059e+37  ;;  %v3449_v42 = vld [vmem:[#allocation7 + $0x6c] sm:$0xf] }
 0x4f0   :  { %v1235_v28 = vor.u32 1.1754944e-38, %v1234_v1  ;;  %vm1233_vm10 = vcmp.eq.f32.partialorder %v1232_v41, 8.507059e+37 }
 0x4f1   :  { %v3589_v32 = vpop.eup %3588 }
 0x4f2   :  { %v4261_v62 = vadd.f32 1.0, %v3589_v32 }
 0x4f3   :  { %v3591_v11 = vpop.eup %3590 }
 0x4f4   :  { %v3593_v3 = vpop.eup %3592  ;;  %v1209_v53 = vmul.f32 %v3591_v11, %v4255_v29  ;;  %3594 = vrcp.f32 %v4261_v62  ;;  %vm1214_vm3 = vweird.f32 %v3591_v11  ;;  %v1249_v2 = vand.u32 2147483648, %v4261_v62 }
 0x4f5   :  { %v1224_v51 = vmul.f32 %v3593_v3, %v4257_v20  ;;  %3596 = vtanh.f32 %v1195_v55  ;;  %vm1229_vm4 = vweird.f32 %v3593_v3  ;;  %vm1215_vm7 = vmor %vm1213_vm5, %vm1214_vm3  ;;  %vm1243_vm12 = vweird.f32 %v4261_v62 }
 0x4f6   :  { %v1210_v24 = vsub.f32 1.0, %v1209_v53  ;;  %vm1230_vm8 = vmor %vm1228_vm6, %vm1229_vm4  ;;  %v1247_v15 = vand.u32 2147483647, %v4261_v62  ;;  %v1250_v45 = vor.u32 1.1754944e-38, %v1249_v2  ;;  %v229_v55 = vadd.f32 %v4113_v52, %v4051_v7 }
 0x4f7   :  { %v1225_v57 = vsub.f32 1.0, %v1224_v51 }
 0x4f8   :  { %v1211_v38 = vmul.f32 %v3591_v11, %v1210_v24  ;;  %vm1248_vm15 = vcmp.eq.f32.partialorder %v1247_v15, 8.507059e+37  ;;  %v3448_v24 = vld [vmem:[#allocation7 + $0x64] sm:$0xf] }
 0x4f9   :  { %v1226_v46 = vmul.f32 %v3593_v3, %v1225_v57  ;;  %v3289_v57 = vld [vmem:[#allocation7 + $0x68] sm:$0xf]  ;;  %v4314_v1 = vor.u32 %v3448_v24, %v3283_v30 }
 0x4fa   :  { %v3595_v47 = vpop.eup %3594  ;;  %v1212_v50 = vadd.f32 %v3591_v11, %v1211_v38  ;;  %v3451_v38 = vld [vmem:[#allocation7 + $0x74] sm:$0xf0]  ;;  %v3261_v30 = vld [vmem:[%s4651_s4 + $0x8] sm:$0xff] }
 0x4fb   :  { %v1239_v59 = vmul.f32 %v3595_v47, %v4261_v62  ;;  %v1227_v31 = vadd.f32 %v3593_v3, %v1226_v46  ;;  %v3597_v19 = vpop.eup %3596  ;;  %vm1244_vm11 = vweird.f32 %v3595_v47  ;;  %v200_v62 = vadd.f32 %v4108_v49, %v4047_v5  ;;  %v3291_v46 = vld [vmem:[#allocation7 + $0x78] sm:$0xf0] }
 0x4fc   :  { %v1216_v33 = vsel %vm1215_vm7, %v3591_v11, %v1212_v50  ;;  %vm1245_vm14 = vmor %vm1243_vm12, %vm1244_vm11  ;;  %v4321_v50 = vor.u32 %v3449_v42, %v3291_v46 }
 0x4fd   :  { %v1240_v4 = vsub.f32 1.0, %v1239_v59  ;;  %v1221_v8 = vsel %vm1218_vm9, %v1220_v60, %v1216_v33  ;;  %v1231_v61 = vsel %vm1230_vm8, %v3593_v3, %v1227_v31  ;;  %v3265_v59 = vld [vmem:[#allocation7 + $0x40] sm:$0xf]  ;;  %v3446_v60 = vld [vmem:[#allocation7 + $0x4c] sm:$0xf0]  ;;  %vm1389_vm9 = vcmask 254976  }
 0x4fe   :  { %v1236_v18 = vsel %vm1233_vm10, %v1235_v28, %v1231_v61  ;;  %v1255_v36 = vmul.f32 %v3597_v19, %v1221_v8  ;;  %v4324_v14 = vor.u32 %v3446_v60, %v3265_v59  ;;  %v3444_v28 = vld [vmem:[#allocation7 + $0x44] sm:$0xf]  ;;  %v3267_v33 = vld [vmem:[#allocation7 + $0x50] sm:$0xf0] }
 0x4ff   :  { %v1241_v40 = vmul.f32 %v3595_v47, %v1240_v4  ;;  %v1254_v29 = vmul.f32 %v1236_v18, %v4244_v39  ;;  %v3273_v4 = vld [vmem:[#allocation7 + $0x48] sm:$0xf]  ;;  %v3447_v18 = vld [vmem:[#allocation7 + $0x54] sm:$0xf0] }
 0x501   :  { %v4275_v20 = vadd.f32 %v1255_v36, %v1254_v29  ;;  %v1242_v43 = vadd.f32 %v3595_v47, %v1241_v40  ;;  %v4332_v29 = vor.u32 %v3444_v28, %v3267_v33 }
 0x503   :  { %3598 = vtanh.f32 %v4275_v20  ;;  %v1246_v9 = vsel %vm1245_vm14, %v3595_v47, %v1242_v43  ;;  %v4319_v47 = vor.u32 %v3451_v38, %v3289_v57  ;;  %v4334_v43 = vor.u32 %v3447_v18, %v3273_v4 }
 0x504   :  { %v1251_v32 = vsel %vm1248_vm15, %v1250_v45, %v1246_v9  ;;  %v3445_v9 = vld [vmem:[#allocation7 + $0x4c] sm:$0xf]  ;;  %v3275_v45 = vld [vmem:[#allocation7 + $0x58] sm:$0xf0]  ;;  %v1657_v57 = vpack.c.bf16 %v3261_v30, %v3261_v30 }
 0x509   :  { %v3599_v23 = vpop.eup %3598 }
 0x50a   :  { %v1258_v21 = vmul.f32 %v3599_v23, %v1251_v32 }
 0x50c   :  { %v1259_v39 = vpack.c.bf16 %v1258_v21, %v1258_v21 }
 0x50e   :  { %1260 = vst.msk [vmem:[#allocation2 + $0x18] sm:$0xf] %vm491_vm13, %v1259_v39  ;;  %3189 = vmatmul.msk.bf16.vlgmr.msra.gmra.mxu0 %vm160_vm0, %v1259_v39  ;;  %3190 = vmatmul.msk.bf16.vlgmr.msra.gmra.mxu1 %vm160_vm0, %v1259_v39 }
 0x50f   :  { %3191 = vmatmul.msk.bf16.vlgmr.msra.gmra.mxu2 %vm160_vm0, %v1259_v39  ;;  %3192 = vmatmul.msk.bf16.vlgmr.msra.gmra.mxu3 %vm160_vm0, %v1259_v39 }
 0x510   :  { %1707 = vmatpush.bf16.msra.mxu0 %v4310_v26  ;;  %1720 = vmatpush.bf16.msra.mxu1 %v4314_v1 }
 0x511   :  { %1733 = vmatpush.bf16.msra.mxu2 %v4319_v47  ;;  %1746 = vmatpush.bf16.msra.mxu3 %v4321_v50 }
 0x514   :  { %1708 = vmatpush.bf16.msra.mxu0 %v4324_v14  ;;  %1721 = vmatpush.bf16.msra.mxu1 %v4332_v29 }
 0x515   :  { %1734 = vmatpush.bf16.msra.mxu2 %v4334_v43 }
 0x51e   :  { %3245 = vmatmul.msk.bf16.vlgmr.msrb.gmra.mxu0 %vm160_vm0, %v3440_v10  ;;  %3249 = vmatmul.msk.bf16.vlgmr.msrb.gmra.mxu1 %vm160_vm0, %v3440_v10 }
 0x51f   :  { %3253 = vmatmul.msk.bf16.vlgmr.msrb.gmra.mxu2 %vm160_vm0, %v3440_v10  ;;  %3257 = vmatmul.msk.bf16.vlgmr.msrb.gmra.mxu3 %vm160_vm0, %v3440_v10 }
 0x520   :  { %1835 = vmatpush.bf16.msrb.mxu0 %v4310_v26  ;;  %1848 = vmatpush.bf16.msrb.mxu1 %v4314_v1 }
 0x521   :  { %1861 = vmatpush.bf16.msrb.mxu2 %v4319_v47 }
 0x524   :  { %1836 = vmatpush.bf16.msrb.mxu0 %v4324_v14  ;;  %1849 = vmatpush.bf16.msrb.mxu1 %v4332_v29 }
 0x525   :  { %1862 = vmatpush.bf16.msrb.mxu2 %v4334_v43 }
 0x52e   :  { %3246 = vmatmul.msk.bf16.gmra.mxu0 %vm160_vm0, %v3441_v12  ;;  %3250 = vmatmul.msk.bf16.gmra.mxu1 %vm160_vm0, %v3441_v12 }
 0x52f   :  { %3254 = vmatmul.msk.bf16.gmra.mxu2 %vm160_vm0, %v3441_v12  ;;  %3258 = vmatmul.msk.bf16.gmra.mxu3 %vm160_vm0, %v3441_v12  ;;  %v4343_v12 = vor.u32 %v3445_v9, %v3275_v45 }
 0x531   :  { %1747 = vmatpush.bf16.msra.mxu3 %v4343_v12 }
 0x535   :  { %1874 = vmatpush.bf16.msrb.mxu3 %v4321_v50 }
 0x539   :  { %1875 = vmatpush.bf16.msrb.mxu3 %v4343_v12 }
 0x53e   :  { %3247 = vmatmul.msk.bf16.gmra.mxu0 %vm160_vm0, %v3442_v6  ;;  %3251 = vmatmul.msk.bf16.gmra.mxu1 %vm160_vm0, %v3442_v6 }
 0x53f   :  { %3255 = vmatmul.msk.bf16.gmra.mxu2 %vm160_vm0, %v3442_v6  ;;  %3259 = vmatmul.msk.bf16.gmra.mxu3 %vm160_vm0, %v3442_v6 }
 0x58b   :  { %v1277_v25 = vpop.f32.mrf.mxu0  ;;  %v1290_v27 = vpop.f32.mrf.mxu1 }
 0x58c   :  { %v1320_v37 = vadd.f32 %v1277_v25, %v200_v62  ;;  %v1321_v11 = vadd.f32 %v1290_v27, %v229_v55 }
 0x58e   :  { %v3193_v58 = vmul.f32 -1.442695, %v1320_v37  ;;  %v3194_v63 = vmul.f32 -1.442695, %v1321_v11 }
 0x590   :  { %3600 = vpow2.f32 %v3193_v58 }
 0x591   :  { %3602 = vpow2.f32 %v3194_v63 }
 0x592   :  { %v1303_v44 = vpop.f32.mrf.mxu2  ;;  %v1316_v3 = vpop.f32.mrf.mxu3 }
 0x593   :  { %v1322_v53 = vadd.f32 %v1303_v44, %v258_v16  ;;  %v1279_v17 = vpop.f32.mrf.mxu0  ;;  %v1292_v22 = vpop.f32.mrf.mxu1  ;;  %v1323_v19 = vadd.f32 %v1316_v3, %v287_v35 }
 0x595   :  { %v3195_v5 = vmul.f32 -1.442695, %v1322_v53 }
 0x596   :  { %v3601_v49 = vpop.eup %3600 }
 0x597   :  { %v3603_v51 = vpop.eup %3602  ;;  %v4304_v7 = vadd.f32 1.0, %v3601_v49  ;;  %3604 = vpow2.f32 %v3195_v5 }
 0x598   :  { %v4306_v52 = vadd.f32 1.0, %v3603_v51 }
 0x599   :  { %3606 = vrcp.f32 %v4304_v7  ;;  %v1347_v15 = vand.u32 2147483648, %v4304_v7  ;;  %v1345_v21 = vand.u32 2147483647, %v4304_v7  ;;  %vm1341_vm3 = vweird.f32 %v4304_v7 }
 0x59a   :  { %3608 = vrcp.f32 %v4306_v52  ;;  %v1305_v13 = vpop.f32.mrf.mxu2  ;;  %v1318_v54 = vpop.f32.mrf.mxu3  ;;  %v1362_v23 = vand.u32 2147483648, %v4306_v52  ;;  %v1360_v10 = vand.u32 2147483647, %v4306_v52  ;;  %vm1356_vm4 = vweird.f32 %v4306_v52 }
 0x59b   :  { %v1348_v25 = vor.u32 1.1754944e-38, %v1347_v15  ;;  %vm1346_vm7 = vcmp.eq.f32.partialorder %v1345_v21, 8.507059e+37  ;;  %v1539_v56 = vpop.f32.mrf.mxu1 }
 0x59c   :  { %v1363_v37 = vor.u32 1.1754944e-38, %v1362_v23  ;;  %vm1361_vm8 = vcmp.eq.f32.partialorder %v1360_v10, 8.507059e+37 }
 0x59d   :  { %v3605_v34 = vpop.eup %3604 }
 0x59e   :  { %v4316_v41 = vadd.f32 1.0, %v3605_v34  ;;  %v1510_v34 = vpop.f32.mrf.mxu0 }
 0x59f   :  { %v3607_v31 = vpop.eup %3606 }
 0x5a0   :  { %v3609_v8 = vpop.eup %3608  ;;  %v1337_v61 = vmul.f32 %v3607_v31, %v4304_v7  ;;  %3610 = vrcp.f32 %v4316_v41  ;;  %vm1342_vm1 = vweird.f32 %v3607_v31  ;;  %v1377_v51 = vand.u32 2147483648, %v4316_v41 }
 0x5a1   :  { %v1352_v36 = vmul.f32 %v3609_v8, %v4306_v52  ;;  %3612 = vtanh.f32 %v1323_v19  ;;  %vm1357_vm2 = vweird.f32 %v3609_v8  ;;  %vm1343_vm5 = vmor %vm1341_vm3, %vm1342_vm1  ;;  %vm1371_vm11 = vweird.f32 %v4316_v41 }
 0x5a2   :  { %v1338_v40 = vsub.f32 1.0, %v1337_v61  ;;  %vm1358_vm6 = vmor %vm1356_vm4, %vm1357_vm2  ;;  %v1375_v7 = vand.u32 2147483647, %v4316_v41  ;;  %v1378_v48 = vor.u32 1.1754944e-38, %v1377_v51  ;;  %v1568_v35 = vpop.f32.mrf.mxu2  ;;  %v1597_v38 = vpop.f32.mrf.mxu3 }
 0x5a3   :  { %v1353_v2 = vsub.f32 1.0, %v1352_v36  ;;  %v4386_v46 = vpop.f32.mrf.mxu1 }
 0x5a4   :  { %v1339_v32 = vmul.f32 %v3607_v31, %v1338_v40  ;;  %vm1376_vm14 = vcmp.eq.f32.partialorder %v1375_v7, 8.507059e+37 }
 0x5a5   :  { %v1354_v39 = vmul.f32 %v3609_v8, %v1353_v2 }
 0x5a6   :  { %v3611_v6 = vpop.eup %3610  ;;  %v1340_v62 = vadd.f32 %v3607_v31, %v1339_v32  ;;  %v4384_v42 = vpop.f32.mrf.mxu0 }
 0x5a7   :  { %v1367_v55 = vmul.f32 %v3611_v6, %v4316_v41  ;;  %v1355_v27 = vadd.f32 %v3609_v8, %v1354_v39  ;;  %v3613_v58 = vpop.eup %3612  ;;  %vm1372_vm10 = vweird.f32 %v3611_v6 }
 0x5a8   :  { %v1344_v11 = vsel %vm1343_vm5, %v3607_v31, %v1340_v62  ;;  %vm1373_vm12 = vmor %vm1371_vm11, %vm1372_vm10 }
 0x5a9   :  { %v1368_v63 = vsub.f32 1.0, %v1367_v55  ;;  %v1349_v16 = vsel %vm1346_vm7, %v1348_v25, %v1344_v11  ;;  %v1359_v44 = vsel %vm1358_vm6, %v3609_v8, %v1355_v27 }
 0x5aa   :  { %v1364_v3 = vsel %vm1361_vm8, %v1363_v37, %v1359_v44  ;;  %v1383_v53 = vmul.f32 %v3613_v58, %v1349_v16  ;;  %v4388_v41 = vpop.f32.mrf.mxu2  ;;  %v4390_v59 = vpop.f32.mrf.mxu3 }
 0x5ab   :  { %v1369_v17 = vmul.f32 %v3611_v6, %v1368_v63  ;;  %v1382_v22 = vmul.f32 %v1364_v3, %v4275_v20  ;;  %v4394_v31 = vpop.f32.mrf.mxu1 }
 0x5ad   :  { %v1384_v5 = vadd.f32 %v1383_v53, %v1382_v22  ;;  %v1370_v49 = vadd.f32 %v3611_v6, %v1369_v17 }
 0x5ae   :  { %v4392_v60 = vpop.f32.mrf.mxu0 }
 0x5af   :  { %3614 = vtanh.f32 %v1384_v5  ;;  %1391 = vst.msk [vmem:[#allocation11] sm:$0x3] %vm1389_vm9, %v1384_v5  ;;  %v1374_v52 = vsel %vm1373_vm12, %v3611_v6, %v1370_v49  ;;  %v3196_v6 = vld [vmem:[%s4650_s3 + $0x4] sm:$0xf] }
 0x5b0   :  { %v1379_v13 = vsel %vm1376_vm14, %v1378_v48, %v1374_v52  ;;  %v4439_v25 = vperm.slane %v3196_v6, 0  ;;  %v4441_v27 = vperm.slane %v3196_v6, 1  ;;  %v4449_v17 = vperm.slane %v3196_v6, 2 }
 0x5b2   :  { %v4396_v19 = vpop.f32.mrf.mxu2  ;;  %v4398_v28 = vpop.f32.mrf.mxu3  ;;  %v1511_v37 = vadd.f32 %v1510_v34, %v4439_v25  ;;  %v1540_v11 = vadd.f32 %v1539_v56, %v4441_v27  ;;  %v1569_v49 = vadd.f32 %v1568_v35, %v4449_v17 }
 0x5b3   :  { %v4402_v4 = vpop.f32.mrf.mxu1 }
 0x5b5   :  { %v3615_v20 = vpop.eup %3614 }
 0x5b6   :  { %v1386_v54 = vmul.f32 %v3615_v20, %v1379_v13  ;;  %v4400_v33 = vpop.f32.mrf.mxu0 }
 0x5b8   :  { %v1387_v0 = vpack.c.bf16 %v1386_v54, %v1386_v54  ;;  %1390 = vst.msk [vmem:[#allocation10] sm:$0x3] %vm1389_vm9, %v1386_v54 }
 0x5ba   :  { %1388 = vst.msk [vmem:[#allocation2 + $0x1c] sm:$0xf] %vm491_vm13, %v1387_v0  ;;  %v4404_v8 = vpop.f32.mrf.mxu2  ;;  %v4406_v61 = vpop.f32.mrf.mxu3 }
 0x5bb   :  { %v4410_v36 = vpop.f32.mrf.mxu1 }
 0x5be   :  { %v4408_v18 = vpop.f32.mrf.mxu0 }
 0x5c1   :  { %v3443_v24 = vld [vmem:[#allocation2 + $0x18] sm:$0xff] }
 0x5c2   :  { %3248 = vmatmul.msk.bf16.gmra.mxu0 %vm160_vm0, %v3443_v24  ;;  %3252 = vmatmul.msk.bf16.gmra.mxu1 %vm160_vm0, %v3443_v24  ;;  %v4412_v40 = vpop.f32.mrf.mxu2  ;;  %v4414_v2 = vpop.f32.mrf.mxu3 }
 0x5c3   :  { %3256 = vmatmul.msk.bf16.gmra.mxu2 %vm160_vm0, %v3443_v24  ;;  %3260 = vmatmul.msk.bf16.gmra.mxu3 %vm160_vm0, %v3443_v24  ;;  %v4418_v9 = vpop.f32.mrf.mxu1 }
 0x5c6   :  { %v4416_v15 = vpop.f32.mrf.mxu0 }
 0x5ca   :  { %v4420_v45 = vpop.f32.mrf.mxu2  ;;  %v4422_v23 = vpop.f32.mrf.mxu3 }
 0x5d2   :  { %3295 = vmatmul.msk.bf16.vlgmr.msra.gmra.mxu0 %vm160_vm0, %v1657_v57  ;;  %3296 = vmatmul.msk.bf16.vlgmr.msra.gmra.mxu1 %vm160_vm0, %v1657_v57 }
 0x5d3   :  { %3297 = vmatmul.msk.bf16.vlgmr.msra.gmra.mxu2 %vm160_vm0, %v1657_v57  ;;  %3298 = vmatmul.msk.bf16.vlgmr.msra.gmra.mxu3 %vm160_vm0, %v1657_v57  ;;  %v4452_v57 = vperm.slane %v3196_v6, 3 }
 0x5d4   :  { %1963 = vmatpush.bf16.msra.mxu0 %v4310_v26  ;;  %1976 = vmatpush.bf16.msra.mxu1 %v4314_v1 }
 0x5d5   :  { %1989 = vmatpush.bf16.msra.mxu2 %v4319_v47  ;;  %2002 = vmatpush.bf16.msra.mxu3 %v4321_v50  ;;  %v1598_v35 = vadd.f32 %v1597_v38, %v4452_v57 }
 0x5d8   :  { %1964 = vmatpush.bf16.msra.mxu0 %v4324_v14  ;;  %1977 = vmatpush.bf16.msra.mxu1 %v4332_v29 }
 0x5d9   :  { %1990 = vmatpush.bf16.msra.mxu2 %v4334_v43  ;;  %2003 = vmatpush.bf16.msra.mxu3 %v4343_v12 }
 0x63f   :  { %v4424_v32 = vpop.f32.mrf.mxu0  ;;  %v4426_v21 = vpop.f32.mrf.mxu1 }
 0x646   :  { %v4428_v39 = vpop.f32.mrf.mxu2  ;;  %v4430_v10 = vpop.f32.mrf.mxu3 }
 0x647   :  { %v4435_v62 = vpop.f32.mrf.mxu0  ;;  %v4437_v55 = vpop.f32.mrf.mxu1 }
 0x64e   :  { %v4445_v58 = vpop.f32.mrf.mxu2  ;;  %v4447_v63 = vpop.f32.mrf.mxu3 }
 0x64f   :  { %4660 = vst [vmem:[#allocation17_spill] sm:$0xff] %v4447_v63  ;;  %v1710_v16 = vpop.f32.mrf.mxu0  ;;  %v1723_v44 = vpop.f32.mrf.mxu1 }
 0x650   :  { %v1753_v3 = vadd.f32 %v1710_v16, %v1511_v37  ;;  %v1754_v53 = vadd.f32 %v1723_v44, %v1540_v11 }
 0x652   :  { %v3299_v22 = vmul.f32 -1.442695, %v1753_v3  ;;  %v3300_v5 = vmul.f32 -1.442695, %v1754_v53 }
 0x654   :  { %3616 = vpow2.f32 %v3299_v22 }
 0x655   :  { %3618 = vpow2.f32 %v3300_v5 }
 0x656   :  { %v1736_v51 = vpop.f32.mrf.mxu2  ;;  %v1749_v7 = vpop.f32.mrf.mxu3 }
 0x657   :  { %v1755_v52 = vadd.f32 %v1736_v51, %v1569_v49  ;;  %v1712_v48 = vpop.f32.mrf.mxu0  ;;  %v1725_v20 = vpop.f32.mrf.mxu1  ;;  %v1756_v44 = vadd.f32 %v1749_v7, %v1598_v35 }
 0x659   :  { %v3301_v13 = vmul.f32 -1.442695, %v1755_v52 }
 0x65a   :  { %v3617_v54 = vpop.eup %3616 }
 0x65b   :  { %v3619_v0 = vpop.eup %3618  ;;  %v1766_v24 = vadd.f32 1.0, %v3617_v54  ;;  %3620 = vpow2.f32 %v3301_v13 }
 0x65c   :  { %v1767_v30 = vadd.f32 1.0, %v3619_v0 }
 0x65d   :  { %3622 = vrcp.f32 %v1766_v24  ;;  %v1780_v51 = vand.u32 2147483648, %v1766_v24  ;;  %v1778_v48 = vand.u32 2147483647, %v1766_v24  ;;  %vm1774_vm2 = vweird.f32 %v1766_v24 }
 0x65e   :  { %3624 = vrcp.f32 %v1767_v30  ;;  %v1738_v34 = vpop.f32.mrf.mxu2  ;;  %v1751_v56 = vpop.f32.mrf.mxu3  ;;  %v1795_v6 = vand.u32 2147483648, %v1767_v30  ;;  %v1793_v13 = vand.u32 2147483647, %v1767_v30  ;;  %vm1789_vm3 = vweird.f32 %v1767_v30 }
 0x65f   :  { %v1781_v0 = vor.u32 1.1754944e-38, %v1780_v51  ;;  %vm1779_vm6 = vcmp.eq.f32.partialorder %v1778_v48, 8.507059e+37 }
 0x660   :  { %v1796_v56 = vor.u32 1.1754944e-38, %v1795_v6  ;;  %vm1794_vm7 = vcmp.eq.f32.partialorder %v1793_v13, 8.507059e+37 }
 0x661   :  { %v3621_v37 = vpop.eup %3620 }
 0x662   :  { %v1768_v11 = vadd.f32 1.0, %v3621_v37  ;;  %v3262_v37 = vld [vmem:[%s4652_s5 + $0x8] sm:$0xff]  ;;  %s3883_s5 = smov [#allocation10]  }
 0x663   :  { %v3623_v16 = vpop.eup %3622  ;;  %s3024_s11 = sshll.u32 %s3883_s5, 4  ;;  %s3025_s11 = int_to_ptr.vmem [resolvable:$true] %s3024_s11 }
 0x664   :  { %v3625_v3 = vpop.eup %3624  ;;  %v1770_v53 = vmul.f32 %v3623_v16, %v1766_v24  ;;  %3626 = vrcp.f32 %v1768_v11  ;;  %vm1775_vm15 = vweird.f32 %v3623_v16  ;;  %v1810_v6 = vand.u32 2147483648, %v1768_v11 }
 0x665   :  { %v1785_v22 = vmul.f32 %v3625_v3, %v1767_v30  ;;  %3628 = vtanh.f32 %v1756_v44  ;;  %vm1790_vm1 = vweird.f32 %v3625_v3  ;;  %vm1776_vm4 = vmor %vm1774_vm2, %vm1775_vm15  ;;  %vm1804_vm10 = vweird.f32 %v1768_v11 }
 0x666   :  { %v1771_v5 = vsub.f32 1.0, %v1770_v53  ;;  %vm1791_vm5 = vmor %vm1789_vm3, %vm1790_vm1  ;;  %v1811_v48 = vor.u32 1.1754944e-38, %v1810_v6 }
 0x667   :  { %v1786_v49 = vsub.f32 1.0, %v1785_v22 }
 0x668   :  { %v1772_v52 = vmul.f32 %v3623_v16, %v1771_v5 }
 0x669   :  { %v1787_v20 = vmul.f32 %v3625_v3, %v1786_v49 }
 0x66a   :  { %v3627_v54 = vpop.eup %3626  ;;  %v1773_v38 = vadd.f32 %v3623_v16, %v1772_v52 }
 0x66b   :  { %v1800_v7 = vmul.f32 %v3627_v54, %v1768_v11  ;;  %v1788_v34 = vadd.f32 %v3625_v3, %v1787_v20  ;;  %v3629_v44 = vpop.eup %3628  ;;  %vm1805_vm8 = vweird.f32 %v3627_v54  ;;  %v1808_v20 = vand.u32 2147483647, %v1768_v11 }
 0x66c   :  { %v1777_v35 = vsel %vm1776_vm4, %v3623_v16, %v1773_v38  ;;  %vm1806_vm11 = vmor %vm1804_vm10, %vm1805_vm8  ;;  %v1513_v11 = vadd.f32 %v4384_v42, %v4439_v25 }
 0x66d   :  { %v1801_v53 = vsub.f32 1.0, %v1800_v7  ;;  %v1782_v22 = vsel %vm1779_vm6, %v1781_v0, %v1777_v35  ;;  %v1792_v5 = vsel %vm1791_vm5, %v3625_v3, %v1788_v34  ;;  %vm1809_vm12 = vcmp.eq.f32.partialorder %v1808_v20, 8.507059e+37 }
 0x66e   :  { %v1797_v49 = vsel %vm1794_vm7, %v1796_v56, %v1792_v5  ;;  %v1816_v24 = vmul.f32 %v3629_v44, %v1782_v22 }
 0x66f   :  { %v1802_v30 = vmul.f32 %v3627_v54, %v1801_v53  ;;  %v1815_v52 = vmul.f32 %v3262_v37, %v1797_v49  ;;  %v1571_v53 = vadd.f32 %v4388_v41, %v4449_v17  ;;  %v1600_v41 = vadd.f32 %v4390_v59, %v4452_v57 }
 0x671   :  { %v4458_v63 = vadd.f32 %v1816_v24, %v1815_v52  ;;  %v1803_v51 = vadd.f32 %v3627_v54, %v1802_v30 }
 0x673   :  { %3630 = vtanh.f32 %v4458_v63  ;;  %v1807_v16 = vsel %vm1806_vm11, %v3627_v54, %v1803_v51  ;;  %v1542_v54 = vadd.f32 %v4386_v46, %v4441_v27 }
 0x674   :  { %v1812_v3 = vsel %vm1809_vm12, %v1811_v48, %v1807_v16 }
 0x679   :  { %v3631_v38 = vpop.eup %3630 }
 0x67a   :  { %v1819_v13 = vmul.f32 %v3631_v38, %v1812_v3 }
 0x67c   :  { %v1820_v7 = vpack.c.bf16 %v1819_v13, %v1819_v13 }
 0x67e   :  { %1821 = vst.msk [vmem:[#allocation2] sm:$0xf] %vm491_vm13, %v1820_v7  ;;  %3302 = vmatmul.msk.bf16.vlgmr.msrb.gmra.mxu0 %vm160_vm0, %v1820_v7  ;;  %3303 = vmatmul.msk.bf16.vlgmr.msrb.gmra.mxu1 %vm160_vm0, %v1820_v7 }
 0x67f   :  { %3304 = vmatmul.msk.bf16.vlgmr.msrb.gmra.mxu2 %vm160_vm0, %v1820_v7  ;;  %3305 = vmatmul.msk.bf16.vlgmr.msrb.gmra.mxu3 %vm160_vm0, %v1820_v7 }
 0x680   :  { %2091 = vmatpush.bf16.msrb.mxu0 %v4310_v26  ;;  %2104 = vmatpush.bf16.msrb.mxu1 %v4314_v1 }
 0x681   :  { %2117 = vmatpush.bf16.msrb.mxu2 %v4319_v47  ;;  %2130 = vmatpush.bf16.msrb.mxu3 %v4321_v50 }
 0x684   :  { %2092 = vmatpush.bf16.msrb.mxu0 %v4324_v14  ;;  %2105 = vmatpush.bf16.msrb.mxu1 %v4332_v29 }
 0x685   :  { %2118 = vmatpush.bf16.msrb.mxu2 %v4334_v43  ;;  %2131 = vmatpush.bf16.msrb.mxu3 %v4343_v12 }
 0x6fb   :  { %v1838_v0 = vpop.f32.mrf.mxu0  ;;  %v1851_v34 = vpop.f32.mrf.mxu1 }
 0x6fc   :  { %v1881_v56 = vadd.f32 %v1838_v0, %v1513_v11  ;;  %v1882_v37 = vadd.f32 %v1851_v34, %v1542_v54 }
 0x6fe   :  { %v3306_v35 = vmul.f32 -1.442695, %v1881_v56  ;;  %v3307_v44 = vmul.f32 -1.442695, %v1882_v37 }
 0x700   :  { %3632 = vpow2.f32 %v3306_v35 }
 0x701   :  { %3634 = vpow2.f32 %v3307_v44 }
 0x702   :  { %v1864_v22 = vpop.f32.mrf.mxu2  ;;  %v1877_v5 = vpop.f32.mrf.mxu3 }
 0x703   :  { %v1883_v49 = vadd.f32 %v1864_v22, %v1571_v53  ;;  %v1840_v24 = vpop.f32.mrf.mxu0  ;;  %v1853_v30 = vpop.f32.mrf.mxu1  ;;  %v1884_v13 = vadd.f32 %v1877_v5, %v1600_v41 }
 0x705   :  { %v3308_v42 = vmul.f32 -1.442695, %v1883_v49 }
 0x706   :  { %v3633_v52 = vpop.eup %3632 }
 0x707   :  { %v3635_v51 = vpop.eup %3634  ;;  %v1894_v46 = vadd.f32 1.0, %v3633_v52  ;;  %3636 = vpow2.f32 %v3308_v42 }
 0x708   :  { %v1895_v6 = vadd.f32 1.0, %v3635_v51 }
 0x709   :  { %3638 = vrcp.f32 %v1894_v46  ;;  %v1908_v56 = vand.u32 2147483648, %v1894_v46  ;;  %v1906_v44 = vand.u32 2147483647, %v1894_v46  ;;  %vm1902_vm1 = vweird.f32 %v1894_v46 }
 0x70a   :  { %3640 = vrcp.f32 %v1895_v6  ;;  %v1866_v20 = vpop.f32.mrf.mxu2  ;;  %v1879_v16 = vpop.f32.mrf.mxu3  ;;  %v1923_v37 = vand.u32 2147483648, %v1895_v6  ;;  %v1921_v22 = vand.u32 2147483647, %v1895_v6  ;;  %vm1917_vm2 = vweird.f32 %v1895_v6 }
 0x70b   :  { %v1909_v24 = vor.u32 1.1754944e-38, %v1908_v56  ;;  %vm1907_vm5 = vcmp.eq.f32.partialorder %v1906_v44, 8.507059e+37 }
 0x70c   :  { %v1924_v42 = vor.u32 1.1754944e-38, %v1923_v37  ;;  %vm1922_vm6 = vcmp.eq.f32.partialorder %v1921_v22, 8.507059e+37 }
 0x70d   :  { %v3637_v48 = vpop.eup %3636 }
 0x70e   :  { %v1896_v38 = vadd.f32 1.0, %v3637_v48 }
 0x70f   :  { %v3639_v3 = vpop.eup %3638 }
 0x710   :  { %v3641_v7 = vpop.eup %3640  ;;  %v1898_v11 = vmul.f32 %v3639_v3, %v1894_v46  ;;  %3642 = vrcp.f32 %v1896_v38  ;;  %vm1903_vm14 = vweird.f32 %v3639_v3  ;;  %vm1932_vm8 = vweird.f32 %v1896_v38 }
 0x711   :  { %v1913_v54 = vmul.f32 %v3641_v7, %v1895_v6  ;;  %3644 = vtanh.f32 %v1884_v13  ;;  %vm1918_vm15 = vweird.f32 %v3641_v7  ;;  %vm1904_vm3 = vmor %vm1902_vm1, %vm1903_vm14 }
 0x712   :  { %v1899_v0 = vsub.f32 1.0, %v1898_v11  ;;  %vm1919_vm4 = vmor %vm1917_vm2, %vm1918_vm15 }
 0x713   :  { %v1914_v34 = vsub.f32 1.0, %v1913_v54 }
 0x714   :  { %v1900_v35 = vmul.f32 %v3639_v3, %v1899_v0  ;;  %v1938_v0 = vand.u32 2147483648, %v1896_v38 }
 0x715   :  { %v1915_v53 = vmul.f32 %v3641_v7, %v1914_v34 }
 0x716   :  { %v3643_v49 = vpop.eup %3642  ;;  %v1901_v59 = vadd.f32 %v3639_v3, %v1900_v35  ;;  %v1939_v56 = vor.u32 1.1754944e-38, %v1938_v0 }
 0x717   :  { %v1928_v5 = vmul.f32 %v3643_v49, %v1896_v38  ;;  %v1916_v30 = vadd.f32 %v3641_v7, %v1915_v53  ;;  %v3645_v51 = vpop.eup %3644  ;;  %vm1933_vm7 = vweird.f32 %v3643_v49 }
 0x718   :  { %v1905_v52 = vsel %vm1904_vm3, %v3639_v3, %v1901_v59  ;;  %v1936_v3 = vand.u32 2147483647, %v1896_v38  ;;  %vm1934_vm10 = vmor %vm1932_vm8, %vm1933_vm7  ;;  %v1545_v38 = vadd.f32 %v4394_v31, %v4441_v27 }
 0x719   :  { %v1929_v20 = vsub.f32 1.0, %v1928_v5  ;;  %v1910_v16 = vsel %vm1907_vm5, %v1909_v24, %v1905_v52  ;;  %v1920_v48 = vsel %vm1919_vm4, %v3641_v7, %v1916_v30  ;;  %v1574_v30 = vadd.f32 %v4396_v19, %v4449_v17 }
 0x71a   :  { %v1925_v41 = vsel %vm1922_vm6, %v1924_v42, %v1920_v48  ;;  %v1944_v13 = vmul.f32 %v3645_v51, %v1910_v16  ;;  %vm1937_vm11 = vcmp.eq.f32.partialorder %v1936_v3, 8.507059e+37  ;;  %v1603_v19 = vadd.f32 %v4398_v28, %v4452_v57 }
 0x71b   :  { %v1930_v11 = vmul.f32 %v3643_v49, %v1929_v20  ;;  %v1943_v54 = vmul.f32 %v1925_v41, %v4458_v63  ;;  %v1516_v63 = vadd.f32 %v4392_v60, %v4439_v25 }
 0x71d   :  { %v4483_v46 = vadd.f32 %v1944_v13, %v1943_v54  ;;  %v1931_v6 = vadd.f32 %v3643_v49, %v1930_v11 }
 0x71f   :  { %3646 = vtanh.f32 %v4483_v46  ;;  %v1935_v34 = vsel %vm1934_vm10, %v3643_v49, %v1931_v6 }
 0x720   :  { %v1940_v37 = vsel %vm1937_vm11, %v1939_v56, %v1935_v34 }
 0x725   :  { %v3647_v7 = vpop.eup %3646 }
 0x726   :  { %v1947_v35 = vmul.f32 %v3647_v7, %v1940_v37 }
 0x728   :  { %v1948_v44 = vpack.c.bf16 %v1947_v35, %v1947_v35 }
 0x72a   :  { %1949 = vst.msk [vmem:[#allocation2 + $0x4] sm:$0xf] %vm491_vm13, %v1948_v44  ;;  %3309 = vmatmul.msk.bf16.vlgmr.msra.gmra.mxu0 %vm160_vm0, %v1948_v44  ;;  %3310 = vmatmul.msk.bf16.vlgmr.msra.gmra.mxu1 %vm160_vm0, %v1948_v44 }
 0x72b   :  { %3311 = vmatmul.msk.bf16.vlgmr.msra.gmra.mxu2 %vm160_vm0, %v1948_v44  ;;  %3312 = vmatmul.msk.bf16.vlgmr.msra.gmra.mxu3 %vm160_vm0, %v1948_v44 }
 0x72c   :  { %2219 = vmatpush.bf16.msra.mxu0 %v4310_v26  ;;  %2232 = vmatpush.bf16.msra.mxu1 %v4314_v1 }
 0x72d   :  { %2245 = vmatpush.bf16.msra.mxu2 %v4319_v47  ;;  %2258 = vmatpush.bf16.msra.mxu3 %v4321_v50 }
 0x730   :  { %2220 = vmatpush.bf16.msra.mxu0 %v4324_v14  ;;  %2233 = vmatpush.bf16.msra.mxu1 %v4332_v29 }
 0x731   :  { %2246 = vmatpush.bf16.msra.mxu2 %v4334_v43  ;;  %2259 = vmatpush.bf16.msra.mxu3 %v4343_v12 }
 0x7a7   :  { %v1966_v53 = vpop.f32.mrf.mxu0  ;;  %v1979_v22 = vpop.f32.mrf.mxu1 }
 0x7a8   :  { %v2009_v49 = vadd.f32 %v1966_v53, %v1516_v63  ;;  %v2010_v59 = vadd.f32 %v1979_v22, %v1545_v38 }
 0x7aa   :  { %v3313_v5 = vmul.f32 -1.442695, %v2009_v49  ;;  %v3314_v24 = vmul.f32 -1.442695, %v2010_v59 }
 0x7ac   :  { %3648 = vpow2.f32 %v3313_v5 }
 0x7ad   :  { %3650 = vpow2.f32 %v3314_v24 }
 0x7ae   :  { %v1992_v42 = vpop.f32.mrf.mxu2  ;;  %v2005_v52 = vpop.f32.mrf.mxu3 }
 0x7af   :  { %v2011_v51 = vadd.f32 %v1992_v42, %v1574_v30  ;;  %v1968_v20 = vpop.f32.mrf.mxu0  ;;  %v1981_v16 = vpop.f32.mrf.mxu1  ;;  %v2012_v34 = vadd.f32 %v2005_v52, %v1603_v19 }
 0x7b1   :  { %v3315_v60 = vmul.f32 -1.442695, %v2011_v51 }
 0x7b2   :  { %v3649_v48 = vpop.eup %3648 }
 0x7b3   :  { %v3651_v41 = vpop.eup %3650  ;;  %v2022_v31 = vadd.f32 1.0, %v3649_v48  ;;  %3652 = vpow2.f32 %v3315_v60 }
 0x7b4   :  { %v2023_v13 = vadd.f32 1.0, %v3651_v41 }
 0x7b5   :  { %3654 = vrcp.f32 %v2022_v31  ;;  %v2036_v63 = vand.u32 2147483648, %v2022_v31  ;;  %v2034_v22 = vand.u32 2147483647, %v2022_v31  ;;  %vm2030_vm15 = vweird.f32 %v2022_v31 }
 0x7b6   :  { %3656 = vrcp.f32 %v2023_v13  ;;  %v1994_v11 = vpop.f32.mrf.mxu2  ;;  %v2007_v54 = vpop.f32.mrf.mxu3  ;;  %v2051_v38 = vand.u32 2147483648, %v2023_v13  ;;  %v2049_v59 = vand.u32 2147483647, %v2023_v13  ;;  %vm2045_vm1 = vweird.f32 %v2023_v13 }
 0x7b7   :  { %v2037_v30 = vor.u32 1.1754944e-38, %v2036_v63  ;;  %vm2035_vm4 = vcmp.eq.f32.partialorder %v2034_v22, 8.507059e+37 }
 0x7b8   :  { %v2052_v52 = vor.u32 1.1754944e-38, %v2051_v38  ;;  %vm2050_vm5 = vcmp.eq.f32.partialorder %v2049_v59, 8.507059e+37 }
 0x7b9   :  { %v3653_v6 = vpop.eup %3652 }
 0x7ba   :  { %v2024_v0 = vadd.f32 1.0, %v3653_v6 }
 0x7bb   :  { %v3655_v3 = vpop.eup %3654 }
 0x7bc   :  { %v3657_v56 = vpop.eup %3656  ;;  %v2026_v7 = vmul.f32 %v3655_v3, %v2022_v31  ;;  %3658 = vrcp.f32 %v2024_v0  ;;  %vm2031_vm12 = vweird.f32 %v3655_v3  ;;  %v2066_v19 = vand.u32 2147483648, %v2024_v0 }
 0x7bd   :  { %v2041_v37 = vmul.f32 %v3657_v56, %v2023_v13  ;;  %3660 = vtanh.f32 %v2012_v34  ;;  %vm2046_vm14 = vweird.f32 %v3657_v56  ;;  %vm2032_vm2 = vmor %vm2030_vm15, %vm2031_vm12  ;;  %vm2060_vm7 = vweird.f32 %v2024_v0 }
 0x7be   :  { %v2027_v35 = vsub.f32 1.0, %v2026_v7  ;;  %vm2047_vm3 = vmor %vm2045_vm1, %vm2046_vm14  ;;  %v2067_v7 = vor.u32 1.1754944e-38, %v2066_v19 }
 0x7bf   :  { %v2042_v44 = vsub.f32 1.0, %v2041_v37 }
 0x7c0   :  { %v2028_v53 = vmul.f32 %v3655_v3, %v2027_v35 }
 0x7c1   :  { %v2043_v49 = vmul.f32 %v3657_v56, %v2042_v44 }
 0x7c2   :  { %v3659_v5 = vpop.eup %3658  ;;  %v2029_v28 = vadd.f32 %v3655_v3, %v2028_v53 }
 0x7c3   :  { %v2056_v24 = vmul.f32 %v3659_v5, %v2024_v0  ;;  %v2044_v42 = vadd.f32 %v3657_v56, %v2043_v49  ;;  %v3661_v20 = vpop.eup %3660  ;;  %vm2061_vm6 = vweird.f32 %v3659_v5 }
 0x7c4   :  { %v2033_v51 = vsel %vm2032_vm2, %v3655_v3, %v2029_v28  ;;  %v2064_v3 = vand.u32 2147483647, %v2024_v0  ;;  %vm2062_vm8 = vmor %vm2060_vm7, %vm2061_vm6  ;;  %v1547_v0 = vadd.f32 %v4402_v4, %v4441_v27 }
 0x7c5   :  { %v2057_v16 = vsub.f32 1.0, %v2056_v24  ;;  %v2038_v60 = vsel %vm2035_vm4, %v2037_v30, %v2033_v51  ;;  %v2048_v48 = vsel %vm2047_vm3, %v3657_v56, %v2044_v42 }
 0x7c6   :  { %v2053_v41 = vsel %vm2050_vm5, %v2052_v52, %v2048_v48  ;;  %v2072_v11 = vmul.f32 %v3661_v20, %v2038_v60  ;;  %vm2065_vm10 = vcmp.eq.f32.partialorder %v2064_v3, 8.507059e+37 }
 0x7c7   :  { %v2058_v54 = vmul.f32 %v3659_v5, %v2057_v16  ;;  %v2071_v6 = vmul.f32 %v2053_v41, %v4483_v46  ;;  %v1518_v46 = vadd.f32 %v4400_v33, %v4439_v25 }
 0x7c9   :  { %v4508_v31 = vadd.f32 %v2072_v11, %v2071_v6  ;;  %v2059_v13 = vadd.f32 %v3659_v5, %v2058_v54 }
 0x7cb   :  { %3662 = vtanh.f32 %v4508_v31  ;;  %v2063_v34 = vsel %vm2062_vm8, %v3659_v5, %v2059_v13  ;;  %v1576_v5 = vadd.f32 %v4404_v8, %v4449_v17  ;;  %v1605_v8 = vadd.f32 %v4406_v61, %v4452_v57 }
 0x7cc   :  { %v2068_v37 = vsel %vm2065_vm10, %v2067_v7, %v2063_v34 }
 0x7d1   :  { %v3663_v56 = vpop.eup %3662 }
 0x7d2   :  { %v2075_v35 = vmul.f32 %v3663_v56, %v2068_v37 }
 0x7d4   :  { %v2076_v44 = vpack.c.bf16 %v2075_v35, %v2075_v35 }
 0x7d6   :  { %2077 = vst.msk [vmem:[#allocation2 + $0x8] sm:$0xf] %vm491_vm13, %v2076_v44  ;;  %3316 = vmatmul.msk.bf16.vlgmr.msrb.gmra.mxu0 %vm160_vm0, %v2076_v44  ;;  %3317 = vmatmul.msk.bf16.vlgmr.msrb.gmra.mxu1 %vm160_vm0, %v2076_v44 }
 0x7d7   :  { %3318 = vmatmul.msk.bf16.vlgmr.msrb.gmra.mxu2 %vm160_vm0, %v2076_v44  ;;  %3319 = vmatmul.msk.bf16.vlgmr.msrb.gmra.mxu3 %vm160_vm0, %v2076_v44 }
 0x7d8   :  { %2347 = vmatpush.bf16.msrb.mxu0 %v4310_v26  ;;  %2360 = vmatpush.bf16.msrb.mxu1 %v4314_v1 }
 0x7d9   :  { %2373 = vmatpush.bf16.msrb.mxu2 %v4319_v47  ;;  %2386 = vmatpush.bf16.msrb.mxu3 %v4321_v50 }
 0x7dc   :  { %2348 = vmatpush.bf16.msrb.mxu0 %v4324_v14  ;;  %2361 = vmatpush.bf16.msrb.mxu1 %v4332_v29 }
 0x7dd   :  { %2374 = vmatpush.bf16.msrb.mxu2 %v4334_v43  ;;  %2387 = vmatpush.bf16.msrb.mxu3 %v4343_v12 }
 0x853   :  { %v2094_v63 = vpop.f32.mrf.mxu0  ;;  %v2107_v38 = vpop.f32.mrf.mxu1 }
 0x854   :  { %v2137_v53 = vadd.f32 %v2094_v63, %v1518_v46  ;;  %v2138_v22 = vadd.f32 %v2107_v38, %v1547_v0 }
 0x856   :  { %v3320_v49 = vmul.f32 -1.442695, %v2137_v53  ;;  %v3321_v59 = vmul.f32 -1.442695, %v2138_v22 }
 0x858   :  { %3664 = vpow2.f32 %v3320_v49 }
 0x859   :  { %3666 = vpow2.f32 %v3321_v59 }
 0x85a   :  { %v2120_v28 = vpop.f32.mrf.mxu2  ;;  %v2133_v24 = vpop.f32.mrf.mxu3 }
 0x85b   :  { %v2139_v30 = vadd.f32 %v2120_v28, %v1576_v5  ;;  %v2096_v42 = vpop.f32.mrf.mxu0  ;;  %v2109_v52 = vpop.f32.mrf.mxu1  ;;  %v2140_v6 = vadd.f32 %v2133_v24, %v1605_v8 }
 0x85d   :  { %v3322_v33 = vmul.f32 -1.442695, %v2139_v30 }
 0x85e   :  { %v3665_v51 = vpop.eup %3664 }
 0x85f   :  { %v3667_v20 = vpop.eup %3666  ;;  %v2150_v4 = vadd.f32 1.0, %v3665_v51  ;;  %3668 = vpow2.f32 %v3322_v33 }
 0x860   :  { %v2151_v16 = vadd.f32 1.0, %v3667_v20 }
 0x861   :  { %3670 = vrcp.f32 %v2150_v4  ;;  %v2164_v56 = vand.u32 2147483648, %v2150_v4  ;;  %v2162_v44 = vand.u32 2147483647, %v2150_v4  ;;  %vm2158_vm14 = vweird.f32 %v2150_v4 }
 0x862   :  { %3672 = vrcp.f32 %v2151_v16  ;;  %v2122_v60 = vpop.f32.mrf.mxu2  ;;  %v2135_v48 = vpop.f32.mrf.mxu3  ;;  %v2179_v37 = vand.u32 2147483648, %v2151_v16  ;;  %v2177_v0 = vand.u32 2147483647, %v2151_v16  ;;  %vm2173_vm15 = vweird.f32 %v2151_v16 }
 0x863   :  { %v2165_v53 = vor.u32 1.1754944e-38, %v2164_v56  ;;  %vm2163_vm3 = vcmp.eq.f32.partialorder %v2162_v44, 8.507059e+37 }
 0x864   :  { %v2180_v49 = vor.u32 1.1754944e-38, %v2179_v37  ;;  %vm2178_vm4 = vcmp.eq.f32.partialorder %v2177_v0, 8.507059e+37 }
 0x865   :  { %v3669_v41 = vpop.eup %3668 }
 0x866   :  { %v2152_v11 = vadd.f32 1.0, %v3669_v41 }
 0x867   :  { %v3671_v54 = vpop.eup %3670 }
 0x868   :  { %v3673_v13 = vpop.eup %3672  ;;  %v2154_v19 = vmul.f32 %v3671_v54, %v2150_v4  ;;  %3674 = vrcp.f32 %v2152_v11  ;;  %vm2159_vm11 = vweird.f32 %v3671_v54  ;;  %vm2188_vm6 = vweird.f32 %v2152_v11 }
 0x869   :  { %v2169_v3 = vmul.f32 %v3673_v13, %v2151_v16  ;;  %3676 = vtanh.f32 %v2140_v6  ;;  %vm2174_vm12 = vweird.f32 %v3673_v13  ;;  %vm2160_vm1 = vmor %vm2158_vm14, %vm2159_vm11  ;;  %v2194_v16 = vand.u32 2147483648, %v2152_v11 }
 0x86a   :  { %v2155_v34 = vsub.f32 1.0, %v2154_v19  ;;  %vm2175_vm2 = vmor %vm2173_vm15, %vm2174_vm12  ;;  %v2192_v60 = vand.u32 2147483647, %v2152_v11 }
 0x86b   :  { %v2170_v7 = vsub.f32 1.0, %v2169_v3  ;;  %v2195_v41 = vor.u32 1.1754944e-38, %v2194_v16 }
 0x86c   :  { %v2156_v35 = vmul.f32 %v3671_v54, %v2155_v34  ;;  %vm2193_vm8 = vcmp.eq.f32.partialorder %v2192_v60, 8.507059e+37 }
 0x86d   :  { %v2171_v46 = vmul.f32 %v3673_v13, %v2170_v7 }
 0x86e   :  { %v3675_v63 = vpop.eup %3674  ;;  %v2157_v61 = vadd.f32 %v3671_v54, %v2156_v35  ;;  %v1579_v35 = vadd.f32 %v4412_v40, %v4449_v17  ;;  %v1608_v40 = vadd.f32 %v4414_v2, %v4452_v57 }
 0x86f   :  { %v2184_v38 = vmul.f32 %v3675_v63, %v2152_v11  ;;  %v2172_v22 = vadd.f32 %v3673_v13, %v2171_v46  ;;  %v3677_v5 = vpop.eup %3676  ;;  %vm2189_vm5 = vweird.f32 %v3675_v63  ;;  %v1550_v11 = vadd.f32 %v4410_v36, %v4441_v27 }
 0x870   :  { %v2161_v59 = vsel %vm2160_vm1, %v3671_v54, %v2157_v61  ;;  %vm2190_vm7 = vmor %vm2188_vm6, %vm2189_vm5 }
 0x871   :  { %v2185_v28 = vsub.f32 1.0, %v2184_v38  ;;  %v2166_v24 = vsel %vm2163_vm3, %v2165_v53, %v2161_v59  ;;  %v2176_v30 = vsel %vm2175_vm2, %v3673_v13, %v2172_v22 }
 0x872   :  { %v2181_v42 = vsel %vm2178_vm4, %v2180_v49, %v2176_v30  ;;  %v2200_v52 = vmul.f32 %v3677_v5, %v2166_v24 }
 0x873   :  { %v2186_v33 = vmul.f32 %v3675_v63, %v2185_v28  ;;  %v2199_v51 = vmul.f32 %v2181_v42, %v4508_v31  ;;  %v1521_v31 = vadd.f32 %v4408_v18, %v4439_v25 }
 0x875   :  { %v4533_v20 = vadd.f32 %v2200_v52, %v2199_v51  ;;  %v2187_v4 = vadd.f32 %v3675_v63, %v2186_v33 }
 0x877   :  { %3678 = vtanh.f32 %v4533_v20  ;;  %v2191_v48 = vsel %vm2190_vm7, %v3675_v63, %v2187_v4 }
 0x878   :  { %v2196_v54 = vsel %vm2193_vm8, %v2195_v41, %v2191_v48 }
 0x87d   :  { %v3679_v8 = vpop.eup %3678 }
 0x87e   :  { %v2203_v6 = vmul.f32 %v3679_v8, %v2196_v54 }
 0x880   :  { %v2204_v13 = vpack.c.bf16 %v2203_v6, %v2203_v6 }
 0x882   :  { %2205 = vst.msk [vmem:[#allocation2 + $0xc] sm:$0xf] %vm491_vm13, %v2204_v13  ;;  %3323 = vmatmul.msk.bf16.vlgmr.msra.gmra.mxu0 %vm160_vm0, %v2204_v13  ;;  %3324 = vmatmul.msk.bf16.vlgmr.msra.gmra.mxu1 %vm160_vm0, %v2204_v13 }
 0x883   :  { %3325 = vmatmul.msk.bf16.vlgmr.msra.gmra.mxu2 %vm160_vm0, %v2204_v13  ;;  %3326 = vmatmul.msk.bf16.vlgmr.msra.gmra.mxu3 %vm160_vm0, %v2204_v13 }
 0x884   :  { %2475 = vmatpush.bf16.msra.mxu0 %v4310_v26  ;;  %2488 = vmatpush.bf16.msra.mxu1 %v4314_v1 }
 0x885   :  { %2501 = vmatpush.bf16.msra.mxu2 %v4319_v47  ;;  %2514 = vmatpush.bf16.msra.mxu3 %v4321_v50 }
 0x888   :  { %2476 = vmatpush.bf16.msra.mxu0 %v4324_v14  ;;  %2489 = vmatpush.bf16.msra.mxu1 %v4332_v29 }
 0x889   :  { %2502 = vmatpush.bf16.msra.mxu2 %v4334_v43  ;;  %2515 = vmatpush.bf16.msra.mxu3 %v4343_v12 }
 0x8ff   :  { %v2222_v19 = vpop.f32.mrf.mxu0  ;;  %v2235_v3 = vpop.f32.mrf.mxu1 }
 0x900   :  { %v2265_v34 = vadd.f32 %v2222_v19, %v1521_v31  ;;  %v2266_v7 = vadd.f32 %v2235_v3, %v1550_v11 }
 0x902   :  { %v3327_v56 = vmul.f32 -1.442695, %v2265_v34  ;;  %v3328_v37 = vmul.f32 -1.442695, %v2266_v7 }
 0x904   :  { %3680 = vpow2.f32 %v3327_v56 }
 0x905   :  { %3682 = vpow2.f32 %v3328_v37 }
 0x906   :  { %v2248_v44 = vpop.f32.mrf.mxu2  ;;  %v2261_v46 = vpop.f32.mrf.mxu3 }
 0x907   :  { %v2267_v0 = vadd.f32 %v2248_v44, %v1579_v35  ;;  %v2224_v63 = vpop.f32.mrf.mxu0  ;;  %v2237_v61 = vpop.f32.mrf.mxu1  ;;  %v2268_v30 = vadd.f32 %v2261_v46, %v1608_v40 }
 0x909   :  { %v3329_v18 = vmul.f32 -1.442695, %v2267_v0 }
 0x90a   :  { %v3681_v38 = vpop.eup %3680 }
 0x90b   :  { %v3683_v53 = vpop.eup %3682  ;;  %v2278_v36 = vadd.f32 1.0, %v3681_v38  ;;  %3684 = vpow2.f32 %v3329_v18 }
 0x90c   :  { %v2279_v22 = vadd.f32 1.0, %v3683_v53 }
 0x90d   :  { %3686 = vrcp.f32 %v2278_v36  ;;  %v2292_v16 = vand.u32 2147483648, %v2278_v36  ;;  %v2290_v41 = vand.u32 2147483647, %v2278_v36  ;;  %vm2286_vm12 = vweird.f32 %v2278_v36 }
 0x90e   :  { %3688 = vrcp.f32 %v2279_v22  ;;  %v2250_v49 = vpop.f32.mrf.mxu2  ;;  %v2263_v59 = vpop.f32.mrf.mxu3  ;;  %v2307_v60 = vand.u32 2147483648, %v2279_v22  ;;  %v2305_v54 = vand.u32 2147483647, %v2279_v22  ;;  %vm2301_vm14 = vweird.f32 %v2279_v22 }
 0x90f   :  { %v2293_v31 = vor.u32 1.1754944e-38, %v2292_v16  ;;  %vm2291_vm2 = vcmp.eq.f32.partialorder %v2290_v41, 8.507059e+37 }
 0x910   :  { %v2308_v19 = vor.u32 1.1754944e-38, %v2307_v60  ;;  %vm2306_vm3 = vcmp.eq.f32.partialorder %v2305_v54, 8.507059e+37 }
 0x911   :  { %v3685_v5 = vpop.eup %3684 }
 0x912   :  { %v2280_v28 = vadd.f32 1.0, %v3685_v5 }
 0x913   :  { %v3687_v24 = vpop.eup %3686 }
 0x914   :  { %v3689_v42 = vpop.eup %3688  ;;  %v2282_v52 = vmul.f32 %v3687_v24, %v2278_v36  ;;  %3690 = vrcp.f32 %v2280_v28  ;;  %vm2287_vm10 = vweird.f32 %v3687_v24  ;;  %v2322_v18 = vand.u32 2147483648, %v2280_v28 }
 0x915   :  { %v2297_v33 = vmul.f32 %v3689_v42, %v2279_v22  ;;  %3692 = vtanh.f32 %v2268_v30  ;;  %vm2302_vm11 = vweird.f32 %v3689_v42  ;;  %vm2288_vm15 = vmor %vm2286_vm12, %vm2287_vm10  ;;  %vm2316_vm5 = vweird.f32 %v2280_v28 }
 0x916   :  { %v2283_v51 = vsub.f32 1.0, %v2282_v52  ;;  %vm2303_vm1 = vmor %vm2301_vm14, %vm2302_vm11  ;;  %v2320_v38 = vand.u32 2147483647, %v2280_v28  ;;  %v2323_v36 = vor.u32 1.1754944e-38, %v2322_v18 }
 0x917   :  { %v2298_v4 = vsub.f32 1.0, %v2297_v33 }
 0x918   :  { %v2284_v48 = vmul.f32 %v3687_v24, %v2283_v51  ;;  %vm2321_vm7 = vcmp.eq.f32.partialorder %v2320_v38, 8.507059e+37 }
 0x919   :  { %v2299_v8 = vmul.f32 %v3689_v42, %v2298_v4 }
 0x91a   :  { %v3691_v6 = vpop.eup %3690  ;;  %v2285_v2 = vadd.f32 %v3687_v24, %v2284_v48 }
 0x91b   :  { %v2312_v13 = vmul.f32 %v3691_v6, %v2280_v28  ;;  %v2300_v11 = vadd.f32 %v3689_v42, %v2299_v8  ;;  %v3693_v34 = vpop.eup %3692  ;;  %vm2317_vm4 = vweird.f32 %v3691_v6 }
 0x91c   :  { %v2289_v3 = vsel %vm2288_vm15, %v3687_v24, %v2285_v2  ;;  %vm2318_vm6 = vmor %vm2316_vm5, %vm2317_vm4 }
 0x91d   :  { %v2313_v7 = vsub.f32 1.0, %v2312_v13  ;;  %v2294_v56 = vsel %vm2291_vm2, %v2293_v31, %v2289_v3  ;;  %v2304_v37 = vsel %vm2303_vm1, %v3689_v42, %v2300_v11 }
 0x91e   :  { %v2309_v35 = vsel %vm2306_vm3, %v2308_v19, %v2304_v37  ;;  %v2328_v44 = vmul.f32 %v3693_v34, %v2294_v56 }
 0x91f   :  { %v2314_v46 = vmul.f32 %v3691_v6, %v2313_v7  ;;  %v2327_v0 = vmul.f32 %v2309_v35, %v4533_v20  ;;  %v1523_v20 = vadd.f32 %v4416_v15, %v4439_v25 }
 0x921   :  { %v4558_v63 = vadd.f32 %v2328_v44, %v2327_v0  ;;  %v2315_v61 = vadd.f32 %v3691_v6, %v2314_v46 }
 0x923   :  { %3694 = vtanh.f32 %v4558_v63  ;;  %v2319_v53 = vsel %vm2318_vm6, %v3691_v6, %v2315_v61 }
 0x924   :  { %v2324_v49 = vsel %vm2321_vm7, %v2323_v36, %v2319_v53 }
 0x929   :  { %v3695_v22 = vpop.eup %3694 }
 0x92a   :  { %v2331_v59 = vmul.f32 %v3695_v22, %v2324_v49 }
 0x92c   :  { %v2332_v5 = vpack.c.bf16 %v2331_v59, %v2331_v59 }
 0x92e   :  { %2333 = vst.msk [vmem:[#allocation2 + $0x10] sm:$0xf] %vm491_vm13, %v2332_v5  ;;  %3330 = vmatmul.msk.bf16.vlgmr.msrb.gmra.mxu0 %vm160_vm0, %v2332_v5  ;;  %3331 = vmatmul.msk.bf16.vlgmr.msrb.gmra.mxu1 %vm160_vm0, %v2332_v5 }
 0x92f   :  { %3332 = vmatmul.msk.bf16.vlgmr.msrb.gmra.mxu2 %vm160_vm0, %v2332_v5  ;;  %3333 = vmatmul.msk.bf16.vlgmr.msrb.gmra.mxu3 %vm160_vm0, %v2332_v5 }
 0x930   :  { %2603 = vmatpush.bf16.msrb.mxu0 %v4310_v26  ;;  %2616 = vmatpush.bf16.msrb.mxu1 %v4314_v1  ;;  %v1552_v26 = vadd.f32 %v4418_v9, %v4441_v27 }
 0x931   :  { %2629 = vmatpush.bf16.msrb.mxu2 %v4319_v47  ;;  %2642 = vmatpush.bf16.msrb.mxu3 %v4321_v50 }
 0x934   :  { %2604 = vmatpush.bf16.msrb.mxu0 %v4324_v14  ;;  %2617 = vmatpush.bf16.msrb.mxu1 %v4332_v29  ;;  %v1581_v14 = vadd.f32 %v4420_v45, %v4449_v17  ;;  %v1610_v45 = vadd.f32 %v4422_v23, %v4452_v57 }
 0x935   :  { %2630 = vmatpush.bf16.msrb.mxu2 %v4334_v43  ;;  %2643 = vmatpush.bf16.msrb.mxu3 %v4343_v12 }
 0x9ab   :  { %v2350_v40 = vpop.f32.mrf.mxu0  ;;  %v2363_v1 = vpop.f32.mrf.mxu1 }
 0x9ac   :  { %v2393_v28 = vadd.f32 %v2350_v40, %v1523_v20  ;;  %v2394_v47 = vadd.f32 %v2363_v1, %v1552_v26 }
 0x9ae   :  { %v3334_v24 = vmul.f32 -1.442695, %v2393_v28  ;;  %v3335_v50 = vmul.f32 -1.442695, %v2394_v47 }
 0x9b0   :  { %3696 = vpow2.f32 %v3334_v24 }
 0x9b1   :  { %3698 = vpow2.f32 %v3335_v50 }
 0x9b2   :  { %v2376_v29 = vpop.f32.mrf.mxu2  ;;  %v2389_v43 = vpop.f32.mrf.mxu3 }
 0x9b3   :  { %v2395_v12 = vadd.f32 %v2376_v29, %v1581_v14  ;;  %v2352_v30 = vpop.f32.mrf.mxu0  ;;  %v2365_v42 = vpop.f32.mrf.mxu1  ;;  %v2396_v8 = vadd.f32 %v2389_v43, %v1610_v45  ;;  %v1555_v43 = vadd.f32 %v4426_v21, %v4441_v27 }
 0x9b5   :  { %v3336_v15 = vmul.f32 -1.442695, %v2395_v12 }
 0x9b6   :  { %v3697_v52 = vpop.eup %3696 }
 0x9b7   :  { %v3699_v33 = vpop.eup %3698  ;;  %v2406_v9 = vadd.f32 1.0, %v3697_v52  ;;  %3700 = vpow2.f32 %v3336_v15 }
 0x9b8   :  { %v2407_v51 = vadd.f32 1.0, %v3699_v33 }
 0x9b9   :  { %3702 = vrcp.f32 %v2406_v9  ;;  %v2420_v11 = vand.u32 2147483648, %v2406_v9  ;;  %v2418_v34 = vand.u32 2147483647, %v2406_v9  ;;  %vm2414_vm11 = vweird.f32 %v2406_v9 }
 0x9ba   :  { %3704 = vrcp.f32 %v2407_v51  ;;  %v2378_v4 = vpop.f32.mrf.mxu2  ;;  %v2391_v16 = vpop.f32.mrf.mxu3  ;;  %v2435_v19 = vand.u32 2147483648, %v2407_v51  ;;  %v2433_v56 = vand.u32 2147483647, %v2407_v51  ;;  %vm2429_vm12 = vweird.f32 %v2407_v51 }
 0x9bb   :  { %v2421_v44 = vor.u32 1.1754944e-38, %v2420_v11  ;;  %vm2419_vm1 = vcmp.eq.f32.partialorder %v2418_v34, 8.507059e+37  ;;  %v3460_v34 = vld [vmem:[#allocation9] sm:$0xff] }
 0x9bc   :  { %v2436_v0 = vor.u32 1.1754944e-38, %v2435_v19  ;;  %vm2434_vm2 = vcmp.eq.f32.partialorder %v2433_v56, 8.507059e+37  ;;  %v1613_v19 = vadd.f32 %v4430_v10, %v4452_v57  ;;  %v3464_v56 = vld [vmem:[#allocation9 + $0x20] sm:$0xff] }
 0x9bd   :  { %v3701_v60 = vpop.eup %3700 }
 0x9be   :  { %v2408_v48 = vadd.f32 1.0, %v3701_v60 }
 0x9bf   :  { %v3703_v41 = vpop.eup %3702 }
 0x9c0   :  { %v3705_v54 = vpop.eup %3704  ;;  %v2410_v6 = vmul.f32 %v3703_v41, %v2406_v9  ;;  %3706 = vrcp.f32 %v2408_v48  ;;  %vm2415_vm8 = vweird.f32 %v3703_v41  ;;  %v2450_v40 = vand.u32 2147483648, %v2408_v48 }
 0x9c1   :  { %v2425_v2 = vmul.f32 %v3705_v54, %v2407_v51  ;;  %3708 = vtanh.f32 %v2396_v8  ;;  %vm2430_vm10 = vweird.f32 %v3705_v54  ;;  %vm2416_vm14 = vmor %vm2414_vm11, %vm2415_vm8  ;;  %vm2444_vm4 = vweird.f32 %v2408_v48 }
 0x9c2   :  { %v2411_v13 = vsub.f32 1.0, %v2410_v6  ;;  %vm2431_vm15 = vmor %vm2429_vm12, %vm2430_vm10  ;;  %v2448_v1 = vand.u32 2147483647, %v2408_v48  ;;  %v2451_v47 = vor.u32 1.1754944e-38, %v2450_v40  ;;  %v1584_v9 = vadd.f32 %v4428_v39, %v4449_v17  ;;  %v3467_v39 = vld [vmem:[#allocation9 + $0x38] sm:$0xff] }
 0x9c3   :  { %v2426_v31 = vsub.f32 1.0, %v2425_v2  ;;  %v3463_v2 = vld [vmem:[#allocation9 + $0x18] sm:$0xff] }
 0x9c4   :  { %v2412_v3 = vmul.f32 %v3703_v41, %v2411_v13  ;;  %vm2449_vm6 = vcmp.eq.f32.partialorder %v2448_v1, 8.507059e+37  ;;  %v3461_v13 = vld [vmem:[#allocation9 + $0x8] sm:$0xff] }
 0x9c5   :  { %v2427_v7 = vmul.f32 %v3705_v54, %v2426_v31  ;;  %v3465_v31 = vld [vmem:[#allocation9 + $0x28] sm:$0xff] }
 0x9c6   :  { %v3707_v37 = vpop.eup %3706  ;;  %v2413_v23 = vadd.f32 %v3703_v41, %v2412_v3  ;;  %v3462_v3 = vld [vmem:[#allocation9 + $0x10] sm:$0xff] }
 0x9c7   :  { %v2440_v35 = vmul.f32 %v3707_v37, %v2408_v48  ;;  %v2428_v46 = vadd.f32 %v3705_v54, %v2427_v7  ;;  %v3709_v18 = vpop.eup %3708  ;;  %vm2445_vm3 = vweird.f32 %v3707_v37 }
 0x9c8   :  { %v2417_v61 = vsel %vm2416_vm14, %v3703_v41, %v2413_v23  ;;  %vm2446_vm5 = vmor %vm2444_vm4, %vm2445_vm3 }
 0x9c9   :  { %v2441_v38 = vsub.f32 1.0, %v2440_v35  ;;  %v2422_v53 = vsel %vm2419_vm1, %v2421_v44, %v2417_v61  ;;  %v2432_v36 = vsel %vm2431_vm15, %v3705_v54, %v2428_v46 }
 0x9ca   :  { %v2437_v22 = vsel %vm2434_vm2, %v2436_v0, %v2432_v36  ;;  %v2456_v49 = vmul.f32 %v3709_v18, %v2422_v53 }
 0x9cb   :  { %v2442_v59 = vmul.f32 %v3707_v37, %v2441_v38  ;;  %v2455_v5 = vmul.f32 %v2437_v22, %v4558_v63  ;;  %v1526_v63 = vadd.f32 %v4424_v32, %v4439_v25 }
 0x9cd   :  { %v4583_v20 = vadd.f32 %v2456_v49, %v2455_v5  ;;  %v2443_v26 = vadd.f32 %v3707_v37, %v2442_v59 }
 0x9cf   :  { %3710 = vtanh.f32 %v4583_v20  ;;  %v2447_v28 = vsel %vm2446_vm5, %v3707_v37, %v2443_v26  ;;  %v3466_v37 = vld [vmem:[#allocation9 + $0x30] sm:$0xff] }
 0x9d0   :  { %v2452_v50 = vsel %vm2449_vm6, %v2451_v47, %v2447_v28 }
 0x9d5   :  { %v3711_v24 = vpop.eup %3710 }
 0x9d6   :  { %v2459_v14 = vmul.f32 %v3711_v24, %v2452_v50 }
 0x9d8   :  { %v2460_v29 = vpack.c.bf16 %v2459_v14, %v2459_v14 }
 0x9da   :  { %2461 = vst.msk [vmem:[#allocation2 + $0x14] sm:$0xf] %vm491_vm13, %v2460_v29  ;;  %3337 = vmatmul.msk.bf16.vlgmr.msra.gmra.mxu0 %vm160_vm0, %v2460_v29  ;;  %3338 = vmatmul.msk.bf16.vlgmr.msra.gmra.mxu1 %vm160_vm0, %v2460_v29 }
 0x9db   :  { %3339 = vmatmul.msk.bf16.vlgmr.msra.gmra.mxu2 %vm160_vm0, %v2460_v29  ;;  %3340 = vmatmul.msk.bf16.vlgmr.msra.gmra.mxu3 %vm160_vm0, %v2460_v29 }
 0x9dc   :  { %2753 = vmatpush.bf16.msra.mxu0 %v3463_v2  ;;  %2781 = vmatpush.bf16.msra.mxu1 %v3461_v13  ;;  %v2788_v2 = vld [vmem:[#allocation2 + $0x8] sm:$0xf]  ;;  %v2822_v13 = vld [vmem:[#allocation2 + $0xc] sm:$0xf] }
 0x9dd   :  { %2814 = vmatpush.bf16.msra.mxu2 %v3465_v31  ;;  %2848 = vmatpush.bf16.msra.mxu3 %v3467_v39  ;;  %v2856_v31 = vld [vmem:[#allocation2 + $0x10] sm:$0xf] }
 0x9e0   :  { %2754 = vmatpush.bf16.msra.mxu0 %v3462_v3  ;;  %2782 = vmatpush.bf16.msra.mxu1 %v3460_v34  ;;  %v1557_v3 = vadd.f32 %v4437_v55, %v4441_v27 }
 0x9e1   :  { %2815 = vmatpush.bf16.msra.mxu2 %v3464_v56  ;;  %2849 = vmatpush.bf16.msra.mxu3 %v3466_v37  ;;  %v2890_v39 = vld [vmem:[#allocation2 + $0x14] sm:$0xf] }
 0xa57   :  { %v2478_v12 = vpop.f32.mrf.mxu0  ;;  %v2491_v30 = vpop.f32.mrf.mxu1 }
 0xa58   :  { %v2521_v42 = vadd.f32 %v2478_v12, %v1526_v63  ;;  %v2522_v15 = vadd.f32 %v2491_v30, %v1555_v43 }
 0xa5a   :  { %v3341_v52 = vmul.f32 -1.442695, %v2521_v42  ;;  %v3342_v33 = vmul.f32 -1.442695, %v2522_v15 }
 0xa5c   :  { %3712 = vpow2.f32 %v3341_v52 }
 0xa5d   :  { %3714 = vpow2.f32 %v3342_v33 }
 0xa5e   :  { %v2504_v51 = vpop.f32.mrf.mxu2  ;;  %v2517_v4 = vpop.f32.mrf.mxu3 }
 0xa5f   :  { %v2523_v16 = vadd.f32 %v2504_v51, %v1584_v9  ;;  %v2480_v60 = vpop.f32.mrf.mxu0  ;;  %v2493_v45 = vpop.f32.mrf.mxu1  ;;  %v2524_v35 = vadd.f32 %v2517_v4, %v1613_v19  ;;  %v1528_v19 = vadd.f32 %v4435_v62, %v4439_v25 }
 0xa61   :  { %v3343_v32 = vmul.f32 -1.442695, %v2523_v16 }
 0xa62   :  { %v3713_v48 = vpop.eup %3712 }
 0xa63   :  { %v3715_v41 = vpop.eup %3714  ;;  %v2534_v21 = vadd.f32 1.0, %v3713_v48  ;;  %3716 = vpow2.f32 %v3343_v32  ;;  %v3469_v32 = vld [vmem:[#allocation9 + $0x48] sm:$0xff]  ;;  %v3471_v48 = vld [vmem:[#allocation9 + $0x58] sm:$0xff] }
 0xa64   :  { %v2535_v8 = vadd.f32 1.0, %v3715_v41  ;;  %v3468_v41 = vld [vmem:[#allocation9 + $0x40] sm:$0xff] }
 0xa65   :  { %3718 = vrcp.f32 %v2534_v21  ;;  %v2548_v18 = vand.u32 2147483648, %v2534_v21  ;;  %v2546_v36 = vand.u32 2147483647, %v2534_v21  ;;  %vm2542_vm10 = vweird.f32 %v2534_v21 }
 0xa66   :  { %3720 = vrcp.f32 %v2535_v8  ;;  %v2506_v54 = vpop.f32.mrf.mxu2  ;;  %v2519_v6 = vpop.f32.mrf.mxu3  ;;  %v2563_v38 = vand.u32 2147483648, %v2535_v8  ;;  %v2561_v49 = vand.u32 2147483647, %v2535_v8  ;;  %vm2557_vm11 = vweird.f32 %v2535_v8 }
 0xa67   :  { %v2549_v40 = vor.u32 1.1754944e-38, %v2548_v18  ;;  %vm2547_vm15 = vcmp.eq.f32.partialorder %v2546_v36, 8.507059e+37  ;;  %v2727_v54 = vld [vmem:[#allocation2 + $0x4] sm:$0xf]  ;;  %v2722_v6 = vld [vmem:[#allocation2] sm:$0xf] }
 0xa68   :  { %v2564_v28 = vor.u32 1.1754944e-38, %v2563_v38  ;;  %vm2562_vm1 = vcmp.eq.f32.partialorder %v2561_v49, 8.507059e+37 }
 0xa69   :  { %v3717_v11 = vpop.eup %3716 }
 0xa6a   :  { %v2536_v7 = vadd.f32 1.0, %v3717_v11 }
 0xa6b   :  { %v3719_v23 = vpop.eup %3718 }
 0xa6c   :  { %v3721_v44 = vpop.eup %3720  ;;  %v2538_v46 = vmul.f32 %v3719_v23, %v2534_v21  ;;  %3722 = vrcp.f32 %v2536_v7  ;;  %vm2543_vm7 = vweird.f32 %v3719_v23  ;;  %v2578_v52 = vand.u32 2147483648, %v2536_v7  ;;  %v3470_v21 = vld [vmem:[#allocation9 + $0x50] sm:$0xff] }
 0xa6d   :  { %v2553_v0 = vmul.f32 %v3721_v44, %v2535_v8  ;;  %3724 = vtanh.f32 %v2524_v35  ;;  %vm2558_vm8 = vweird.f32 %v3721_v44  ;;  %vm2544_vm12 = vmor %vm2542_vm10, %vm2543_vm7  ;;  %vm2572_vm3 = vweird.f32 %v2536_v7  ;;  %v3472_v8 = vld [vmem:[#allocation9 + $0x60] sm:$0xff] }
 0xa6e   :  { %v2539_v61 = vsub.f32 1.0, %v2538_v46  ;;  %vm2559_vm14 = vmor %vm2557_vm11, %vm2558_vm8  ;;  %v2576_v33 = vand.u32 2147483647, %v2536_v7  ;;  %v2579_v51 = vor.u32 1.1754944e-38, %v2578_v52 }
 0xa6f   :  { %v2554_v10 = vsub.f32 1.0, %v2553_v0 }
 0xa70   :  { %v2540_v53 = vmul.f32 %v3719_v23, %v2539_v61  ;;  %vm2577_vm5 = vcmp.eq.f32.partialorder %v2576_v33, 8.507059e+37 }
 0xa71   :  { %v2555_v22 = vmul.f32 %v3721_v44, %v2554_v10 }
 0xa72   :  { %v3723_v59 = vpop.eup %3722  ;;  %v2541_v5 = vadd.f32 %v3719_v23, %v2540_v53 }
 0xa73   :  { %v2568_v26 = vmul.f32 %v3723_v59, %v2536_v7  ;;  %v2556_v1 = vadd.f32 %v3721_v44, %v2555_v22  ;;  %v3725_v24 = vpop.eup %3724  ;;  %vm2573_vm2 = vweird.f32 %v3723_v59  ;;  %v3475_v22 = vld [vmem:[#allocation9 + $0x78] sm:$0xff] }
 0xa74   :  { %v2545_v47 = vsel %vm2544_vm12, %v3719_v23, %v2541_v5  ;;  %vm2574_vm4 = vmor %vm2572_vm3, %vm2573_vm2 }
 0xa75   :  { %v2569_v50 = vsub.f32 1.0, %v2568_v26  ;;  %v2550_v14 = vsel %vm2547_vm15, %v2549_v40, %v2545_v47  ;;  %v2560_v29 = vsel %vm2559_vm14, %v3721_v44, %v2556_v1  ;;  %v1586_v44 = vadd.f32 %v4445_v58, %v4449_v17  ;;  %v3474_v17 = vld [vmem:[#allocation9 + $0x70] sm:$0xff]  ;;  %v4661_v26 = vld [vmem:[#allocation17_spill] sm:$0xff] }
 0xa76   :  { %v2565_v63 = vsel %vm2562_vm1, %v2564_v28, %v2560_v29  ;;  %v2584_v43 = vmul.f32 %v3725_v24, %v2550_v14  ;;  %v1615_v40 = vadd.f32 %v4661_v26, %v4452_v57 }
 0xa77   :  { %v2570_v12 = vmul.f32 %v3723_v59, %v2569_v50  ;;  %v2583_v30 = vmul.f32 %v2565_v63, %v4583_v20  ;;  %v3473_v20 = vld [vmem:[#allocation9 + $0x68] sm:$0xff] }
 0xa79   :  { %v4600_v42 = vadd.f32 %v2584_v43, %v2583_v30  ;;  %v2571_v15 = vadd.f32 %v3723_v59, %v2570_v12 }
 0xa7b   :  { %3726 = vtanh.f32 %v4600_v42  ;;  %v2575_v9 = vsel %vm2574_vm4, %v3723_v59, %v2571_v15 }
 0xa7c   :  { %v2580_v16 = vsel %vm2577_vm5, %v2579_v51, %v2575_v9  ;;  %vm3016_vm5 = vcmask 517120  }
 0xa81   :  { %v3727_v4 = vpop.eup %3726 }
 0xa82   :  { %v2587_v60 = vmul.f32 %v3727_v4, %v2580_v16 }
 0xa84   :  { %v2588_v45 = vpack.c.bf16 %v2587_v60, %v2587_v60 }
 0xa86   :  { %2589 = vst.msk [vmem:[#allocation2 + $0x18] sm:$0xf] %vm491_vm13, %v2588_v45  ;;  %3344 = vmatmul.msk.bf16.vlgmr.msrb.gmra.mxu0 %vm160_vm0, %v2588_v45  ;;  %3345 = vmatmul.msk.bf16.vlgmr.msrb.gmra.mxu1 %vm160_vm0, %v2588_v45 }
 0xa87   :  { %3346 = vmatmul.msk.bf16.vlgmr.msrb.gmra.mxu2 %vm160_vm0, %v2588_v45  ;;  %3347 = vmatmul.msk.bf16.vlgmr.msrb.gmra.mxu3 %vm160_vm0, %v2588_v45 }
 0xa88   :  { %2882 = vmatpush.bf16.msrb.mxu0 %v3469_v32  ;;  %2916 = vmatpush.bf16.msrb.mxu1 %v3471_v48 }
 0xa89   :  { %2950 = vmatpush.bf16.msrb.mxu2 %v3473_v20  ;;  %2984 = vmatpush.bf16.msrb.mxu3 %v3475_v22 }
 0xa8c   :  { %2883 = vmatpush.bf16.msrb.mxu0 %v3468_v41  ;;  %2917 = vmatpush.bf16.msrb.mxu1 %v3470_v21 }
 0xa8d   :  { %2951 = vmatpush.bf16.msrb.mxu2 %v3472_v8  ;;  %v2924_v11 = vld [vmem:[#allocation2 + $0x18] sm:$0xf]  ;;  %2985 = vmatpush.bf16.msrb.mxu3 %v3474_v17 }
 0xa96   :  { %3359 = vmatmul.msk.bf16.vlgmr.msra.gmra.mxu0 %vm160_vm0, %v2727_v54  ;;  %3368 = vmatmul.msk.bf16.vlgmr.msra.gmra.mxu1 %vm160_vm0, %v2722_v6 }
 0xa97   :  { %3377 = vmatmul.msk.bf16.vlgmr.msra.gmra.mxu2 %vm160_vm0, %v2788_v2  ;;  %3386 = vmatmul.msk.bf16.vlgmr.msra.gmra.mxu3 %vm160_vm0, %v2822_v13 }
 0xaa6   :  { %3395 = vmatmul.msk.bf16.vlgmr.msrb.gmra.mxu0 %vm160_vm0, %v2856_v31  ;;  %3404 = vmatmul.msk.bf16.vlgmr.msrb.gmra.mxu1 %vm160_vm0, %v2890_v39 }
 0xaa7   :  { %3413 = vmatmul.msk.bf16.vlgmr.msrb.gmra.mxu2 %vm160_vm0, %v2924_v11 }
 0xb03   :  { %v2606_v34 = vpop.f32.mrf.mxu0  ;;  %v2619_v7 = vpop.f32.mrf.mxu1 }
 0xb04   :  { %v2649_v56 = vadd.f32 %v2606_v34, %v1528_v19  ;;  %v2650_v37 = vadd.f32 %v2619_v7, %v1557_v3 }
 0xb06   :  { %v3348_v23 = vmul.f32 -1.442695, %v2649_v56  ;;  %v3349_v35 = vmul.f32 -1.442695, %v2650_v37 }
 0xb08   :  { %3728 = vpow2.f32 %v3348_v23 }
 0xb09   :  { %3730 = vpow2.f32 %v3349_v35 }
 0xb0a   :  { %v2632_v46 = vpop.f32.mrf.mxu2  ;;  %v2645_v0 = vpop.f32.mrf.mxu3 }
 0xb0b   :  { %v2651_v61 = vadd.f32 %v2632_v46, %v1586_v44  ;;  %v2608_v10 = vpop.f32.mrf.mxu0  ;;  %v2621_v18 = vpop.f32.mrf.mxu1  ;;  %v2652_v47 = vadd.f32 %v2645_v0, %v1615_v40 }
 0xb0d   :  { %v3350_v62 = vmul.f32 -1.442695, %v2651_v61 }
 0xb0e   :  { %v3729_v25 = vpop.eup %3728 }
 0xb0f   :  { %v3731_v38 = vpop.eup %3730  ;;  %v2662_v55 = vadd.f32 1.0, %v3729_v25  ;;  %3732 = vpow2.f32 %v3350_v62 }
 0xb10   :  { %v2663_v27 = vadd.f32 1.0, %v3731_v38 }
 0xb11   :  { %3734 = vrcp.f32 %v2662_v55  ;;  %v2676_v30 = vand.u32 2147483648, %v2662_v55  ;;  %v2674_v51 = vand.u32 2147483647, %v2662_v55  ;;  %vm2670_vm8 = vweird.f32 %v2662_v55 }
 0xb12   :  { %3736 = vrcp.f32 %v2663_v27  ;;  %v2634_v53 = vpop.f32.mrf.mxu2  ;;  %v2647_v36 = vpop.f32.mrf.mxu3  ;;  %v2691_v57 = vand.u32 2147483648, %v2663_v27  ;;  %v2689_v16 = vand.u32 2147483647, %v2663_v27  ;;  %vm2685_vm10 = vweird.f32 %v2663_v27 }
 0xb13   :  { %v2756_v49 = vpop.f32.mrf.mxu0  ;;  %v2784_v59 = vpop.f32.mrf.mxu1  ;;  %v2677_v20 = vor.u32 1.1754944e-38, %v2676_v30  ;;  %vm2675_vm14 = vcmp.eq.f32.partialorder %v2674_v51, 8.507059e+37 }
 0xb14   :  { %v2785_v58 = vadd.f32 %v2784_v59, %v2756_v49  ;;  %v2692_v21 = vor.u32 1.1754944e-38, %v2691_v57  ;;  %vm2690_vm15 = vcmp.eq.f32.partialorder %v2689_v16, 8.507059e+37  ;;  %v3487_v49 = vld [vmem:[%s4654_s7] ss:$0 sm:$0xff] }
 0xb15   :  { %v3733_v5 = vpop.eup %3732 }
 0xb16   :  { %v4623_v1 = vadd.f32 1.0, %v3733_v5 }
 0xb17   :  { %v3735_v28 = vpop.eup %3734 }
 0xb18   :  { %v3737_v24 = vpop.eup %3736  ;;  %v2666_v50 = vmul.f32 %v3735_v28, %v2662_v55  ;;  %3738 = vrcp.f32 %v4623_v1  ;;  %vm2671_vm6 = vweird.f32 %v3735_v28  ;;  %v2706_v46 = vand.u32 2147483648, %v4623_v1 }
 0xb19   :  { %v2681_v14 = vmul.f32 %v3737_v24, %v2663_v27  ;;  %3740 = vtanh.f32 %v2652_v47  ;;  %vm2686_vm7 = vweird.f32 %v3737_v24  ;;  %vm2672_vm11 = vmor %vm2670_vm8, %vm2671_vm6  ;;  %vm2700_vm2 = vweird.f32 %v4623_v1 }
 0xb1a   :  { %v2667_v29 = vsub.f32 1.0, %v2666_v50  ;;  %v2817_v63 = vpop.f32.mrf.mxu2  ;;  %v2851_v43 = vpop.f32.mrf.mxu3  ;;  %vm2687_vm12 = vmor %vm2685_vm10, %vm2686_vm7  ;;  %v2704_v0 = vand.u32 2147483647, %v4623_v1 }
 0xb1b   :  { %v2682_v12 = vsub.f32 1.0, %v2681_v14  ;;  %v2821_v15 = vadd.f32 %v2817_v63, %v2785_v58  ;;  %v2758_v52 = vpop.f32.mrf.mxu0  ;;  %v2786_v33 = vpop.f32.mrf.mxu1 }
 0xb1c   :  { %v2668_v9 = vmul.f32 %v3735_v28, %v2667_v29  ;;  %vm2705_vm4 = vcmp.eq.f32.partialorder %v2704_v0, 8.507059e+37 }
 0xb1d   :  { %v2683_v4 = vmul.f32 %v3737_v24, %v2682_v12  ;;  %v2855_v60 = vadd.f32 %v2851_v43, %v2821_v15 }
 0xb1e   :  { %v3739_v45 = vpop.eup %3738  ;;  %v2669_v32 = vadd.f32 %v3735_v28, %v2668_v9 }
 0xb1f   :  { %v2696_v48 = vmul.f32 %v3739_v45, %v4623_v1  ;;  %v2684_v41 = vadd.f32 %v3737_v24, %v2683_v4  ;;  %v3741_v54 = vpop.eup %3740  ;;  %vm2701_vm1 = vweird.f32 %v3739_v45 }
 0xb20   :  { %v2673_v8 = vsel %vm2672_vm11, %v3735_v28, %v2669_v32  ;;  %vm2702_vm3 = vmor %vm2700_vm2, %vm2701_vm1 }
 0xb21   :  { %v2697_v6 = vsub.f32 1.0, %v2696_v48  ;;  %v2678_v2 = vsel %vm2675_vm14, %v2677_v20, %v2673_v8  ;;  %v2688_v13 = vsel %vm2687_vm12, %v3737_v24, %v2684_v41 }
 0xb22   :  { %v2693_v31 = vsel %vm2690_vm15, %v2692_v21, %v2688_v13  ;;  %v2712_v39 = vmul.f32 %v3741_v54, %v2678_v2  ;;  %v2819_v11 = vpop.f32.mrf.mxu2  ;;  %v2853_v19 = vpop.f32.mrf.mxu3 }
 0xb23   :  { %v2698_v3 = vmul.f32 %v3739_v45, %v2697_v6  ;;  %v2711_v34 = vmul.f32 %v2693_v31, %v4600_v42  ;;  %v2885_v7 = vpop.f32.mrf.mxu0  ;;  %v2919_v56 = vpop.f32.mrf.mxu1  ;;  %v2707_v42 = vor.u32 1.1754944e-38, %v2706_v46 }
 0xb24   :  { %v2889_v37 = vadd.f32 %v2885_v7, %v2855_v60 }
 0xb25   :  { %v2713_v23 = vadd.f32 %v2712_v39, %v2711_v34  ;;  %v2699_v35 = vadd.f32 %v3739_v45, %v2698_v3 }
 0xb26   :  { %v2923_v44 = vadd.f32 %v2919_v56, %v2889_v37 }
 0xb27   :  { %3742 = vtanh.f32 %v2713_v23  ;;  %2721 = vst.msk [vmem:[#allocation11 + $0x2] sm:$0x3] %vm1389_vm9, %v2713_v23  ;;  %v2703_v61 = vsel %vm2702_vm3, %v3739_v45, %v2699_v35 }
 0xb28   :  { %v2708_v55 = vsel %vm2705_vm4, %v2707_v42, %v2703_v61  ;;  %3045 = dma.vmem_to_hbm [thread:$0]  %s3038_s18, 64, %s3040_s21, [#allocation12], %s3884_s15, %s3884_s15, %s3885_s16  }
 0xb2a   :  { %v2953_v10 = vpop.f32.mrf.mxu2 }
 0xb2b   :  { %v2957_v18 = vadd.f32 %v2953_v10, %v2923_v44  ;;  %v2887_v62 = vpop.f32.mrf.mxu0  ;;  %v2921_v25 = vpop.f32.mrf.mxu1 }
 0xb2d   :  { %v3743_v38 = vpop.eup %3742 }
 0xb2e   :  { %v2715_v27 = vmul.f32 %v3743_v38, %v2708_v55 }
 0xb30   :  { %v2716_v53 = vpack.c.bf16 %v2715_v27, %v2715_v27  ;;  %2719 = vst.msk [vmem:[#allocation10 + $0x2] sm:$0x3] %vm1389_vm9, %v2715_v27 }
 0xb31   :  { %3032 = dma.vmem_to_hbm [thread:$0]  %s3025_s11, 64, %s3027_s14, [#allocation6], %s3884_s15, %s3884_s15, %s3885_s16  }
 0xb32   :  { %2717 = vst.msk [vmem:[#allocation2 + $0x1c] sm:$0xf] %vm491_vm13, %v2716_v53  ;;  %v2955_v36 = vpop.f32.mrf.mxu2 }
 0xb39   :  { %v2958_v22 = vld [vmem:[#allocation2 + $0x1c] sm:$0xf] }
 0xb3a   :  { %3422 = vmatmul.msk.bf16.vlgmr.msrb.gmra.mxu3 %vm160_vm0, %v2958_v22 }
 0xbbd   :  { %v2987_v59 = vpop.f32.mrf.mxu3 }
 0xbbe   :  { %v2991_v58 = vadd.f32 %v2987_v59, %v2957_v18 }
 0xbc0   :  { %v2996_v17 = vadd.f32 %v3487_v49, %v2991_v58 }
 0xbc2   :  { %v3423_v5 = vmul.f32 -1.442695, %v2996_v17 }
 0xbc4   :  { %3744 = vpow2.f32 %v3423_v5 }
 0xbc5   :  { %v2989_v26 = vpop.f32.mrf.mxu3 }
 0xbca   :  { %v3745_v40 = vpop.eup %3744 }
 0xbcb   :  { %v3000_v1 = vadd.f32 1.0, %v3745_v40 }
 0xbcd   :  { %3746 = vrcp.f32 %v3000_v1  ;;  %v3012_v50 = vand.u32 2147483648, %v3000_v1  ;;  %v3010_v29 = vand.u32 2147483647, %v3000_v1  ;;  %vm3006_vm13 = vweird.f32 %v3000_v1 }
 0xbcf   :  { %v3013_v43 = vor.u32 1.1754944e-38, %v3012_v50  ;;  %vm3011_vm6 = vcmp.eq.f32.partialorder %v3010_v29, 8.507059e+37 }
 0xbd3   :  { %v3747_v28 = vpop.eup %3746 }
 0xbd4   :  { %v3002_v47 = vmul.f32 %v3747_v28, %v3000_v1  ;;  %vm3007_vm0 = vweird.f32 %v3747_v28 }
 0xbd5   :  { %vm3008_vm9 = vmor %vm3006_vm13, %vm3007_vm0 }
 0xbd6   :  { %v3003_v24 = vsub.f32 1.0, %v3002_v47 }
 0xbd8   :  { %v3004_v14 = vmul.f32 %v3747_v28, %v3003_v24 }
 0xbda   :  { %v3005_v63 = vadd.f32 %v3747_v28, %v3004_v14 }
 0xbdc   :  { %v3009_v12 = vsel %vm3008_vm9, %v3747_v28, %v3005_v63 }
 0xbdd   :  { %v3014_v30 = vsel %vm3011_vm6, %v3013_v43, %v3009_v12 }
 0xbde   :  { %3017 = vst.msk [vmem:[%s4655_s8] sm:$0x3] %vm3016_vm5, %v3014_v30 }
 0xbdf   :  { %3872 = dma.done.wait [#allocation6], 64  }
 0xbe0   :  { %3873 = vsyncadd [#allocation6], 4294967232 }
 0xbe1   :  { %3874 = dma.done.wait [#allocation12], 64  }
 0xbe2   :  { %3875 = vsyncadd [#allocation12], 4294967232 }
 0xbe3   :  { %3056 = vsyncpa [#allocation5], 1 }
 0xbe4   :  { %3057 = vsyncpa [#allocation8], 1 }
 0xbe5   :  { %3058 = vsyncpa [#allocation6], 1 }
 0xbe6   :  { %3059 = vsyncpa [#allocation12], 1 }

</bundles_post_ra>
